<compile_context>
chip_gen: v7x
topology: tpu7x:2x2x1
jax: 0.10.0
libtpu: 0.0.40
codegen_flags: <defaults>
</compile_context>

<pallas_src>
import jax
import jax.numpy as jnp
from jax import lax
from jax.experimental import pallas as pl
from jax.experimental.pallas import tpu as pltpu


# ---------------------------- static model config ---------------------------

N, CIN, H, W = 2, 4, 16, 16
COUT, KH, KW = 8, 3, 3
NUM_CLASSES = 10
HW = H * W                       # 256
HP, WP = H + 2, W + 2            # padded spatial dims (pad = 1)
QF = H * WP                      # 288: flattened padded-q positions computed per sample
QP = 384                         # per-sample padded flat length >= QF + max tap offset (38); 3*128
FLAT = COUT * HW                 # 2048


# ------------------------------ Pallas kernel --------------------------------

def fused_kernel(x_ref, wtaps_ref, bc_ref, wfcq_ref, bfc_ref, out_ref, xpad_ref):
    """Conv(3x3, pad=1)+bias+ReLU -> x.view(N,-1) -> Linear, fully fused.

    x_ref     : [N, CIN, H, W]        raw input (f32)
    wtaps_ref : [KH*KW, COUT, CIN]    per-tap conv weights (bf16), tap t = kh*KW + kw
    bc_ref    : [COUT, 1]             conv bias (f32)
    wfcq_ref  : [COUT, QF, CLS]       classifier weight with CHW-flatten folded in,
                                      laid out over padded-q; zero at pad lanes (bf16)
    bfc_ref   : [1, CLS]              classifier bias (f32)
    out_ref   : [N, CLS]              logits (f32)
    xpad_ref  : [N, CIN, QP]          VMEM scratch: zero-padded input, flat q layout (bf16)
    """
    # ---- stage zero-padded input: xpad[n, cin, (h+1)*WP + (w+1)] = x[n, cin, h, w] ----
    xv = x_ref[...].astype(jnp.bfloat16)                      # one 8 KB load + cast
    xpad_ref[...] = jnp.zeros((N, CIN, QP), jnp.bfloat16)
    for h in range(H):                                        # 16 static row stores
        dst = (h + 1) * WP + 1
        xpad_ref[:, :, dst:dst + W] = xv[:, :, h, :]

    for n in range(N):                                        # static unroll (N = 2)
        # --- backbone: 9 accumulating per-tap matmuls, f32 accumulation ---
        acc = jnp.zeros((COUT, QF), jnp.float32)
        for t in range(KH * KW):                              # static unroll (9 taps)
            kh, kw = divmod(t, KW)
            d = kh * WP + kw                                  # static lane offset of this tap
            acc = acc + jnp.dot(wtaps_ref[t], xpad_ref[n, :, d:d + QF],
                                preferred_element_type=jnp.float32)
        feat = jnp.maximum(acc + bc_ref[...], 0.0).astype(jnp.bfloat16)   # [COUT, QF]

        # --- classifier: flatten folded into wfcq; 8 accumulated [1,QF]@[QF,CLS] ---
        o = jnp.zeros((1, NUM_CLASSES), jnp.float32)
        for c in range(COUT):                                 # static unroll (8 channels)
            o = o + jnp.dot(feat[c:c + 1, :], wfcq_ref[c],
                            preferred_element_type=jnp.float32)
        out_ref[n:n + 1, :] = (o + bfc_ref[...]).astype(out_ref.dtype)


_VMEM = pl.BlockSpec(memory_space=pltpu.MemorySpace.VMEM)


# ----------------------------- weight preparation ----------------------------

def prepare_params(wconv, bconv, wfc, bfc):
    """One-time weight layout prep (all permutes / flatten-folding / bf16 casts).

    wconv: [COUT, CIN, KH, KW]   (PyTorch conv weight)
    bconv: [COUT]
    wfc  : [NUM_CLASSES, COUT*H*W]  (PyTorch linear weight, CHW-flatten order)
    bfc  : [NUM_CLASSES]
    """
    # per-tap conv weights: wtaps[kh*KW+kw, co, ci] = wconv[co, ci, kh, kw]
    wtaps = jnp.transpose(wconv, (2, 3, 0, 1)).reshape(KH * KW, COUT, CIN)
    wtaps = wtaps.astype(jnp.bfloat16)
    bc = bconv.reshape(COUT, 1).astype(jnp.float32)

    # classifier weight with the CHW flatten folded in, laid out over padded-q:
    #   wfcq[c, h*WP + w, cls] = wfc[cls, c*HW + h*W + w]   for w < W
    #   wfcq[c, h*WP + w, cls] = 0                          for w in {W, W+1} (pad lanes)
    w4 = wfc.reshape(NUM_CLASSES, COUT, H, W)                 # [CLS, COUT, H, W]
    w4 = jnp.transpose(w4, (1, 2, 3, 0))                      # [COUT, H, W, CLS]
    wq = jnp.zeros((COUT, H, WP, NUM_CLASSES), jnp.float32).at[:, :, :W, :].set(w4)
    wfcq = wq.reshape(COUT, QF, NUM_CLASSES).astype(jnp.bfloat16)

    bfc2 = bfc.reshape(1, NUM_CLASSES).astype(jnp.float32)
    return wtaps, bc, wfcq, bfc2


# --------------------------------- forward -----------------------------------

def combined_model_forward(x_nchw, params):
    """Forward pass matching the PyTorch combined_model semantics.

    x_nchw: [N, CIN, H, W]; params from prepare_params(); returns [N, NUM_CLASSES].
    """
    wtaps, bc, wfcq, bfc2 = params

    flops = 2 * N * (KH * KW * COUT * CIN * QF) + 2 * N * (COUT * QF * NUM_CLASSES)
    bytes_accessed = (x_nchw.size * 4 + wtaps.size * 2 + bc.size * 4
                      + wfcq.size * 2 + bfc2.size * 4 + N * NUM_CLASSES * 4)

    return pl.pallas_call(
        fused_kernel,
        out_shape=jax.ShapeDtypeStruct((N, NUM_CLASSES), jnp.float32),
        in_specs=[_VMEM, _VMEM, _VMEM, _VMEM, _VMEM],
        out_specs=_VMEM,
        scratch_shapes=[pltpu.VMEM((N, CIN, QP), jnp.bfloat16)],
        cost_estimate=pl.CostEstimate(flops=flops, transcendentals=0,
                                      bytes_accessed=bytes_accessed),
    )(x_nchw, wtaps, bc, wfcq, bfc2)


# -------------------------------- reference ----------------------------------

def reference_forward(x_nchw, wconv, bconv, wfc, bfc):
    """Pure-JAX (f32) mirror of the PyTorch module (NCHW conv, CHW flatten, Linear)."""
    y = lax.conv_general_dilated(
        x_nchw, wconv, window_strides=(1, 1), padding=((1, 1), (1, 1)),
        dimension_numbers=("NCHW", "OIHW", "NCHW"))
    y = jnp.maximum(y + bconv[None, :, None, None], 0.0)
    y = y.reshape(y.shape[0], -1)                             # x.view(N, -1)
    return y @ wfc.T + bfc                                    # nn.Linear


# ----------------------------------- main -------------------------------------

if __name__ == "__main__":
    key = jax.random.PRNGKey(0)
    kx, kw1, kb1, kw2, kb2 = jax.random.split(key, 5)

    x = jax.random.normal(kx, (N, CIN, H, W), jnp.float32)
    wconv = jax.random.normal(kw1, (COUT, CIN, KH, KW), jnp.float32) * 0.1
    bconv = jax.random.normal(kb1, (COUT,), jnp.float32) * 0.1
    wfc = jax.random.normal(kw2, (NUM_CLASSES, FLAT), jnp.float32) * 0.02
    bfc = jax.random.normal(kb2, (NUM_CLASSES,), jnp.float32) * 0.02

    params = prepare_params(wconv, bconv, wfc, bfc)   # weight prep, done once

    out = combined_model_forward(x, params)
    out = jax.block_until_ready(out)

    ref = reference_forward(x, wconv, bconv, wfc, bfc)
    assert out.shape == (N, NUM_CLASSES), out.shape
    # bf16 operands with f32 accumulation -> loosened tolerance vs f32 reference.
    assert jnp.allclose(out, ref, atol=2e-2, rtol=2e-2), "mismatch vs reference"

    print("KERNEL_OK")
</pallas_src>

<mosaic_0001>
module attributes {stable_mosaic.version = 11 : i64} {
  func.func @fused_kernel(%arg0: memref<2x4x16x16xf32, #tpu.memory_space<vmem>>, %arg1: memref<9x8x4xbf16, #tpu.memory_space<vmem>>, %arg2: memref<8x1xf32, #tpu.memory_space<vmem>>, %arg3: memref<8x288x10xbf16, #tpu.memory_space<vmem>>, %arg4: memref<1x10xf32, #tpu.memory_space<vmem>>, %arg5: memref<2x10xf32, #tpu.memory_space<vmem>>, %arg6: memref<2x4x384xbf16, #tpu.memory_space<vmem>>) attributes {dimension_semantics = [], scalar_prefetch = 0 : i64, scratch_operands = 1 : i64, tpu.core_type = #tpu.core_type<tc>} {
    %c0 = arith.constant 0 : index
    %c0_0 = arith.constant 0 : index
    %c0_1 = arith.constant 0 : index
    %c0_2 = arith.constant 0 : index
    %0 = vector.load %arg0[%c0, %c0_0, %c0_1, %c0_2] : memref<2x4x16x16xf32, #tpu.memory_space<vmem>>, vector<2x4x16x16xf32>
    %1 = arith.truncf %0 : vector<2x4x16x16xf32> to vector<2x4x16x16xbf16>
    %cst = arith.constant 0.000000e+00 : bf16
    %2 = vector.broadcast %cst : bf16 to vector<2x4x384xbf16>
    %c0_3 = arith.constant 0 : index
    %c0_4 = arith.constant 0 : index
    %c0_5 = arith.constant 0 : index
    %3 = vector.load %arg6[%c0_3, %c0_4, %c0_5] : memref<2x4x384xbf16, #tpu.memory_space<vmem>>, vector<2x4x384xbf16>
    tpu.vector_store %arg6[%c0_3, %c0_4, %c0_5], %2 {strides = array<i32>} : memref<2x4x384xbf16, #tpu.memory_space<vmem>>, vector<2x4x384xbf16>,
    %4 = vector.extract_strided_slice %1 {offsets = [0, 0, 0, 0], sizes = [2, 4, 1, 16], strides = [1, 1, 1, 1]} : vector<2x4x16x16xbf16> to vector<2x4x1x16xbf16>
    %5 = vector.shape_cast %4 : vector<2x4x1x16xbf16> to vector<2x4x16xbf16>
    %c0_6 = arith.constant 0 : index
    %c0_7 = arith.constant 0 : index
    %c19 = arith.constant 19 : index
    %6 = vector.load %arg6[%c0_6, %c0_7, %c19] : memref<2x4x384xbf16, #tpu.memory_space<vmem>>, vector<2x4x16xbf16>
    tpu.vector_store %arg6[%c0_6, %c0_7, %c19], %5 {strides = array<i32>} : memref<2x4x384xbf16, #tpu.memory_space<vmem>>, vector<2x4x16xbf16>,
    %7 = vector.extract_strided_slice %1 {offsets = [0, 0, 1, 0], sizes = [2, 4, 1, 16], strides = [1, 1, 1, 1]} : vector<2x4x16x16xbf16> to vector<2x4x1x16xbf16>
    %8 = vector.shape_cast %7 : vector<2x4x1x16xbf16> to vector<2x4x16xbf16>
    %c0_8 = arith.constant 0 : index
    %c0_9 = arith.constant 0 : index
    %c37 = arith.constant 37 : index
    %9 = vector.load %arg6[%c0_8, %c0_9, %c37] : memref<2x4x384xbf16, #tpu.memory_space<vmem>>, vector<2x4x16xbf16>
    tpu.vector_store %arg6[%c0_8, %c0_9, %c37], %8 {strides = array<i32>} : memref<2x4x384xbf16, #tpu.memory_space<vmem>>, vector<2x4x16xbf16>,
    %10 = vector.extract_strided_slice %1 {offsets = [0, 0, 2, 0], sizes = [2, 4, 1, 16], strides = [1, 1, 1, 1]} : vector<2x4x16x16xbf16> to vector<2x4x1x16xbf16>
    %11 = vector.shape_cast %10 : vector<2x4x1x16xbf16> to vector<2x4x16xbf16>
    %c0_10 = arith.constant 0 : index
    %c0_11 = arith.constant 0 : index
    %c55 = arith.constant 55 : index
    %12 = vector.load %arg6[%c0_10, %c0_11, %c55] : memref<2x4x384xbf16, #tpu.memory_space<vmem>>, vector<2x4x16xbf16>
    tpu.vector_store %arg6[%c0_10, %c0_11, %c55], %11 {strides = array<i32>} : memref<2x4x384xbf16, #tpu.memory_space<vmem>>, vector<2x4x16xbf16>,
    %13 = vector.extract_strided_slice %1 {offsets = [0, 0, 3, 0], sizes = [2, 4, 1, 16], strides = [1, 1, 1, 1]} : vector<2x4x16x16xbf16> to vector<2x4x1x16xbf16>
    %14 = vector.shape_cast %13 : vector<2x4x1x16xbf16> to vector<2x4x16xbf16>
    %c0_12 = arith.constant 0 : index
    %c0_13 = arith.constant 0 : index
    %c73 = arith.constant 73 : index
    %15 = vector.load %arg6[%c0_12, %c0_13, %c73] : memref<2x4x384xbf16, #tpu.memory_space<vmem>>, vector<2x4x16xbf16>
    tpu.vector_store %arg6[%c0_12, %c0_13, %c73], %14 {strides = array<i32>} : memref<2x4x384xbf16, #tpu.memory_space<vmem>>, vector<2x4x16xbf16>,
    %16 = vector.extract_strided_slice %1 {offsets = [0, 0, 4, 0], sizes = [2, 4, 1, 16], strides = [1, 1, 1, 1]} : vector<2x4x16x16xbf16> to vector<2x4x1x16xbf16>
    %17 = vector.shape_cast %16 : vector<2x4x1x16xbf16> to vector<2x4x16xbf16>
    %c0_14 = arith.constant 0 : index
    %c0_15 = arith.constant 0 : index
    %c91 = arith.constant 91 : index
    %18 = vector.load %arg6[%c0_14, %c0_15, %c91] : memref<2x4x384xbf16, #tpu.memory_space<vmem>>, vector<2x4x16xbf16>
    tpu.vector_store %arg6[%c0_14, %c0_15, %c91], %17 {strides = array<i32>} : memref<2x4x384xbf16, #tpu.memory_space<vmem>>, vector<2x4x16xbf16>,
    %19 = vector.extract_strided_slice %1 {offsets = [0, 0, 5, 0], sizes = [2, 4, 1, 16], strides = [1, 1, 1, 1]} : vector<2x4x16x16xbf16> to vector<2x4x1x16xbf16>
    %20 = vector.shape_cast %19 : vector<2x4x1x16xbf16> to vector<2x4x16xbf16>
    %c0_16 = arith.constant 0 : index
    %c0_17 = arith.constant 0 : index
    %c109 = arith.constant 109 : index
    %21 = vector.load %arg6[%c0_16, %c0_17, %c109] : memref<2x4x384xbf16, #tpu.memory_space<vmem>>, vector<2x4x16xbf16>
    tpu.vector_store %arg6[%c0_16, %c0_17, %c109], %20 {strides = array<i32>} : memref<2x4x384xbf16, #tpu.memory_space<vmem>>, vector<2x4x16xbf16>,
    %22 = vector.extract_strided_slice %1 {offsets = [0, 0, 6, 0], sizes = [2, 4, 1, 16], strides = [1, 1, 1, 1]} : vector<2x4x16x16xbf16> to vector<2x4x1x16xbf16>
    %23 = vector.shape_cast %22 : vector<2x4x1x16xbf16> to vector<2x4x16xbf16>
    %c0_18 = arith.constant 0 : index
    %c0_19 = arith.constant 0 : index
    %c127 = arith.constant 127 : index
    %24 = vector.load %arg6[%c0_18, %c0_19, %c127] : memref<2x4x384xbf16, #tpu.memory_space<vmem>>, vector<2x4x16xbf16>
    tpu.vector_store %arg6[%c0_18, %c0_19, %c127], %23 {strides = array<i32>} : memref<2x4x384xbf16, #tpu.memory_space<vmem>>, vector<2x4x16xbf16>,
    %25 = vector.extract_strided_slice %1 {offsets = [0, 0, 7, 0], sizes = [2, 4, 1, 16], strides = [1, 1, 1, 1]} : vector<2x4x16x16xbf16> to vector<2x4x1x16xbf16>
    %26 = vector.shape_cast %25 : vector<2x4x1x16xbf16> to vector<2x4x16xbf16>
    %c0_20 = arith.constant 0 : index
    %c0_21 = arith.constant 0 : index
    %c145 = arith.constant 145 : index
    %27 = vector.load %arg6[%c0_20, %c0_21, %c145] : memref<2x4x384xbf16, #tpu.memory_space<vmem>>, vector<2x4x16xbf16>
    tpu.vector_store %arg6[%c0_20, %c0_21, %c145], %26 {strides = array<i32>} : memref<2x4x384xbf16, #tpu.memory_space<vmem>>, vector<2x4x16xbf16>,
    %28 = vector.extract_strided_slice %1 {offsets = [0, 0, 8, 0], sizes = [2, 4, 1, 16], strides = [1, 1, 1, 1]} : vector<2x4x16x16xbf16> to vector<2x4x1x16xbf16>
    %29 = vector.shape_cast %28 : vector<2x4x1x16xbf16> to vector<2x4x16xbf16>
    %c0_22 = arith.constant 0 : index
    %c0_23 = arith.constant 0 : index
    %c163 = arith.constant 163 : index
    %30 = vector.load %arg6[%c0_22, %c0_23, %c163] : memref<2x4x384xbf16, #tpu.memory_space<vmem>>, vector<2x4x16xbf16>
    tpu.vector_store %arg6[%c0_22, %c0_23, %c163], %29 {strides = array<i32>} : memref<2x4x384xbf16, #tpu.memory_space<vmem>>, vector<2x4x16xbf16>,
    %31 = vector.extract_strided_slice %1 {offsets = [0, 0, 9, 0], sizes = [2, 4, 1, 16], strides = [1, 1, 1, 1]} : vector<2x4x16x16xbf16> to vector<2x4x1x16xbf16>
    %32 = vector.shape_cast %31 : vector<2x4x1x16xbf16> to vector<2x4x16xbf16>
    %c0_24 = arith.constant 0 : index
    %c0_25 = arith.constant 0 : index
    %c181 = arith.constant 181 : index
    %33 = vector.load %arg6[%c0_24, %c0_25, %c181] : memref<2x4x384xbf16, #tpu.memory_space<vmem>>, vector<2x4x16xbf16>
    tpu.vector_store %arg6[%c0_24, %c0_25, %c181], %32 {strides = array<i32>} : memref<2x4x384xbf16, #tpu.memory_space<vmem>>, vector<2x4x16xbf16>,
    %34 = vector.extract_strided_slice %1 {offsets = [0, 0, 10, 0], sizes = [2, 4, 1, 16], strides = [1, 1, 1, 1]} : vector<2x4x16x16xbf16> to vector<2x4x1x16xbf16>
    %35 = vector.shape_cast %34 : vector<2x4x1x16xbf16> to vector<2x4x16xbf16>
    %c0_26 = arith.constant 0 : index
    %c0_27 = arith.constant 0 : index
    %c199 = arith.constant 199 : index
    %36 = vector.load %arg6[%c0_26, %c0_27, %c199] : memref<2x4x384xbf16, #tpu.memory_space<vmem>>, vector<2x4x16xbf16>
    tpu.vector_store %arg6[%c0_26, %c0_27, %c199], %35 {strides = array<i32>} : memref<2x4x384xbf16, #tpu.memory_space<vmem>>, vector<2x4x16xbf16>,
    %37 = vector.extract_strided_slice %1 {offsets = [0, 0, 11, 0], sizes = [2, 4, 1, 16], strides = [1, 1, 1, 1]} : vector<2x4x16x16xbf16> to vector<2x4x1x16xbf16>
    %38 = vector.shape_cast %37 : vector<2x4x1x16xbf16> to vector<2x4x16xbf16>
    %c0_28 = arith.constant 0 : index
    %c0_29 = arith.constant 0 : index
    %c217 = arith.constant 217 : index
    %39 = vector.load %arg6[%c0_28, %c0_29, %c217] : memref<2x4x384xbf16, #tpu.memory_space<vmem>>, vector<2x4x16xbf16>
    tpu.vector_store %arg6[%c0_28, %c0_29, %c217], %38 {strides = array<i32>} : memref<2x4x384xbf16, #tpu.memory_space<vmem>>, vector<2x4x16xbf16>,
    %40 = vector.extract_strided_slice %1 {offsets = [0, 0, 12, 0], sizes = [2, 4, 1, 16], strides = [1, 1, 1, 1]} : vector<2x4x16x16xbf16> to vector<2x4x1x16xbf16>
    %41 = vector.shape_cast %40 : vector<2x4x1x16xbf16> to vector<2x4x16xbf16>
    %c0_30 = arith.constant 0 : index
    %c0_31 = arith.constant 0 : index
    %c235 = arith.constant 235 : index
    %42 = vector.load %arg6[%c0_30, %c0_31, %c235] : memref<2x4x384xbf16, #tpu.memory_space<vmem>>, vector<2x4x16xbf16>
    tpu.vector_store %arg6[%c0_30, %c0_31, %c235], %41 {strides = array<i32>} : memref<2x4x384xbf16, #tpu.memory_space<vmem>>, vector<2x4x16xbf16>,
    %43 = vector.extract_strided_slice %1 {offsets = [0, 0, 13, 0], sizes = [2, 4, 1, 16], strides = [1, 1, 1, 1]} : vector<2x4x16x16xbf16> to vector<2x4x1x16xbf16>
    %44 = vector.shape_cast %43 : vector<2x4x1x16xbf16> to vector<2x4x16xbf16>
    %c0_32 = arith.constant 0 : index
    %c0_33 = arith.constant 0 : index
    %c253 = arith.constant 253 : index
    %45 = vector.load %arg6[%c0_32, %c0_33, %c253] : memref<2x4x384xbf16, #tpu.memory_space<vmem>>, vector<2x4x16xbf16>
    tpu.vector_store %arg6[%c0_32, %c0_33, %c253], %44 {strides = array<i32>} : memref<2x4x384xbf16, #tpu.memory_space<vmem>>, vector<2x4x16xbf16>,
    %46 = vector.extract_strided_slice %1 {offsets = [0, 0, 14, 0], sizes = [2, 4, 1, 16], strides = [1, 1, 1, 1]} : vector<2x4x16x16xbf16> to vector<2x4x1x16xbf16>
    %47 = vector.shape_cast %46 : vector<2x4x1x16xbf16> to vector<2x4x16xbf16>
    %c0_34 = arith.constant 0 : index
    %c0_35 = arith.constant 0 : index
    %c271 = arith.constant 271 : index
    %48 = vector.load %arg6[%c0_34, %c0_35, %c271] : memref<2x4x384xbf16, #tpu.memory_space<vmem>>, vector<2x4x16xbf16>
    tpu.vector_store %arg6[%c0_34, %c0_35, %c271], %47 {strides = array<i32>} : memref<2x4x384xbf16, #tpu.memory_space<vmem>>, vector<2x4x16xbf16>,
    %49 = vector.extract_strided_slice %1 {offsets = [0, 0, 15, 0], sizes = [2, 4, 1, 16], strides = [1, 1, 1, 1]} : vector<2x4x16x16xbf16> to vector<2x4x1x16xbf16>
    %50 = vector.shape_cast %49 : vector<2x4x1x16xbf16> to vector<2x4x16xbf16>
    %c0_36 = arith.constant 0 : index
    %c0_37 = arith.constant 0 : index
    %c289 = arith.constant 289 : index
    %51 = vector.load %arg6[%c0_36, %c0_37, %c289] : memref<2x4x384xbf16, #tpu.memory_space<vmem>>, vector<2x4x16xbf16>
    tpu.vector_store %arg6[%c0_36, %c0_37, %c289], %50 {strides = array<i32>} : memref<2x4x384xbf16, #tpu.memory_space<vmem>>, vector<2x4x16xbf16>,
    %cst_38 = arith.constant 0.000000e+00 : f32
    %52 = vector.broadcast %cst_38 : f32 to vector<8x288xf32>
    %c0_39 = arith.constant 0 : index
    %c0_40 = arith.constant 0 : index
    %c0_41 = arith.constant 0 : index
    %53 = vector.load %arg1[%c0_39, %c0_40, %c0_41] : memref<9x8x4xbf16, #tpu.memory_space<vmem>>, vector<1x8x4xbf16>
    %54 = vector.shape_cast %53 : vector<1x8x4xbf16> to vector<8x4xbf16>
    %c0_42 = arith.constant 0 : index
    %c0_43 = arith.constant 0 : index
    %c0_44 = arith.constant 0 : index
    %55 = vector.load %arg6[%c0_42, %c0_43, %c0_44] : memref<2x4x384xbf16, #tpu.memory_space<vmem>>, vector<1x4x288xbf16>
    %56 = vector.shape_cast %55 : vector<1x4x288xbf16> to vector<4x288xbf16>
    %cst_45 = arith.constant dense<0.000000e+00> : vector<8x288xf32>
    %57 = tpu.matmul %54, %56, %cst_45 {dimension_numbers = #tpu.dot_dimension_numbers<[1], [0], [0], [1], [0, 0, 1, 1], [], []>} : vector<8x4xbf16>, vector<4x288xbf16>, vector<8x288xf32> -> vector<8x288xf32>
    %58 = arith.addf %52, %57 : vector<8x288xf32>
    %c1 = arith.constant 1 : index
    %c0_46 = arith.constant 0 : index
    %c0_47 = arith.constant 0 : index
    %59 = vector.load %arg1[%c1, %c0_46, %c0_47] : memref<9x8x4xbf16, #tpu.memory_space<vmem>>, vector<1x8x4xbf16>
    %60 = vector.shape_cast %59 : vector<1x8x4xbf16> to vector<8x4xbf16>
    %c0_48 = arith.constant 0 : index
    %c0_49 = arith.constant 0 : index
    %c1_50 = arith.constant 1 : index
    %61 = vector.load %arg6[%c0_48, %c0_49, %c1_50] : memref<2x4x384xbf16, #tpu.memory_space<vmem>>, vector<1x4x288xbf16>
    %62 = vector.shape_cast %61 : vector<1x4x288xbf16> to vector<4x288xbf16>
    %cst_51 = arith.constant dense<0.000000e+00> : vector<8x288xf32>
    %63 = tpu.matmul %60, %62, %cst_51 {dimension_numbers = #tpu.dot_dimension_numbers<[1], [0], [0], [1], [0, 0, 1, 1], [], []>} : vector<8x4xbf16>, vector<4x288xbf16>, vector<8x288xf32> -> vector<8x288xf32>
    %64 = arith.addf %58, %63 : vector<8x288xf32>
    %c2 = arith.constant 2 : index
    %c0_52 = arith.constant 0 : index
    %c0_53 = arith.constant 0 : index
    %65 = vector.load %arg1[%c2, %c0_52, %c0_53] : memref<9x8x4xbf16, #tpu.memory_space<vmem>>, vector<1x8x4xbf16>
    %66 = vector.shape_cast %65 : vector<1x8x4xbf16> to vector<8x4xbf16>
    %c0_54 = arith.constant 0 : index
    %c0_55 = arith.constant 0 : index
    %c2_56 = arith.constant 2 : index
    %67 = vector.load %arg6[%c0_54, %c0_55, %c2_56] : memref<2x4x384xbf16, #tpu.memory_space<vmem>>, vector<1x4x288xbf16>
    %68 = vector.shape_cast %67 : vector<1x4x288xbf16> to vector<4x288xbf16>
    %cst_57 = arith.constant dense<0.000000e+00> : vector<8x288xf32>
    %69 = tpu.matmul %66, %68, %cst_57 {dimension_numbers = #tpu.dot_dimension_numbers<[1], [0], [0], [1], [0, 0, 1, 1], [], []>} : vector<8x4xbf16>, vector<4x288xbf16>, vector<8x288xf32> -> vector<8x288xf32>
    %70 = arith.addf %64, %69 : vector<8x288xf32>
    %c3 = arith.constant 3 : index
    %c0_58 = arith.constant 0 : index
    %c0_59 = arith.constant 0 : index
    %71 = vector.load %arg1[%c3, %c0_58, %c0_59] : memref<9x8x4xbf16, #tpu.memory_space<vmem>>, vector<1x8x4xbf16>
    %72 = vector.shape_cast %71 : vector<1x8x4xbf16> to vector<8x4xbf16>
    %c0_60 = arith.constant 0 : index
    %c0_61 = arith.constant 0 : index
    %c18 = arith.constant 18 : index
    %73 = vector.load %arg6[%c0_60, %c0_61, %c18] : memref<2x4x384xbf16, #tpu.memory_space<vmem>>, vector<1x4x288xbf16>
    %74 = vector.shape_cast %73 : vector<1x4x288xbf16> to vector<4x288xbf16>
    %cst_62 = arith.constant dense<0.000000e+00> : vector<8x288xf32>
    %75 = tpu.matmul %72, %74, %cst_62 {dimension_numbers = #tpu.dot_dimension_numbers<[1], [0], [0], [1], [0, 0, 1, 1], [], []>} : vector<8x4xbf16>, vector<4x288xbf16>, vector<8x288xf32> -> vector<8x288xf32>
    %76 = arith.addf %70, %75 : vector<8x288xf32>
    %c4 = arith.constant 4 : index
    %c0_63 = arith.constant 0 : index
    %c0_64 = arith.constant 0 : index
    %77 = vector.load %arg1[%c4, %c0_63, %c0_64] : memref<9x8x4xbf16, #tpu.memory_space<vmem>>, vector<1x8x4xbf16>
    %78 = vector.shape_cast %77 : vector<1x8x4xbf16> to vector<8x4xbf16>
    %c0_65 = arith.constant 0 : index
    %c0_66 = arith.constant 0 : index
    %c19_67 = arith.constant 19 : index
    %79 = vector.load %arg6[%c0_65, %c0_66, %c19_67] : memref<2x4x384xbf16, #tpu.memory_space<vmem>>, vector<1x4x288xbf16>
    %80 = vector.shape_cast %79 : vector<1x4x288xbf16> to vector<4x288xbf16>
    %cst_68 = arith.constant dense<0.000000e+00> : vector<8x288xf32>
    %81 = tpu.matmul %78, %80, %cst_68 {dimension_numbers = #tpu.dot_dimension_numbers<[1], [0], [0], [1], [0, 0, 1, 1], [], []>} : vector<8x4xbf16>, vector<4x288xbf16>, vector<8x288xf32> -> vector<8x288xf32>
    %82 = arith.addf %76, %81 : vector<8x288xf32>
    %c5 = arith.constant 5 : index
    %c0_69 = arith.constant 0 : index
    %c0_70 = arith.constant 0 : index
    %83 = vector.load %arg1[%c5, %c0_69, %c0_70] : memref<9x8x4xbf16, #tpu.memory_space<vmem>>, vector<1x8x4xbf16>
    %84 = vector.shape_cast %83 : vector<1x8x4xbf16> to vector<8x4xbf16>
    %c0_71 = arith.constant 0 : index
    %c0_72 = arith.constant 0 : index
    %c20 = arith.constant 20 : index
    %85 = vector.load %arg6[%c0_71, %c0_72, %c20] : memref<2x4x384xbf16, #tpu.memory_space<vmem>>, vector<1x4x288xbf16>
    %86 = vector.shape_cast %85 : vector<1x4x288xbf16> to vector<4x288xbf16>
    %cst_73 = arith.constant dense<0.000000e+00> : vector<8x288xf32>
    %87 = tpu.matmul %84, %86, %cst_73 {dimension_numbers = #tpu.dot_dimension_numbers<[1], [0], [0], [1], [0, 0, 1, 1], [], []>} : vector<8x4xbf16>, vector<4x288xbf16>, vector<8x288xf32> -> vector<8x288xf32>
    %88 = arith.addf %82, %87 : vector<8x288xf32>
    %c6 = arith.constant 6 : index
    %c0_74 = arith.constant 0 : index
    %c0_75 = arith.constant 0 : index
    %89 = vector.load %arg1[%c6, %c0_74, %c0_75] : memref<9x8x4xbf16, #tpu.memory_space<vmem>>, vector<1x8x4xbf16>
    %90 = vector.shape_cast %89 : vector<1x8x4xbf16> to vector<8x4xbf16>
    %c0_76 = arith.constant 0 : index
    %c0_77 = arith.constant 0 : index
    %c36 = arith.constant 36 : index
    %91 = vector.load %arg6[%c0_76, %c0_77, %c36] : memref<2x4x384xbf16, #tpu.memory_space<vmem>>, vector<1x4x288xbf16>
    %92 = vector.shape_cast %91 : vector<1x4x288xbf16> to vector<4x288xbf16>
    %cst_78 = arith.constant dense<0.000000e+00> : vector<8x288xf32>
    %93 = tpu.matmul %90, %92, %cst_78 {dimension_numbers = #tpu.dot_dimension_numbers<[1], [0], [0], [1], [0, 0, 1, 1], [], []>} : vector<8x4xbf16>, vector<4x288xbf16>, vector<8x288xf32> -> vector<8x288xf32>
    %94 = arith.addf %88, %93 : vector<8x288xf32>
    %c7 = arith.constant 7 : index
    %c0_79 = arith.constant 0 : index
    %c0_80 = arith.constant 0 : index
    %95 = vector.load %arg1[%c7, %c0_79, %c0_80] : memref<9x8x4xbf16, #tpu.memory_space<vmem>>, vector<1x8x4xbf16>
    %96 = vector.shape_cast %95 : vector<1x8x4xbf16> to vector<8x4xbf16>
    %c0_81 = arith.constant 0 : index
    %c0_82 = arith.constant 0 : index
    %c37_83 = arith.constant 37 : index
    %97 = vector.load %arg6[%c0_81, %c0_82, %c37_83] : memref<2x4x384xbf16, #tpu.memory_space<vmem>>, vector<1x4x288xbf16>
    %98 = vector.shape_cast %97 : vector<1x4x288xbf16> to vector<4x288xbf16>
    %cst_84 = arith.constant dense<0.000000e+00> : vector<8x288xf32>
    %99 = tpu.matmul %96, %98, %cst_84 {dimension_numbers = #tpu.dot_dimension_numbers<[1], [0], [0], [1], [0, 0, 1, 1], [], []>} : vector<8x4xbf16>, vector<4x288xbf16>, vector<8x288xf32> -> vector<8x288xf32>
    %100 = arith.addf %94, %99 : vector<8x288xf32>
    %c8 = arith.constant 8 : index
    %c0_85 = arith.constant 0 : index
    %c0_86 = arith.constant 0 : index
    %101 = vector.load %arg1[%c8, %c0_85, %c0_86] : memref<9x8x4xbf16, #tpu.memory_space<vmem>>, vector<1x8x4xbf16>
    %102 = vector.shape_cast %101 : vector<1x8x4xbf16> to vector<8x4xbf16>
    %c0_87 = arith.constant 0 : index
    %c0_88 = arith.constant 0 : index
    %c38 = arith.constant 38 : index
    %103 = vector.load %arg6[%c0_87, %c0_88, %c38] : memref<2x4x384xbf16, #tpu.memory_space<vmem>>, vector<1x4x288xbf16>
    %104 = vector.shape_cast %103 : vector<1x4x288xbf16> to vector<4x288xbf16>
    %cst_89 = arith.constant dense<0.000000e+00> : vector<8x288xf32>
    %105 = tpu.matmul %102, %104, %cst_89 {dimension_numbers = #tpu.dot_dimension_numbers<[1], [0], [0], [1], [0, 0, 1, 1], [], []>} : vector<8x4xbf16>, vector<4x288xbf16>, vector<8x288xf32> -> vector<8x288xf32>
    %106 = arith.addf %100, %105 : vector<8x288xf32>
    %c0_90 = arith.constant 0 : index
    %c0_91 = arith.constant 0 : index
    %107 = vector.load %arg2[%c0_90, %c0_91] : memref<8x1xf32, #tpu.memory_space<vmem>>, vector<8x1xf32>
    %108 = vector.broadcast %107 : vector<8x1xf32> to vector<8x288xf32>
    %109 = arith.addf %106, %108 : vector<8x288xf32>
    %cst_92 = arith.constant 0.000000e+00 : f32
    %110 = vector.broadcast %cst_92 : f32 to vector<8x288xf32>
    %111 = arith.maximumf %109, %110 : vector<8x288xf32>
    %112 = arith.truncf %111 : vector<8x288xf32> to vector<8x288xbf16>
    %cst_93 = arith.constant 0.000000e+00 : f32
    %113 = vector.broadcast %cst_93 : f32 to vector<1x10xf32>
    %114 = vector.extract_strided_slice %112 {offsets = [0, 0], sizes = [1, 288], strides = [1, 1]} : vector<8x288xbf16> to vector<1x288xbf16>
    %c0_94 = arith.constant 0 : index
    %c0_95 = arith.constant 0 : index
    %c0_96 = arith.constant 0 : index
    %115 = vector.load %arg3[%c0_94, %c0_95, %c0_96] : memref<8x288x10xbf16, #tpu.memory_space<vmem>>, vector<1x288x10xbf16>
    %116 = vector.shape_cast %115 : vector<1x288x10xbf16> to vector<288x10xbf16>
    %cst_97 = arith.constant dense<0.000000e+00> : vector<1x10xf32>
    %117 = tpu.matmul %114, %116, %cst_97 {dimension_numbers = #tpu.dot_dimension_numbers<[1], [0], [0], [1], [0, 0, 1, 1], [], []>} : vector<1x288xbf16>, vector<288x10xbf16>, vector<1x10xf32> -> vector<1x10xf32>
    %118 = arith.addf %113, %117 : vector<1x10xf32>
    %119 = vector.extract_strided_slice %112 {offsets = [1, 0], sizes = [1, 288], strides = [1, 1]} : vector<8x288xbf16> to vector<1x288xbf16>
    %c1_98 = arith.constant 1 : index
    %c0_99 = arith.constant 0 : index
    %c0_100 = arith.constant 0 : index
    %120 = vector.load %arg3[%c1_98, %c0_99, %c0_100] : memref<8x288x10xbf16, #tpu.memory_space<vmem>>, vector<1x288x10xbf16>
    %121 = vector.shape_cast %120 : vector<1x288x10xbf16> to vector<288x10xbf16>
    %cst_101 = arith.constant dense<0.000000e+00> : vector<1x10xf32>
    %122 = tpu.matmul %119, %121, %cst_101 {dimension_numbers = #tpu.dot_dimension_numbers<[1], [0], [0], [1], [0, 0, 1, 1], [], []>} : vector<1x288xbf16>, vector<288x10xbf16>, vector<1x10xf32> -> vector<1x10xf32>
    %123 = arith.addf %118, %122 : vector<1x10xf32>
    %124 = vector.extract_strided_slice %112 {offsets = [2, 0], sizes = [1, 288], strides = [1, 1]} : vector<8x288xbf16> to vector<1x288xbf16>
    %c2_102 = arith.constant 2 : index
    %c0_103 = arith.constant 0 : index
    %c0_104 = arith.constant 0 : index
    %125 = vector.load %arg3[%c2_102, %c0_103, %c0_104] : memref<8x288x10xbf16, #tpu.memory_space<vmem>>, vector<1x288x10xbf16>
    %126 = vector.shape_cast %125 : vector<1x288x10xbf16> to vector<288x10xbf16>
    %cst_105 = arith.constant dense<0.000000e+00> : vector<1x10xf32>
    %127 = tpu.matmul %124, %126, %cst_105 {dimension_numbers = #tpu.dot_dimension_numbers<[1], [0], [0], [1], [0, 0, 1, 1], [], []>} : vector<1x288xbf16>, vector<288x10xbf16>, vector<1x10xf32> -> vector<1x10xf32>
    %128 = arith.addf %123, %127 : vector<1x10xf32>
    %129 = vector.extract_strided_slice %112 {offsets = [3, 0], sizes = [1, 288], strides = [1, 1]} : vector<8x288xbf16> to vector<1x288xbf16>
    %c3_106 = arith.constant 3 : index
    %c0_107 = arith.constant 0 : index
    %c0_108 = arith.constant 0 : index
    %130 = vector.load %arg3[%c3_106, %c0_107, %c0_108] : memref<8x288x10xbf16, #tpu.memory_space<vmem>>, vector<1x288x10xbf16>
    %131 = vector.shape_cast %130 : vector<1x288x10xbf16> to vector<288x10xbf16>
    %cst_109 = arith.constant dense<0.000000e+00> : vector<1x10xf32>
    %132 = tpu.matmul %129, %131, %cst_109 {dimension_numbers = #tpu.dot_dimension_numbers<[1], [0], [0], [1], [0, 0, 1, 1], [], []>} : vector<1x288xbf16>, vector<288x10xbf16>, vector<1x10xf32> -> vector<1x10xf32>
    %133 = arith.addf %128, %132 : vector<1x10xf32>
    %134 = vector.extract_strided_slice %112 {offsets = [4, 0], sizes = [1, 288], strides = [1, 1]} : vector<8x288xbf16> to vector<1x288xbf16>
    %c4_110 = arith.constant 4 : index
    %c0_111 = arith.constant 0 : index
    %c0_112 = arith.constant 0 : index
    %135 = vector.load %arg3[%c4_110, %c0_111, %c0_112] : memref<8x288x10xbf16, #tpu.memory_space<vmem>>, vector<1x288x10xbf16>
    %136 = vector.shape_cast %135 : vector<1x288x10xbf16> to vector<288x10xbf16>
    %cst_113 = arith.constant dense<0.000000e+00> : vector<1x10xf32>
    %137 = tpu.matmul %134, %136, %cst_113 {dimension_numbers = #tpu.dot_dimension_numbers<[1], [0], [0], [1], [0, 0, 1, 1], [], []>} : vector<1x288xbf16>, vector<288x10xbf16>, vector<1x10xf32> -> vector<1x10xf32>
    %138 = arith.addf %133, %137 : vector<1x10xf32>
    %139 = vector.extract_strided_slice %112 {offsets = [5, 0], sizes = [1, 288], strides = [1, 1]} : vector<8x288xbf16> to vector<1x288xbf16>
    %c5_114 = arith.constant 5 : index
    %c0_115 = arith.constant 0 : index
    %c0_116 = arith.constant 0 : index
    %140 = vector.load %arg3[%c5_114, %c0_115, %c0_116] : memref<8x288x10xbf16, #tpu.memory_space<vmem>>, vector<1x288x10xbf16>
    %141 = vector.shape_cast %140 : vector<1x288x10xbf16> to vector<288x10xbf16>
    %cst_117 = arith.constant dense<0.000000e+00> : vector<1x10xf32>
    %142 = tpu.matmul %139, %141, %cst_117 {dimension_numbers = #tpu.dot_dimension_numbers<[1], [0], [0], [1], [0, 0, 1, 1], [], []>} : vector<1x288xbf16>, vector<288x10xbf16>, vector<1x10xf32> -> vector<1x10xf32>
    %143 = arith.addf %138, %142 : vector<1x10xf32>
    %144 = vector.extract_strided_slice %112 {offsets = [6, 0], sizes = [1, 288], strides = [1, 1]} : vector<8x288xbf16> to vector<1x288xbf16>
    %c6_118 = arith.constant 6 : index
    %c0_119 = arith.constant 0 : index
    %c0_120 = arith.constant 0 : index
    %145 = vector.load %arg3[%c6_118, %c0_119, %c0_120] : memref<8x288x10xbf16, #tpu.memory_space<vmem>>, vector<1x288x10xbf16>
    %146 = vector.shape_cast %145 : vector<1x288x10xbf16> to vector<288x10xbf16>
    %cst_121 = arith.constant dense<0.000000e+00> : vector<1x10xf32>
    %147 = tpu.matmul %144, %146, %cst_121 {dimension_numbers = #tpu.dot_dimension_numbers<[1], [0], [0], [1], [0, 0, 1, 1], [], []>} : vector<1x288xbf16>, vector<288x10xbf16>, vector<1x10xf32> -> vector<1x10xf32>
    %148 = arith.addf %143, %147 : vector<1x10xf32>
    %149 = vector.extract_strided_slice %112 {offsets = [7, 0], sizes = [1, 288], strides = [1, 1]} : vector<8x288xbf16> to vector<1x288xbf16>
    %c7_122 = arith.constant 7 : index
    %c0_123 = arith.constant 0 : index
    %c0_124 = arith.constant 0 : index
    %150 = vector.load %arg3[%c7_122, %c0_123, %c0_124] : memref<8x288x10xbf16, #tpu.memory_space<vmem>>, vector<1x288x10xbf16>
    %151 = vector.shape_cast %150 : vector<1x288x10xbf16> to vector<288x10xbf16>
    %cst_125 = arith.constant dense<0.000000e+00> : vector<1x10xf32>
    %152 = tpu.matmul %149, %151, %cst_125 {dimension_numbers = #tpu.dot_dimension_numbers<[1], [0], [0], [1], [0, 0, 1, 1], [], []>} : vector<1x288xbf16>, vector<288x10xbf16>, vector<1x10xf32> -> vector<1x10xf32>
    %153 = arith.addf %148, %152 : vector<1x10xf32>
    %c0_126 = arith.constant 0 : index
    %c0_127 = arith.constant 0 : index
    %154 = vector.load %arg4[%c0_126, %c0_127] : memref<1x10xf32, #tpu.memory_space<vmem>>, vector<1x10xf32>
    %155 = arith.addf %153, %154 : vector<1x10xf32>
    %c0_128 = arith.constant 0 : index
    %c0_129 = arith.constant 0 : index
    %156 = vector.load %arg5[%c0_128, %c0_129] : memref<2x10xf32, #tpu.memory_space<vmem>>, vector<1x10xf32>
    tpu.vector_store %arg5[%c0_128, %c0_129], %155 {strides = array<i32>} : memref<2x10xf32, #tpu.memory_space<vmem>>, vector<1x10xf32>,
    %cst_130 = arith.constant 0.000000e+00 : f32
    %157 = vector.broadcast %cst_130 : f32 to vector<8x288xf32>
    %c0_131 = arith.constant 0 : index
    %c0_132 = arith.constant 0 : index
    %c0_133 = arith.constant 0 : index
    %158 = vector.load %arg1[%c0_131, %c0_132, %c0_133] : memref<9x8x4xbf16, #tpu.memory_space<vmem>>, vector<1x8x4xbf16>
    %159 = vector.shape_cast %158 : vector<1x8x4xbf16> to vector<8x4xbf16>
    %c1_134 = arith.constant 1 : index
    %c0_135 = arith.constant 0 : index
    %c0_136 = arith.constant 0 : index
    %160 = vector.load %arg6[%c1_134, %c0_135, %c0_136] : memref<2x4x384xbf16, #tpu.memory_space<vmem>>, vector<1x4x288xbf16>
    %161 = vector.shape_cast %160 : vector<1x4x288xbf16> to vector<4x288xbf16>
    %cst_137 = arith.constant dense<0.000000e+00> : vector<8x288xf32>
    %162 = tpu.matmul %159, %161, %cst_137 {dimension_numbers = #tpu.dot_dimension_numbers<[1], [0], [0], [1], [0, 0, 1, 1], [], []>} : vector<8x4xbf16>, vector<4x288xbf16>, vector<8x288xf32> -> vector<8x288xf32>
    %163 = arith.addf %157, %162 : vector<8x288xf32>
    %c1_138 = arith.constant 1 : index
    %c0_139 = arith.constant 0 : index
    %c0_140 = arith.constant 0 : index
    %164 = vector.load %arg1[%c1_138, %c0_139, %c0_140] : memref<9x8x4xbf16, #tpu.memory_space<vmem>>, vector<1x8x4xbf16>
    %165 = vector.shape_cast %164 : vector<1x8x4xbf16> to vector<8x4xbf16>
    %c1_141 = arith.constant 1 : index
    %c0_142 = arith.constant 0 : index
    %c1_143 = arith.constant 1 : index
    %166 = vector.load %arg6[%c1_141, %c0_142, %c1_143] : memref<2x4x384xbf16, #tpu.memory_space<vmem>>, vector<1x4x288xbf16>
    %167 = vector.shape_cast %166 : vector<1x4x288xbf16> to vector<4x288xbf16>
    %cst_144 = arith.constant dense<0.000000e+00> : vector<8x288xf32>
    %168 = tpu.matmul %165, %167, %cst_144 {dimension_numbers = #tpu.dot_dimension_numbers<[1], [0], [0], [1], [0, 0, 1, 1], [], []>} : vector<8x4xbf16>, vector<4x288xbf16>, vector<8x288xf32> -> vector<8x288xf32>
    %169 = arith.addf %163, %168 : vector<8x288xf32>
    %c2_145 = arith.constant 2 : index
    %c0_146 = arith.constant 0 : index
    %c0_147 = arith.constant 0 : index
    %170 = vector.load %arg1[%c2_145, %c0_146, %c0_147] : memref<9x8x4xbf16, #tpu.memory_space<vmem>>, vector<1x8x4xbf16>
    %171 = vector.shape_cast %170 : vector<1x8x4xbf16> to vector<8x4xbf16>
    %c1_148 = arith.constant 1 : index
    %c0_149 = arith.constant 0 : index
    %c2_150 = arith.constant 2 : index
    %172 = vector.load %arg6[%c1_148, %c0_149, %c2_150] : memref<2x4x384xbf16, #tpu.memory_space<vmem>>, vector<1x4x288xbf16>
    %173 = vector.shape_cast %172 : vector<1x4x288xbf16> to vector<4x288xbf16>
    %cst_151 = arith.constant dense<0.000000e+00> : vector<8x288xf32>
    %174 = tpu.matmul %171, %173, %cst_151 {dimension_numbers = #tpu.dot_dimension_numbers<[1], [0], [0], [1], [0, 0, 1, 1], [], []>} : vector<8x4xbf16>, vector<4x288xbf16>, vector<8x288xf32> -> vector<8x288xf32>
    %175 = arith.addf %169, %174 : vector<8x288xf32>
    %c3_152 = arith.constant 3 : index
    %c0_153 = arith.constant 0 : index
    %c0_154 = arith.constant 0 : index
    %176 = vector.load %arg1[%c3_152, %c0_153, %c0_154] : memref<9x8x4xbf16, #tpu.memory_space<vmem>>, vector<1x8x4xbf16>
    %177 = vector.shape_cast %176 : vector<1x8x4xbf16> to vector<8x4xbf16>
    %c1_155 = arith.constant 1 : index
    %c0_156 = arith.constant 0 : index
    %c18_157 = arith.constant 18 : index
    %178 = vector.load %arg6[%c1_155, %c0_156, %c18_157] : memref<2x4x384xbf16, #tpu.memory_space<vmem>>, vector<1x4x288xbf16>
    %179 = vector.shape_cast %178 : vector<1x4x288xbf16> to vector<4x288xbf16>
    %cst_158 = arith.constant dense<0.000000e+00> : vector<8x288xf32>
    %180 = tpu.matmul %177, %179, %cst_158 {dimension_numbers = #tpu.dot_dimension_numbers<[1], [0], [0], [1], [0, 0, 1, 1], [], []>} : vector<8x4xbf16>, vector<4x288xbf16>, vector<8x288xf32> -> vector<8x288xf32>
    %181 = arith.addf %175, %180 : vector<8x288xf32>
    %c4_159 = arith.constant 4 : index
    %c0_160 = arith.constant 0 : index
    %c0_161 = arith.constant 0 : index
    %182 = vector.load %arg1[%c4_159, %c0_160, %c0_161] : memref<9x8x4xbf16, #tpu.memory_space<vmem>>, vector<1x8x4xbf16>
    %183 = vector.shape_cast %182 : vector<1x8x4xbf16> to vector<8x4xbf16>
    %c1_162 = arith.constant 1 : index
    %c0_163 = arith.constant 0 : index
    %c19_164 = arith.constant 19 : index
    %184 = vector.load %arg6[%c1_162, %c0_163, %c19_164] : memref<2x4x384xbf16, #tpu.memory_space<vmem>>, vector<1x4x288xbf16>
    %185 = vector.shape_cast %184 : vector<1x4x288xbf16> to vector<4x288xbf16>
    %cst_165 = arith.constant dense<0.000000e+00> : vector<8x288xf32>
    %186 = tpu.matmul %183, %185, %cst_165 {dimension_numbers = #tpu.dot_dimension_numbers<[1], [0], [0], [1], [0, 0, 1, 1], [], []>} : vector<8x4xbf16>, vector<4x288xbf16>, vector<8x288xf32> -> vector<8x288xf32>
    %187 = arith.addf %181, %186 : vector<8x288xf32>
    %c5_166 = arith.constant 5 : index
    %c0_167 = arith.constant 0 : index
    %c0_168 = arith.constant 0 : index
    %188 = vector.load %arg1[%c5_166, %c0_167, %c0_168] : memref<9x8x4xbf16, #tpu.memory_space<vmem>>, vector<1x8x4xbf16>
    %189 = vector.shape_cast %188 : vector<1x8x4xbf16> to vector<8x4xbf16>
    %c1_169 = arith.constant 1 : index
    %c0_170 = arith.constant 0 : index
    %c20_171 = arith.constant 20 : index
    %190 = vector.load %arg6[%c1_169, %c0_170, %c20_171] : memref<2x4x384xbf16, #tpu.memory_space<vmem>>, vector<1x4x288xbf16>
    %191 = vector.shape_cast %190 : vector<1x4x288xbf16> to vector<4x288xbf16>
    %cst_172 = arith.constant dense<0.000000e+00> : vector<8x288xf32>
    %192 = tpu.matmul %189, %191, %cst_172 {dimension_numbers = #tpu.dot_dimension_numbers<[1], [0], [0], [1], [0, 0, 1, 1], [], []>} : vector<8x4xbf16>, vector<4x288xbf16>, vector<8x288xf32> -> vector<8x288xf32>
    %193 = arith.addf %187, %192 : vector<8x288xf32>
    %c6_173 = arith.constant 6 : index
    %c0_174 = arith.constant 0 : index
    %c0_175 = arith.constant 0 : index
    %194 = vector.load %arg1[%c6_173, %c0_174, %c0_175] : memref<9x8x4xbf16, #tpu.memory_space<vmem>>, vector<1x8x4xbf16>
    %195 = vector.shape_cast %194 : vector<1x8x4xbf16> to vector<8x4xbf16>
    %c1_176 = arith.constant 1 : index
    %c0_177 = arith.constant 0 : index
    %c36_178 = arith.constant 36 : index
    %196 = vector.load %arg6[%c1_176, %c0_177, %c36_178] : memref<2x4x384xbf16, #tpu.memory_space<vmem>>, vector<1x4x288xbf16>
    %197 = vector.shape_cast %196 : vector<1x4x288xbf16> to vector<4x288xbf16>
    %cst_179 = arith.constant dense<0.000000e+00> : vector<8x288xf32>
    %198 = tpu.matmul %195, %197, %cst_179 {dimension_numbers = #tpu.dot_dimension_numbers<[1], [0], [0], [1], [0, 0, 1, 1], [], []>} : vector<8x4xbf16>, vector<4x288xbf16>, vector<8x288xf32> -> vector<8x288xf32>
    %199 = arith.addf %193, %198 : vector<8x288xf32>
    %c7_180 = arith.constant 7 : index
    %c0_181 = arith.constant 0 : index
    %c0_182 = arith.constant 0 : index
    %200 = vector.load %arg1[%c7_180, %c0_181, %c0_182] : memref<9x8x4xbf16, #tpu.memory_space<vmem>>, vector<1x8x4xbf16>
    %201 = vector.shape_cast %200 : vector<1x8x4xbf16> to vector<8x4xbf16>
    %c1_183 = arith.constant 1 : index
    %c0_184 = arith.constant 0 : index
    %c37_185 = arith.constant 37 : index
    %202 = vector.load %arg6[%c1_183, %c0_184, %c37_185] : memref<2x4x384xbf16, #tpu.memory_space<vmem>>, vector<1x4x288xbf16>
    %203 = vector.shape_cast %202 : vector<1x4x288xbf16> to vector<4x288xbf16>
    %cst_186 = arith.constant dense<0.000000e+00> : vector<8x288xf32>
    %204 = tpu.matmul %201, %203, %cst_186 {dimension_numbers = #tpu.dot_dimension_numbers<[1], [0], [0], [1], [0, 0, 1, 1], [], []>} : vector<8x4xbf16>, vector<4x288xbf16>, vector<8x288xf32> -> vector<8x288xf32>
    %205 = arith.addf %199, %204 : vector<8x288xf32>
    %c8_187 = arith.constant 8 : index
    %c0_188 = arith.constant 0 : index
    %c0_189 = arith.constant 0 : index
    %206 = vector.load %arg1[%c8_187, %c0_188, %c0_189] : memref<9x8x4xbf16, #tpu.memory_space<vmem>>, vector<1x8x4xbf16>
    %207 = vector.shape_cast %206 : vector<1x8x4xbf16> to vector<8x4xbf16>
    %c1_190 = arith.constant 1 : index
    %c0_191 = arith.constant 0 : index
    %c38_192 = arith.constant 38 : index
    %208 = vector.load %arg6[%c1_190, %c0_191, %c38_192] : memref<2x4x384xbf16, #tpu.memory_space<vmem>>, vector<1x4x288xbf16>
    %209 = vector.shape_cast %208 : vector<1x4x288xbf16> to vector<4x288xbf16>
    %cst_193 = arith.constant dense<0.000000e+00> : vector<8x288xf32>
    %210 = tpu.matmul %207, %209, %cst_193 {dimension_numbers = #tpu.dot_dimension_numbers<[1], [0], [0], [1], [0, 0, 1, 1], [], []>} : vector<8x4xbf16>, vector<4x288xbf16>, vector<8x288xf32> -> vector<8x288xf32>
    %211 = arith.addf %205, %210 : vector<8x288xf32>
    %c0_194 = arith.constant 0 : index
    %c0_195 = arith.constant 0 : index
    %212 = vector.load %arg2[%c0_194, %c0_195] : memref<8x1xf32, #tpu.memory_space<vmem>>, vector<8x1xf32>
    %213 = vector.broadcast %212 : vector<8x1xf32> to vector<8x288xf32>
    %214 = arith.addf %211, %213 : vector<8x288xf32>
    %cst_196 = arith.constant 0.000000e+00 : f32
    %215 = vector.broadcast %cst_196 : f32 to vector<8x288xf32>
    %216 = arith.maximumf %214, %215 : vector<8x288xf32>
    %217 = arith.truncf %216 : vector<8x288xf32> to vector<8x288xbf16>
    %cst_197 = arith.constant 0.000000e+00 : f32
    %218 = vector.broadcast %cst_197 : f32 to vector<1x10xf32>
    %219 = vector.extract_strided_slice %217 {offsets = [0, 0], sizes = [1, 288], strides = [1, 1]} : vector<8x288xbf16> to vector<1x288xbf16>
    %c0_198 = arith.constant 0 : index
    %c0_199 = arith.constant 0 : index
    %c0_200 = arith.constant 0 : index
    %220 = vector.load %arg3[%c0_198, %c0_199, %c0_200] : memref<8x288x10xbf16, #tpu.memory_space<vmem>>, vector<1x288x10xbf16>
    %221 = vector.shape_cast %220 : vector<1x288x10xbf16> to vector<288x10xbf16>
    %cst_201 = arith.constant dense<0.000000e+00> : vector<1x10xf32>
    %222 = tpu.matmul %219, %221, %cst_201 {dimension_numbers = #tpu.dot_dimension_numbers<[1], [0], [0], [1], [0, 0, 1, 1], [], []>} : vector<1x288xbf16>, vector<288x10xbf16>, vector<1x10xf32> -> vector<1x10xf32>
    %223 = arith.addf %218, %222 : vector<1x10xf32>
    %224 = vector.extract_strided_slice %217 {offsets = [1, 0], sizes = [1, 288], strides = [1, 1]} : vector<8x288xbf16> to vector<1x288xbf16>
    %c1_202 = arith.constant 1 : index
    %c0_203 = arith.constant 0 : index
    %c0_204 = arith.constant 0 : index
    %225 = vector.load %arg3[%c1_202, %c0_203, %c0_204] : memref<8x288x10xbf16, #tpu.memory_space<vmem>>, vector<1x288x10xbf16>
    %226 = vector.shape_cast %225 : vector<1x288x10xbf16> to vector<288x10xbf16>
    %cst_205 = arith.constant dense<0.000000e+00> : vector<1x10xf32>
    %227 = tpu.matmul %224, %226, %cst_205 {dimension_numbers = #tpu.dot_dimension_numbers<[1], [0], [0], [1], [0, 0, 1, 1], [], []>} : vector<1x288xbf16>, vector<288x10xbf16>, vector<1x10xf32> -> vector<1x10xf32>
    %228 = arith.addf %223, %227 : vector<1x10xf32>
    %229 = vector.extract_strided_slice %217 {offsets = [2, 0], sizes = [1, 288], strides = [1, 1]} : vector<8x288xbf16> to vector<1x288xbf16>
    %c2_206 = arith.constant 2 : index
    %c0_207 = arith.constant 0 : index
    %c0_208 = arith.constant 0 : index
    %230 = vector.load %arg3[%c2_206, %c0_207, %c0_208] : memref<8x288x10xbf16, #tpu.memory_space<vmem>>, vector<1x288x10xbf16>
    %231 = vector.shape_cast %230 : vector<1x288x10xbf16> to vector<288x10xbf16>
    %cst_209 = arith.constant dense<0.000000e+00> : vector<1x10xf32>
    %232 = tpu.matmul %229, %231, %cst_209 {dimension_numbers = #tpu.dot_dimension_numbers<[1], [0], [0], [1], [0, 0, 1, 1], [], []>} : vector<1x288xbf16>, vector<288x10xbf16>, vector<1x10xf32> -> vector<1x10xf32>
    %233 = arith.addf %228, %232 : vector<1x10xf32>
    %234 = vector.extract_strided_slice %217 {offsets = [3, 0], sizes = [1, 288], strides = [1, 1]} : vector<8x288xbf16> to vector<1x288xbf16>
    %c3_210 = arith.constant 3 : index
    %c0_211 = arith.constant 0 : index
    %c0_212 = arith.constant 0 : index
    %235 = vector.load %arg3[%c3_210, %c0_211, %c0_212] : memref<8x288x10xbf16, #tpu.memory_space<vmem>>, vector<1x288x10xbf16>
    %236 = vector.shape_cast %235 : vector<1x288x10xbf16> to vector<288x10xbf16>
    %cst_213 = arith.constant dense<0.000000e+00> : vector<1x10xf32>
    %237 = tpu.matmul %234, %236, %cst_213 {dimension_numbers = #tpu.dot_dimension_numbers<[1], [0], [0], [1], [0, 0, 1, 1], [], []>} : vector<1x288xbf16>, vector<288x10xbf16>, vector<1x10xf32> -> vector<1x10xf32>
    %238 = arith.addf %233, %237 : vector<1x10xf32>
    %239 = vector.extract_strided_slice %217 {offsets = [4, 0], sizes = [1, 288], strides = [1, 1]} : vector<8x288xbf16> to vector<1x288xbf16>
    %c4_214 = arith.constant 4 : index
    %c0_215 = arith.constant 0 : index
    %c0_216 = arith.constant 0 : index
    %240 = vector.load %arg3[%c4_214, %c0_215, %c0_216] : memref<8x288x10xbf16, #tpu.memory_space<vmem>>, vector<1x288x10xbf16>
    %241 = vector.shape_cast %240 : vector<1x288x10xbf16> to vector<288x10xbf16>
    %cst_217 = arith.constant dense<0.000000e+00> : vector<1x10xf32>
    %242 = tpu.matmul %239, %241, %cst_217 {dimension_numbers = #tpu.dot_dimension_numbers<[1], [0], [0], [1], [0, 0, 1, 1], [], []>} : vector<1x288xbf16>, vector<288x10xbf16>, vector<1x10xf32> -> vector<1x10xf32>
    %243 = arith.addf %238, %242 : vector<1x10xf32>
    %244 = vector.extract_strided_slice %217 {offsets = [5, 0], sizes = [1, 288], strides = [1, 1]} : vector<8x288xbf16> to vector<1x288xbf16>
    %c5_218 = arith.constant 5 : index
    %c0_219 = arith.constant 0 : index
    %c0_220 = arith.constant 0 : index
    %245 = vector.load %arg3[%c5_218, %c0_219, %c0_220] : memref<8x288x10xbf16, #tpu.memory_space<vmem>>, vector<1x288x10xbf16>
    %246 = vector.shape_cast %245 : vector<1x288x10xbf16> to vector<288x10xbf16>
    %cst_221 = arith.constant dense<0.000000e+00> : vector<1x10xf32>
    %247 = tpu.matmul %244, %246, %cst_221 {dimension_numbers = #tpu.dot_dimension_numbers<[1], [0], [0], [1], [0, 0, 1, 1], [], []>} : vector<1x288xbf16>, vector<288x10xbf16>, vector<1x10xf32> -> vector<1x10xf32>
    %248 = arith.addf %243, %247 : vector<1x10xf32>
    %249 = vector.extract_strided_slice %217 {offsets = [6, 0], sizes = [1, 288], strides = [1, 1]} : vector<8x288xbf16> to vector<1x288xbf16>
    %c6_222 = arith.constant 6 : index
    %c0_223 = arith.constant 0 : index
    %c0_224 = arith.constant 0 : index
    %250 = vector.load %arg3[%c6_222, %c0_223, %c0_224] : memref<8x288x10xbf16, #tpu.memory_space<vmem>>, vector<1x288x10xbf16>
    %251 = vector.shape_cast %250 : vector<1x288x10xbf16> to vector<288x10xbf16>
    %cst_225 = arith.constant dense<0.000000e+00> : vector<1x10xf32>
    %252 = tpu.matmul %249, %251, %cst_225 {dimension_numbers = #tpu.dot_dimension_numbers<[1], [0], [0], [1], [0, 0, 1, 1], [], []>} : vector<1x288xbf16>, vector<288x10xbf16>, vector<1x10xf32> -> vector<1x10xf32>
    %253 = arith.addf %248, %252 : vector<1x10xf32>
    %254 = vector.extract_strided_slice %217 {offsets = [7, 0], sizes = [1, 288], strides = [1, 1]} : vector<8x288xbf16> to vector<1x288xbf16>
    %c7_226 = arith.constant 7 : index
    %c0_227 = arith.constant 0 : index
    %c0_228 = arith.constant 0 : index
    %255 = vector.load %arg3[%c7_226, %c0_227, %c0_228] : memref<8x288x10xbf16, #tpu.memory_space<vmem>>, vector<1x288x10xbf16>
    %256 = vector.shape_cast %255 : vector<1x288x10xbf16> to vector<288x10xbf16>
    %cst_229 = arith.constant dense<0.000000e+00> : vector<1x10xf32>
    %257 = tpu.matmul %254, %256, %cst_229 {dimension_numbers = #tpu.dot_dimension_numbers<[1], [0], [0], [1], [0, 0, 1, 1], [], []>} : vector<1x288xbf16>, vector<288x10xbf16>, vector<1x10xf32> -> vector<1x10xf32>
    %258 = arith.addf %253, %257 : vector<1x10xf32>
    %c0_230 = arith.constant 0 : index
    %c0_231 = arith.constant 0 : index
    %259 = vector.load %arg4[%c0_230, %c0_231] : memref<1x10xf32, #tpu.memory_space<vmem>>, vector<1x10xf32>
    %260 = arith.addf %258, %259 : vector<1x10xf32>
    %c1_232 = arith.constant 1 : index
    %c0_233 = arith.constant 0 : index
    %261 = vector.load %arg5[%c1_232, %c0_233] : memref<2x10xf32, #tpu.memory_space<vmem>>, vector<1x10xf32>
    tpu.vector_store %arg5[%c1_232, %c0_233], %260 {strides = array<i32>} : memref<2x10xf32, #tpu.memory_space<vmem>>, vector<1x10xf32>,
    return
  }
}

</mosaic_0001>

<bundles_post_ra>
// kernel: tpu_custom_call.1
= control target key start
LH: loop header
LB: loop body
LE: loop exit
PB: predicated region body
PF: predicated region fallthrough
CT: control target
= control target key end

     0   :  { %v59_v3 = vlaneseq  ;;  %v8927_v7 = vmov 1983009808   ;;  %vm177_vm0 = vcmask 1041409   ;;  %vm180_vm1 = vcmask 1042434   ;;  %s8928_s9 = smov 55   ;;  %s8929_s10 = smov 19   ;;  %s11013_s0 = inlined_call_operand.vmem [shape: f32[2,4,16,16], index: 0, kind: input, shape index: {}]   ;;  %s11014_s1 = inlined_call_operand.vmem [shape: bf16[9,8,4], index: 1, kind: input, shape index: {}]   ;;  %s11015_s2 = inlined_call_operand.vmem [shape: f32[8,1], index: 2, kind: input, shape index: {}]   ;;  %s11016_s3 = inlined_call_operand.vmem [shape: bf16[8,288,10], index: 3, kind: input, shape index: {}]   ;;  %s11017_s4 = inlined_call_operand.vmem [shape: f32[1,10], index: 4, kind: input, shape index: {}]   ;;  %s11018_s5 = inlined_call_operand.hbm [shape: f32[2,10], index: 5, kind: output, shape index: {}]  }
   0x1   :  { %v22_v0 = vld [vmem:[%s11013_s0] sm:$0xff]  ;;  %v23_v1 = vld [vmem:[%s11013_s0 + $0x8] sm:$0xff]  ;;  %v24_v2 = vld [vmem:[%s11013_s0 + $0x10] sm:$0xff]  ;;  %v57_v8 = vunpack.c.l.s4 %v8927_v7  ;;  %vm183_vm2 = vcmask 1043459   ;;  %s8930_s11 = smov 73   ;;  %s8931_s12 = smov 37  }
   0x2   :  { %v25_v4 = vld [vmem:[%s11013_s0 + $0x18] sm:$0xff]  ;;  %v26_v5 = vld [vmem:[%s11013_s0 + $0x20] sm:$0xff]  ;;  %v27_v6 = vld [vmem:[%s11013_s0 + $0x28] sm:$0xff]  ;;  %v38_v11 = vpack.c.bf16 %v23_v1, %v22_v0  ;;  %v60_v12 = vshrl.u32 %v59_v3, 7  ;;  %v7014_v17 = vpack.c.bf16 %v23_v1, %v23_v1  ;;  %s8932_s13 = smov 53   ;;  %s8933_s14 = smov 35  }
   0x3   :  { %v28_v9 = vld [vmem:[%s11013_s0 + $0x30] sm:$0xff]  ;;  %v29_v10 = vld [vmem:[%s11013_s0 + $0x38] sm:$0xff]  ;;  %v39_v13 = vpack.c.bf16 %v25_v4, %v24_v2  ;;  %v40_v14 = vpack.c.bf16 %v27_v6, %v26_v5  ;;  %v58_v16 = vunpack.c.0.s8 %v57_v8  ;;  %v7016_v18 = vpack.c.bf16 %v27_v6, %v27_v6  ;;  %s8934_s15 = smov 91   ;;  %s8935_s16 = smov 127  }
   0x4   :  { %v41_v15 = vpack.c.bf16 %v29_v10, %v28_v9  ;;  %v7017_v19 = vpack.c.bf16 %v29_v10, %v29_v10  ;;  %v7015_v20 = vpack.c.bf16 %v25_v4, %v25_v4  ;;  %s8936_s17 = smov 17   ;;  %s8937_s18 = smov 109   ;;  %vm11022_vm3 = vcmask 279704  }
   0x5   :  { %v9007_v21 = vsub.s32 %v58_v16, %v60_v12  ;;  %s8938_s19 = smov 71   ;;  %s8939_s20 = smov 125   ;;  %vm11019_vm4 = vcmask 427304   ;;  %vm11021_vm5 = vcmask 574904   ;;  %vm11020_vm6 = vcmask 722504  }
   0x6   :  { %s8941_s21 = smov 89   ;;  %s8942_s22 = smov 107   ;;  %vm11023_vm7 = vcmask 870104   ;;  %vm507_vm8 = vcmask 1039360   ;;  %vm470_vm9 = vcmask 1017704   ;;  %vm512_vm10 = vcmask 1042424  }
   0x7   :  { %v9010_v22 = vrot.slane %v38_v11, %v9007_v21  ;;  %v9013_v23 = vrot.slane %v39_v13, %v9007_v21  ;;  %v76_v24 = vrot.slane %v40_v14, %v9007_v21  ;;  %v9017_v25 = vrot.slane %v41_v15, %v9007_v21  ;;  %s8943_s23 = smov 15   ;;  %s8944_s24 = smov 33  }
   0x8   :  { %v9020_v26 = vrot.slane %v7016_v18, %v9007_v21  ;;  %v9023_v27 = vrot.slane %v7014_v17, %v9007_v21  ;;  %v9026_v28 = vrot.slane %v7015_v20, %v9007_v21  ;;  %v9029_v29 = vrot.slane %v7017_v19, %v9007_v21  ;;  %s8948_s7 = smov 110   ;;  %s8949_s8 = smov 108  }
   0x9   :  { %v118_v30 = vrot.slane %v9010_v22, %v9007_v21  ;;  %v125_v31 = vrot.slane %v9013_v23, %v9007_v21  ;;  %v132_v32 = vrot.slane %v76_v24, %v9007_v21  ;;  %v139_v33 = vrot.slane %v9017_v25, %v9007_v21  ;;  %s8950_s25 = smov 92   ;;  %s8951_s26 = smov 90  }
   0xa   :  { %v328_v34 = vcombine.high %v9013_v23, %v9013_v23  ;;  %v329_v35 = vcombine.high %v76_v24, %v76_v24  ;;  %v330_v36 = vcombine.high %v9017_v25, %v9017_v25  ;;  %v624_v37 = vrot.slane %v9023_v27, %v9007_v21 }
   0xb   :  { %v168_v38 = vunpack.c.l.b16 %v118_v30  ;;  %v169_v39 = vunpack.c.l.b16 %v125_v31  ;;  %v170_v40 = vunpack.c.l.b16 %v132_v32  ;;  %v171_v41 = vunpack.c.l.b16 %v139_v33 }
   0xc   :  { %v9045_v42 = vrot.slane %v329_v35, %v9007_v21  ;;  %v631_v43 = vrot.slane %v9026_v28, %v9007_v21  ;;  %v638_v44 = vrot.slane %v9020_v26, %v9007_v21  ;;  %v645_v45 = vrot.slane %v9029_v29, %v9007_v21 }
   0xd   :  { %v253_v46 = vrot.slane %v168_v38, 2  ;;  %v254_v47 = vrot.slane %v169_v39, 1  ;;  %v257_v48 = vrot.slane %v171_v41, 7  ;;  %v176_v49 = vrot.slane %v169_v39, 7 }
   0xe   :  { %v179_v50 = vrot.slane %v170_v40, 6  ;;  %v182_v51 = vrot.slane %v171_v41, 5  ;;  %v290_v52 = vrot.slane %v168_v38, 3  ;;  %v291_v53 = vrot.slane %v169_v39, 2 }
   0xf   :  { %v255_v54 = vsel %vm177_vm0, %v254_v47, %v253_v46  ;;  %v178_v55 = vsel %vm177_vm0, %v176_v49, %v168_v38  ;;  %v293_v56 = vrot.slane %v170_v40, 1  ;;  %v216_v57 = vrot.slane %v168_v38, 1 }
  0x10   :  { %v256_v58 = vsel %vm180_vm1, %v170_v40, %v255_v54  ;;  %v181_v59 = vsel %vm180_vm1, %v179_v50, %v178_v55  ;;  %v292_v60 = vsel %vm177_vm0, %v291_v53, %v290_v52  ;;  %v218_v61 = vrot.slane %v170_v40, 7 }
  0x11   :  { %v258_v62 = vsel %vm183_vm2, %v257_v48, %v256_v58  ;;  %v184_v63 = vsel %vm183_vm2, %v182_v51, %v181_v59  ;;  %v294_v0 = vsel %vm180_vm1, %v293_v56, %v292_v60  ;;  %v217_v1 = vsel %vm177_vm0, %v169_v39, %v216_v57 }
  0x12   :  { %v265_v2 = vpack.c.b16 %v258_v62, %v258_v62  ;;  %v191_v3 = vpack.c.b16 %v184_v63, %v184_v63  ;;  %v295_v4 = vsel %vm183_vm2, %v171_v41, %v294_v0  ;;  %v219_v5 = vsel %vm180_vm1, %v218_v61, %v217_v1 }
  0x13   :  { %v302_v6 = vpack.c.b16 %v295_v4, %v295_v4  ;;  %v220_v7 = vrot.slane %v171_v41, 6  ;;  %v9064_v8 = vunpack.c.l.b16 %v624_v37  ;;  %v9066_v9 = vunpack.c.l.b16 %v631_v43 }
  0x14   :  { %v273_v10 = vrot.slane %v265_v2, %v9007_v21  ;;  %v199_v11 = vrot.slane %v191_v3, %v9007_v21  ;;  %v9070_v12 = vunpack.c.l.b16 %v638_v44  ;;  %v9072_v13 = vunpack.c.l.b16 %v645_v45 }
  0x15   :  { %v310_v14 = vrot.slane %v302_v6, %v9007_v21  ;;  %v221_v15 = vsel %vm183_vm2, %v220_v7, %v219_v5  ;;  %v719_v16 = vrot.slane %v9064_v8, 1  ;;  %v682_v17 = vrot.slane %v9066_v9, 7 }
  0x16   :  { %281 = vrot.lane.b32.xlu1 %v273_v10, %s8928_s9  ;;  %207 = vrot.lane.b32.xlu0 %v199_v11, %s8929_s10  ;;  %v228_v18 = vpack.c.b16 %v221_v15, %v221_v15  ;;  %v721_v19 = vrot.slane %v9070_v12, 7  ;;  %v723_v20 = vrot.slane %v9072_v13, 6  ;;  %v684_v24 = vrot.slane %v9070_v12, 6 }
  0x17   :  { %v720_v30 = vsel %vm177_vm0, %v9066_v9, %v719_v16  ;;  %v683_v31 = vsel %vm177_vm0, %v682_v17, %v9064_v8  ;;  %v686_v32 = vrot.slane %v9072_v13, 5  ;;  %v327_v33 = vcombine.high %v9010_v22, %v9010_v22 }
  0x18   :  { %v236_v35 = vrot.slane %v228_v18, %v9007_v21  ;;  %v722_v37 = vsel %vm180_vm1, %v721_v19, %v720_v30  ;;  %v685_v38 = vsel %vm180_vm1, %v684_v24, %v683_v31  ;;  %v348_v39 = vrot.slane %v328_v34, %v9007_v21 }
  0x19   :  { %v724_v40 = vsel %vm183_vm2, %v723_v20, %v722_v37  ;;  %v687_v41 = vsel %vm183_vm2, %v686_v32, %v685_v38  ;;  %v341_v43 = vrot.slane %v327_v33, %v9007_v21  ;;  %v362_v22 = vrot.slane %v330_v36, %v9007_v21 }
  0x1a   :  { %318 = vrot.lane.b32.xlu1 %v310_v14, %s8930_s11  ;;  %244 = vrot.lane.b32.xlu0 %v236_v35, %s8931_s12  ;;  %v731_v44 = vpack.c.b16 %v724_v40, %v724_v40  ;;  %v694_v23 = vpack.c.b16 %v687_v41, %v687_v41  ;;  %v392_v34 = vunpack.c.l.b16 %v348_v39  ;;  %v393_v45 = vunpack.c.l.b16 %v9045_v42 }
  0x1b   :  { %v391_v46 = vunpack.c.l.b16 %v341_v43  ;;  %v394_v47 = vunpack.c.l.b16 %v362_v22  ;;  %v830_v48 = vcombine.high %v9023_v27, %v9023_v27  ;;  %v831_v25 = vcombine.high %v9026_v28, %v9026_v28 }
  0x1c   :  { %v739_v36 = vrot.slane %v731_v44, %v9007_v21  ;;  %v702_v49 = vrot.slane %v694_v23, %v9007_v21  ;;  %v399_v50 = vrot.slane %v392_v34, 7  ;;  %v401_v51 = vrot.slane %v393_v45, 6 }
  0x1d   :  { %v403_v52 = vrot.slane %v394_v47, 5  ;;  %v473_v53 = vrot.slane %v391_v46, 2  ;;  %v474_v54 = vrot.slane %v392_v34, 1  ;;  %v477_v55 = vrot.slane %v394_v47, 7 }
  0x1e   :  { %747 = vrot.lane.b32.xlu1 %v739_v36, %s8932_s13  ;;  %710 = vrot.lane.b32.xlu0 %v702_v49, %s8933_s14  ;;  %v400_v27 = vsel %vm177_vm0, %v399_v50, %v391_v46  ;;  %v517_v42 = vrot.slane %v391_v46, 3  ;;  %v518_v28 = vrot.slane %v392_v34, 2  ;;  %v520_v56 = vrot.slane %v393_v45, 1 }
  0x1f   :  { %v402_v57 = vsel %vm180_vm1, %v401_v51, %v400_v27  ;;  %v475_v58 = vsel %vm177_vm0, %v474_v54, %v473_v53  ;;  %v436_v59 = vrot.slane %v391_v46, 1  ;;  %v438_v60 = vrot.slane %v393_v45, 7 }
  0x20   :  { %v404_v61 = vsel %vm183_vm2, %v403_v52, %v402_v57  ;;  %v476_v62 = vsel %vm180_vm1, %v393_v45, %v475_v58  ;;  %v519_v63 = vsel %vm177_vm0, %v518_v28, %v517_v42  ;;  %v440_v0 = vrot.slane %v394_v47, 6 }
  0x21   :  { %v411_v1 = vpack.c.b16 %v404_v61, %v404_v61  ;;  %v478_v2 = vsel %vm183_vm2, %v477_v55, %v476_v62  ;;  %v521_v3 = vsel %vm180_vm1, %v520_v56, %v519_v63  ;;  %v437_v4 = vsel %vm177_vm0, %v392_v34, %v436_v59 }
  0x22   :  { %v485_v5 = vpack.c.b16 %v478_v2, %v478_v2  ;;  %v522_v6 = vsel %vm183_vm2, %v394_v47, %v521_v3  ;;  %v439_v7 = vsel %vm180_vm1, %v438_v60, %v437_v4  ;;  %v832_v10 = vcombine.high %v9020_v26, %v9020_v26 }
  0x23   :  { %v419_v11 = vrot.slane %v411_v1, %v9007_v21  ;;  %v529_v14 = vpack.c.b16 %v522_v6, %v522_v6  ;;  %v441_v15 = vsel %vm183_vm2, %v440_v0, %v439_v7  ;;  %v833_v16 = vcombine.high %v9029_v29, %v9029_v29 }
  0x24   :  { %v493_v17 = vrot.slane %v485_v5, %v9007_v21  ;;  %v448_v18 = vpack.c.b16 %v441_v15, %v441_v15  ;;  %v844_v19 = vrot.slane %v830_v48, %v9007_v21  ;;  %v851_v20 = vrot.slane %v831_v25, %v9007_v21 }
  0x25   :  { %427 = vrot.lane.b32.xlu1 %v419_v11, %s8934_s15  ;;  %v537_v26 = vrot.slane %v529_v14, %v9007_v21  ;;  %v858_v24 = vrot.slane %v832_v10, %v9007_v21  ;;  %v865_v30 = vrot.slane %v833_v16, %v9007_v21  ;;  %v756_v31 = vrot.slane %v9064_v8, 2 }
  0x26   :  { %501 = vrot.lane.b32.xlu0 %v493_v17, %s8935_s16  ;;  %v456_v29 = vrot.slane %v448_v18, %v9007_v21  ;;  %v894_v32 = vunpack.c.l.b16 %v844_v19  ;;  %v895_v33 = vunpack.c.l.b16 %v851_v20  ;;  %v757_v35 = vrot.slane %v9066_v9, 1 }
  0x27   :  { %v896_v37 = vunpack.c.l.b16 %v858_v24  ;;  %v897_v38 = vunpack.c.l.b16 %v865_v30  ;;  %v760_v39 = vrot.slane %v9072_v13, 7  ;;  %v793_v40 = vrot.slane %v9064_v8, 3 }
  0x28   :  { %v939_v41 = vrot.slane %v894_v32, 1  ;;  %v758_v43 = vsel %vm177_vm0, %v757_v35, %v756_v31  ;;  %v794_v22 = vrot.slane %v9066_v9, 2  ;;  %v796_v44 = vrot.slane %v9070_v12, 1  ;;  %v30_v35 = vld [vmem:[%s11013_s0 + $0x40] sm:$0xff] }
  0x29   :  { %545 = vrot.lane.b32.xlu1 %v537_v26, %s8936_s17  ;;  %v941_v23 = vrot.slane %v896_v37, 7  ;;  %v943_v34 = vrot.slane %v897_v38, 6  ;;  %v759_v45 = vsel %vm180_vm1, %v9070_v12, %v758_v43  ;;  %v902_v46 = vrot.slane %v895_v33, 7 }
  0x2a   :  { %464 = vrot.lane.b32.xlu0 %v456_v29, %s8937_s18  ;;  %v940_v8 = vsel %vm177_vm0, %v895_v33, %v939_v41  ;;  %v761_v47 = vsel %vm183_vm2, %v760_v39, %v759_v45  ;;  %v795_v9 = vsel %vm177_vm0, %v794_v22, %v793_v40  ;;  %v904_v48 = vrot.slane %v896_v37, 6  ;;  %v32_v29 = vld [vmem:[%s11013_s0 + $0x50] sm:$0xff]  ;;  %v34_v40 = vld [vmem:[%s11013_s0 + $0x60] sm:$0xff]  ;;  %v9221_v41 = vld [vmem:[%s11013_s0 + $0x68] sm:$0xff] }
  0x2b   :  { %v942_v25 = vsel %vm180_vm1, %v941_v23, %v940_v8  ;;  %v768_v36 = vpack.c.b16 %v761_v47, %v761_v47  ;;  %v797_v49 = vsel %vm180_vm1, %v796_v44, %v795_v9  ;;  %v903_v50 = vsel %vm177_vm0, %v902_v46, %v894_v32  ;;  %v36_v22 = vld [vmem:[%s11013_s0 + $0x70] sm:$0xff]  ;;  %v9231_v44 = vld [vmem:[%s11013_s0 + $0x78] sm:$0xff] }
  0x2c   :  { %v944_v12 = vsel %vm183_vm2, %v943_v34, %v942_v25  ;;  %v798_v51 = vsel %vm183_vm2, %v9072_v13, %v797_v49  ;;  %v905_v52 = vsel %vm180_vm1, %v904_v48, %v903_v50  ;;  %v906_v53 = vrot.slane %v897_v38, 5 }
  0x2d   :  { %v951_v54 = vpack.c.b16 %v944_v12, %v944_v12  ;;  %v776_v55 = vrot.slane %v768_v36, %v9007_v21  ;;  %v805_v27 = vpack.c.b16 %v798_v51, %v798_v51  ;;  %v983_v42 = vrot.slane %v894_v32, 2 }
  0x2e   :  { %v907_v28 = vsel %vm183_vm2, %v906_v53, %v905_v52  ;;  %v984_v56 = vrot.slane %v895_v33, 1  ;;  %v987_v57 = vrot.slane %v897_v38, 7  ;;  %v1020_v58 = vrot.slane %v894_v32, 3  ;;  %v9200_v32 = vld [vmem:[%s11013_s0 + $0x58] sm:$0xff] }
  0x2f   :  { %v959_v59 = vrot.slane %v951_v54, %v9007_v21  ;;  %784 = vrot.lane.b32.xlu0 %v776_v55, %s8938_s19  ;;  %v813_v13 = vrot.slane %v805_v27, %v9007_v21  ;;  %v914_v60 = vpack.c.b16 %v907_v28, %v907_v28  ;;  %v1021_v61 = vrot.slane %v895_v33, 2 }
  0x30   :  { %v985_v62 = vsel %vm177_vm0, %v984_v56, %v983_v42  ;;  %v1023_v63 = vrot.slane %v896_v37, 1  ;;  %v8940_v3 = vmov 0   ;;  %vm513_vm11 = vcmask 117762  }
  0x31   :  { %967 = vrot.lane.b32.xlu1 %v959_v59, %s8939_s20  ;;  %v922_v0 = vrot.slane %v914_v60, %v9007_v21  ;;  %v986_v1 = vsel %vm180_vm1, %v896_v37, %v985_v62  ;;  %v1022_v2 = vsel %vm177_vm0, %v1021_v61, %v1020_v58  ;;  %46 = vst [vmem:[#allocation2] sm:$0x3f] %v8940_v3  ;;  %47 = vst [vmem:[#allocation2 + $0x6] sm:$0x3f] %v8940_v3  ;;  %vm11025_vm12 = vcmask 263304   ;;  %v9208_v37 = vld [vmem:[%s11013_s0 + $0x48] sm:$0xff] }
  0x32   :  { %8598 = vset.pattern.permute.xlu0 %v8940_v3  ;;  %v988_v4 = vsel %vm183_vm2, %v987_v57, %v986_v1  ;;  %v1024_v5 = vsel %vm180_vm1, %v1023_v63, %v1022_v2  ;;  %1132 = vmatprep.mubr.bf16.mxu0 %v8940_v3  ;;  %vm11024_vm13 = vcmask 410904   ;;  %vm753_vm14 = vcmask 558504   ;;  %s8947_s0 = smov 126  }
  0x33   :  { %821 = vrot.lane.b32.xlu0 %v813_v13, %s8941_s21  ;;  %v995_v6 = vpack.c.b16 %v988_v4, %v988_v4  ;;  %v1025_v7 = vsel %vm183_vm2, %v897_v38, %v1024_v5  ;;  %vm790_vm15 = vcmask 706104   ;;  %v43_v43 = vpack.c.bf16 %v9200_v32, %v32_v29 }
  0x34   :  { %v1032_v10 = vpack.c.b16 %v1025_v7, %v1025_v7  ;;  %v42_v34 = vpack.c.bf16 %v9208_v37, %v30_v35  ;;  %v44_v9 = vpack.c.bf16 %v9221_v41, %v34_v40  ;;  %v45_v25 = vpack.c.bf16 %v9231_v44, %v36_v22 }
  0x35   :  { %930 = vrot.lane.b32.xlu1 %v922_v0, %s8942_s22  ;;  %v1003_v11 = vrot.slane %v995_v6, %v9007_v21  ;;  %v97_v46 = vrot.slane %v43_v43, %v9007_v21  ;;  %v8945_v28 = vmov 0.0  }
  0x36   :  { %v1040_v14 = vrot.slane %v1032_v10, %v9007_v21  ;;  %v90_v36 = vrot.slane %v42_v34, %v9007_v21  ;;  %v104_v51 = vrot.slane %v44_v9, %v9007_v21  ;;  %v111_v53 = vrot.slane %v45_v25, %v9007_v21  ;;  %8336 = vmatprep.subr.bf16.mxu1 %v8945_v28 }
  0x37   :  { %1011 = vrot.lane.b32.xlu0 %v1003_v11, %s8943_s23  ;;  %v153_v50 = vrot.slane %v97_v46, %v9007_v21  ;;  %v332_v4 = vcombine.high %v97_v46, %v97_v46 }
  0x38   :  { %v146_v54 = vrot.slane %v90_v36, %v9007_v21  ;;  %v160_v42 = vrot.slane %v104_v51, %v9007_v21  ;;  %v167_v56 = vrot.slane %v111_v53, %v9007_v21  ;;  %v331_v2 = vcombine.high %v90_v36, %v90_v36 }
  0x39   :  { %1048 = vrot.lane.b32.xlu1 %v1040_v14, %s8944_s24  ;;  %v9256_v27 = vunpack.c.l.b16 %v153_v50  ;;  %v334_v43 = vcombine.high %v111_v53, %v111_v53 }
  0x3a   :  { %v9262_v57 = vunpack.c.l.b16 %v146_v54  ;;  %v9270_v61 = vunpack.c.l.b16 %v160_v42  ;;  %v9272_v62 = vunpack.c.l.b16 %v167_v56  ;;  %v369_v29 = vrot.slane %v331_v2, %v9007_v21 }
  0x3b   :  { %v185_v58 = vrot.slane %v9256_v27, 7  ;;  %v7019_v2 = vpack.c.bf16 %v9200_v32, %v9200_v32 }
  0x3c   :  { %v222_v59 = vrot.slane %v9262_v57, 1  ;;  %v259_v13 = vrot.slane %v9262_v57, 2  ;;  %v296_v60 = vrot.slane %v9262_v57, 3  ;;  %v187_v7 = vrot.slane %v9270_v61, 6 }
  0x3d   :  { %v224_v10 = vrot.slane %v9270_v61, 7  ;;  %v189_v11 = vrot.slane %v9272_v62, 5  ;;  %v226_v14 = vrot.slane %v9272_v62, 6 }
  0x88   :  { %v282_v15 = vpop.permute.xlu1 %281  ;;  %v208_v16 = vpop.permute.xlu0 %207 }
  0x89   :  { %214 = vst.msk [vmem:[#allocation2] sm:$0x3] %vm11022_vm3, %v208_v16  ;;  %vm827_vm3 = vcmask 853704   ;;  %v263_v16 = vrot.slane %v9272_v62, 7 }
  0x8c   :  { %v319_v17 = vpop.permute.xlu1 %318  ;;  %v245_v18 = vpop.permute.xlu0 %244 }
  0x8d   :  { %251 = vst.msk [vmem:[#allocation2] sm:$0x3] %vm11019_vm4, %v245_v18  ;;  %vm9190_vm4 = vmor %vm513_vm11, %vm512_vm10  ;;  %vm973_vm10 = vcmask 1022976   ;;  %vm936_vm11 = vcmask 1001304  }
  0x8e   :  { %288 = vst.msk [vmem:[#allocation2] sm:$0x3] %vm11021_vm5, %v282_v15  ;;  %vm979_vm5 = vcmask 101378   ;;  %v260_v15 = vrot.slane %v9256_v27, 1 }
  0x8f   :  { %325 = vst.msk [vmem:[#allocation2] sm:$0x3] %vm11020_vm6, %v319_v17  ;;  %vm978_vm6 = vcmask 1042408  }
  0x90   :  { %v748_v19 = vpop.permute.xlu1 %747  ;;  %v711_v20 = vpop.permute.xlu0 %710 }
  0x97   :  { %v428_v26 = vpop.permute.xlu1 %427 }
  0x98   :  { %434 = vst.msk [vmem:[#allocation2] sm:$0x3] %vm11023_vm7, %v428_v26  ;;  %v502_v24 = vpop.permute.xlu0 %501  ;;  %vm11031_vm7 = vcmask 246904   ;;  %v333_v26 = vcombine.high %v104_v51, %v104_v51 }
  0x99   :  { %v505_v30 = vrot.slane %v502_v24, 6 }
  0x9a   :  { %v383_v22 = vrot.slane %v333_v26, %v9007_v21 }
  0x9b   :  { %v508_v38 = vsel %vm507_vm8, %v505_v30, %v502_v24  ;;  %v546_v39 = vpop.permute.xlu1 %545  ;;  %v297_v24 = vrot.slane %v9256_v27, 2  ;;  %v299_v30 = vrot.slane %v9270_v61, 1 }
  0x9c   :  { %v465_v33 = vpop.permute.xlu0 %464  ;;  %v9318_v25 = vunpack.c.l.b16 %v383_v22 }
  0x9d   :  { %471 = vst.msk [vmem:[#allocation2] sm:$0x3] %vm470_vm9, %v465_v33  ;;  %v376_v33 = vrot.slane %v332_v4, %v9007_v21 }
  0x9e   :  { %515 = vst.msk [vmem:[#allocation2] sm:$0xf] %vm9190_vm4, %v508_v38  ;;  %v407_v54 = vrot.slane %v9318_v25, 6 }
  0x9f   :  { %552 = vst.msk [vmem:[#allocation2 + $0x2] sm:$0x3] %vm11025_vm12, %v546_v39  ;;  %vm11030_vm12 = vcmask 394504   ;;  %v9303_v34 = vunpack.c.l.b16 %v376_v33  ;;  %v9351_v33 = vrot.slane %v7019_v2, %v9007_v21 }
  0xa0   :  { %717 = vst.msk [vmem:[#allocation2 + $0x2] sm:$0x3] %vm11024_vm13, %v711_v20  ;;  %vm9239_vm13 = vmor %vm979_vm5, %vm978_vm6  ;;  %vm8946_vm5 = vmmov 0  }
  0xa1   :  { %754 = vst.msk [vmem:[#allocation2 + $0x2] sm:$0x3] %vm753_vm14, %v748_v19  ;;  %v785_v23 = vpop.permute.xlu0 %784  ;;  %8338 = vmatprep.mubr.msk.bf16.mxu1 %vm8946_vm5, %v8945_v28  ;;  %v405_v53 = vrot.slane %v9303_v34, 7 }
  0xa2   :  { %791 = vst.msk [vmem:[#allocation2 + $0x2] sm:$0x3] %vm790_vm15, %v785_v23  ;;  %v9301_v23 = vunpack.c.l.b16 %v369_v29 }
  0xa3   :  { %v968_v45 = vpop.permute.xlu1 %967 }
  0xa4   :  { %v971_v8 = vrot.slane %v968_v45, 6  ;;  %v479_v36 = vrot.slane %v9301_v23, 2 }
  0xa5   :  { %v822_v48 = vpop.permute.xlu0 %821 }
  0xa6   :  { %828 = vst.msk [vmem:[#allocation2 + $0x2] sm:$0x3] %vm827_vm3, %v822_v48  ;;  %v974_v12 = vsel %vm973_vm10, %v971_v8, %v968_v45  ;;  %v390_v48 = vrot.slane %v334_v43, %v9007_v21 }
  0xa7   :  { %v931_v49 = vpop.permute.xlu1 %930 }
  0xa8   :  { %937 = vst.msk [vmem:[#allocation2 + $0x2] sm:$0x3] %vm936_vm11, %v931_v49  ;;  %v480_v49 = vrot.slane %v9303_v34, 1 }
  0xa9   :  { %981 = vst.msk [vmem:[#allocation2 + $0x2] sm:$0xf] %vm9239_vm13, %v974_v12  ;;  %v1012_v52 = vpop.permute.xlu0 %1011 }
  0xaa   :  { %1018 = vst.msk [vmem:[#allocation2 + $0x4] sm:$0x3] %vm11031_vm7, %v1012_v52  ;;  %v9328_v52 = vunpack.c.l.b16 %v390_v48 }
  0xab   :  { %v1049_v55 = vpop.permute.xlu1 %1048 }
  0xac   :  { %1055 = vst.msk [vmem:[#allocation2 + $0x4] sm:$0x3] %vm11030_vm12, %v1049_v55  ;;  %v483_v4 = vrot.slane %v9328_v52, 7  ;;  %v409_v32 = vrot.slane %v9328_v52, 5 }
  0xb3   :  { %v1276_v63 = vld [vmem:[#allocation2] sm:$0x3f] }
  0xb4   :  { %v1058_v0 = vld [vmem:[#allocation2] sm:$0x3f]  ;;  %v1278_v5 = vcombine.high %v1276_v63, %v1276_v63  ;;  %v1285_v50 = vrot.slane %v1276_v63, %v9007_v21 }
  0xb5   :  { %v1401_v1 = vld [vmem:[#allocation2] sm:$0x3f]  ;;  %v1062_v6 = vcombine.high %v1058_v0, %v1058_v0  ;;  %v9294_v38 = vrot.slane %v1058_v0, %v9007_v21  ;;  %v7018_v0 = vpack.c.bf16 %v9208_v37, %v9208_v37  ;;  %v7020_v37 = vpack.c.bf16 %v9221_v41, %v9221_v41 }
  0xb6   :  { %v1292_v17 = vrot.slane %v1278_v5, %v9007_v21  ;;  %v1403_v19 = vcombine.high %v1401_v1, %v1401_v1  ;;  %v1526_v20 = vld [vmem:[#allocation2] sm:$0x3f]  ;;  %v1293_v42 = vcombine.high %v1285_v50, %v1285_v50  ;;  %v1410_v56 = vrot.slane %v1401_v1, %v9007_v21 }
  0xb7   :  { %v9282_v18 = vrot.slane %v1062_v6, %v9007_v21  ;;  %v9291_v35 = vld [vmem:[#allocation2] sm:$0x3f]  ;;  %v1528_v40 = vcombine.high %v1526_v20, %v1526_v20  ;;  %v9310_v8 = vcombine.high %v9294_v38, %v9294_v38  ;;  %v442_v5 = vrot.slane %v9301_v23, 1 }
  0xb8   :  { %1298 = vrot.lane.b32.xlu1 %v1292_v17, %s8947_s0  ;;  %v1417_v39 = vrot.slane %v1403_v19, %v9007_v21  ;;  %v9305_v45 = vld [vmem:[#allocation2] sm:$0x3f]  ;;  %v1653_v9 = vcombine.high %v9291_v35, %v9291_v35  ;;  %v444_v6 = vrot.slane %v9318_v25, 7  ;;  %v523_v1 = vrot.slane %v9301_v23, 3 }
  0xb9   :  { %1082 = vrot.lane.b32.xlu0 %v9282_v18, %s8935_s16  ;;  %v1542_v46 = vrot.slane %v1528_v40, %v9007_v21  ;;  %v1778_v51 = vcombine.high %v9305_v45, %v9305_v45  ;;  %v1901_v63 = vld [vmem:[#allocation2] sm:$0x3f]  ;;  %v1418_v17 = vcombine.high %v1410_v56, %v1410_v56  ;;  %v593_v29 = vrot.slane %v7018_v0, %v9007_v21 }
  0xba   :  { %v1667_v12 = vrot.slane %v1653_v9, %v9007_v21  ;;  %v1903_v19 = vcombine.high %v1901_v63, %v1901_v63  ;;  %v2026_v26 = vld [vmem:[#allocation2] sm:$0x3f]  ;;  %v1535_v40 = vrot.slane %v1526_v20, %v9007_v21  ;;  %v609_v41 = vrot.slane %v7020_v37, %v9007_v21 }
  0xbb   :  { %v1792_v55 = vrot.slane %v1778_v51, %v9007_v21  ;;  %v2028_v22 = vcombine.high %v2026_v26, %v2026_v26  ;;  %v652_v48 = vrot.slane %v593_v29, %v9007_v21  ;;  %v524_v51 = vrot.slane %v9303_v34, 2 }
  0xbc   :  { %1078 = vrot.lane.b32.xlu1 %v9294_v38, %s8935_s16  ;;  %v1917_v43 = vrot.slane %v1903_v19, %v9007_v21  ;;  %v223_v19 = vsel %vm177_vm0, %v9256_v27, %v222_v59  ;;  %v261_v37 = vsel %vm177_vm0, %v260_v15, %v259_v13 }
  0xbd   :  { %1423 = vrot.lane.b32.xlu0 %v1417_v39, %s8948_s7  ;;  %v7021_v39 = vpack.c.bf16 %v9231_v44, %v9231_v44  ;;  %v659_v44 = vrot.slane %v9351_v33, %v9007_v21  ;;  %v2042_v20 = vrot.slane %v2028_v22, %v9007_v21  ;;  %v836_v22 = vcombine.high %v609_v41, %v609_v41 }
  0xbf   :  { %v9362_v9 = vrot.slane %v7021_v39, %v9007_v21  ;;  %v9383_v2 = vunpack.c.l.b16 %v659_v44  ;;  %v1910_v44 = vrot.slane %v1901_v63, %v9007_v21 }
  0xc0   :  { %1548 = vrot.lane.b32.xlu1 %v1542_v46, %s8937_s18  ;;  %v446_v46 = vrot.slane %v9328_v52, 6 }
  0xc1   :  { %1080 = vrot.lane.b32.xlu0 %v9310_v8, %s8935_s16  ;;  %v673_v0 = vrot.slane %v9362_v9, %v9007_v21  ;;  %v688_v59 = vrot.slane %v9383_v2, 7 }
  0xc4   :  { %1294 = vrot.lane.b32.xlu1 %v1285_v50, %s8947_s0  ;;  %v1543_v50 = vcombine.high %v1535_v40, %v1535_v40 }
  0xc5   :  { %1673 = vrot.lane.b32.xlu0 %v1667_v12, %s8949_s8  ;;  %v1660_v12 = vrot.slane %v9291_v35, %v9007_v21  ;;  %v9381_v35 = vunpack.c.l.b16 %v652_v48 }
  0xc7   :  { %v725_v48 = vrot.slane %v9381_v35, 1  ;;  %v762_v13 = vrot.slane %v9381_v35, 2 }
  0xc8   :  { %1798 = vrot.lane.b32.xlu1 %v1792_v55, %s8950_s25  ;;  %v186_v55 = vsel %vm177_vm0, %v185_v58, %v9262_v57  ;;  %v1785_v58 = vrot.slane %v9305_v45, %v9007_v21  ;;  %v9403_v45 = vunpack.c.l.b16 %v673_v0  ;;  %v1918_v0 = vcombine.high %v1910_v44, %v1910_v44 }
  0xc9   :  { %1296 = vrot.lane.b32.xlu0 %v1293_v42, %s8947_s0  ;;  %v666_v42 = vrot.slane %v609_v41, %v9007_v21  ;;  %v188_v39 = vsel %vm180_vm1, %v187_v7, %v186_v55  ;;  %v225_v7 = vsel %vm180_vm1, %v224_v10, %v223_v19  ;;  %v298_v10 = vsel %vm177_vm0, %v297_v24, %v296_v60 }
  0xca   :  { %v1793_v15 = vcombine.high %v1785_v58, %v1785_v58  ;;  %v190_v41 = vsel %vm183_vm2, %v189_v11, %v188_v39  ;;  %v692_v63 = vrot.slane %v9403_v45, 5  ;;  %v763_v11 = vrot.slane %v9383_v2, 1 }
  0xcb   :  { %v886_v55 = vrot.slane %v836_v22, %v9007_v21  ;;  %v227_v27 = vsel %vm183_vm2, %v226_v14, %v225_v7  ;;  %v192_v60 = vpack.c.b16 %v190_v41, %v190_v41  ;;  %v300_v24 = vsel %vm180_vm1, %v299_v30, %v298_v10  ;;  %v9473_v22 = vld [vmem:[%s11015_s2] sm:$0xff] }
  0xcc   :  { %1421 = vrot.lane.b32.xlu1 %v1418_v17, %s8948_s7  ;;  %v1668_v17 = vcombine.high %v1660_v12, %v1660_v12  ;;  %v229_v30 = vpack.c.b16 %v227_v27, %v227_v27 }
  0xcd   :  { %1419 = vrot.lane.b32.xlu0 %v1410_v56, %s8948_s7  ;;  %v526_v56 = vrot.slane %v9318_v25, 1 }
  0xd0   :  { %1544 = vrot.lane.b32.xlu1 %v1535_v40, %s8937_s18  ;;  %v9399_v40 = vunpack.c.l.b16 %v666_v42  ;;  %v481_v42 = vsel %vm177_vm0, %v480_v49, %v479_v36  ;;  %v406_v36 = vsel %vm177_vm0, %v405_v53, %v9301_v23  ;;  %v443_v53 = vsel %vm177_vm0, %v9303_v34, %v442_v5 }
  0xd1   :  { %1923 = vrot.lane.b32.xlu0 %v1917_v43, %s8934_s15  ;;  %v834_v43 = vcombine.high %v593_v29, %v593_v29  ;;  %v262_v29 = vsel %vm180_vm1, %v9270_v61, %v261_v37  ;;  %v482_v14 = vsel %vm180_vm1, %v9318_v25, %v481_v42  ;;  %v766_v61 = vrot.slane %v9403_v45, 7 }
  0xd2   :  { %v264_v57 = vsel %vm183_vm2, %v263_v16, %v262_v29  ;;  %v729_v16 = vrot.slane %v9403_v45, 6  ;;  %v301_v37 = vsel %vm183_vm2, %v9272_v62, %v300_v24  ;;  %v408_v39 = vsel %vm180_vm1, %v407_v54, %v406_v36 }
  0xd3   :  { %v484_v5 = vsel %vm183_vm2, %v483_v4, %v482_v14  ;;  %v206_v54 = vrot.slane %v192_v60, %v9007_v21  ;;  %v800_v4 = vrot.slane %v9383_v2, 2  ;;  %v303_v29 = vpack.c.b16 %v301_v37, %v301_v37 }
  0xd4   :  { %2048 = vrot.lane.b32.xlu1 %v2042_v20, %s8951_s26  ;;  %v690_v20 = vrot.slane %v9399_v40, 6  ;;  %v486_v41 = vpack.c.b16 %v484_v5, %v484_v5  ;;  %v689_v23 = vsel %vm177_vm0, %v688_v59, %v9381_v35 }
  0xd5   :  { %1546 = vrot.lane.b32.xlu0 %v1543_v50, %s8937_s18  ;;  %v727_v50 = vrot.slane %v9399_v40, 7 }
  0xd6   :  { %v500_v42 = vrot.slane %v486_v41, %v9007_v21 }
  0xd8   :  { %1671 = vrot.lane.b32.xlu1 %v1668_v17, %s8949_s8  ;;  %v2035_v17 = vrot.slane %v2026_v26, %v9007_v21  ;;  %v9457_v26 = vunpack.c.l.b16 %v886_v55 }
  0xd9   :  { %1669 = vrot.lane.b32.xlu0 %v1660_v12, %s8949_s8  ;;  %v872_v12 = vrot.slane %v834_v43, %v9007_v21  ;;  %v835_v43 = vcombine.high %v9351_v33, %v9351_v33  ;;  %v445_v33 = vsel %vm180_vm1, %v444_v6, %v443_v53  ;;  %v243_v6 = vrot.slane %v229_v30, %v9007_v21 }
  0xda   :  { %v2043_v19 = vcombine.high %v2035_v17, %v2035_v17  ;;  %v947_v7 = vrot.slane %v9457_v26, 7  ;;  %v447_v55 = vsel %vm183_vm2, %v446_v46, %v445_v33  ;;  %v726_v46 = vsel %vm177_vm0, %v9383_v2, %v725_v48 }
  0xdb   :  { %v9449_v49 = vunpack.c.l.b16 %v872_v12  ;;  %v410_v12 = vsel %vm183_vm2, %v409_v32, %v408_v39  ;;  %v879_v10 = vrot.slane %v835_v43, %v9007_v21  ;;  %v728_v25 = vsel %vm180_vm1, %v727_v50, %v726_v46 }
  0xdc   :  { %1796 = vrot.lane.b32.xlu1 %v1793_v15, %s8950_s25  ;;  %v837_v15 = vcombine.high %v9362_v9, %v9362_v9  ;;  %v525_v9 = vsel %vm177_vm0, %v524_v51, %v523_v1  ;;  %v317_v51 = vrot.slane %v303_v29, %v9007_v21  ;;  %v412_v59 = vpack.c.b16 %v410_v12, %v410_v12 }
  0xdd   :  { %1794 = vrot.lane.b32.xlu0 %v1785_v58, %s8950_s25  ;;  %v266_v58 = vpack.c.b16 %v264_v57, %v264_v57  ;;  %v945_v62 = vrot.slane %v9449_v49, 1  ;;  %v527_v32 = vsel %vm180_vm1, %v526_v56, %v525_v9  ;;  %v899_v27 = vunpack.c.l.b16 %v879_v10 }
  0xde   :  { %v893_v34 = vrot.slane %v837_v15, %v9007_v21  ;;  %v528_v57 = vsel %vm183_vm2, %v9328_v52, %v527_v32  ;;  %v764_v56 = vsel %vm177_vm0, %v763_v11, %v762_v13  ;;  %v802_v48 = vrot.slane %v9399_v40, 1 }
  0xdf   :  { %v280_v1 = vrot.slane %v266_v58, %v9007_v21  ;;  %v989_v60 = vrot.slane %v9449_v49, 2  ;;  %v990_v24 = vrot.slane %v899_v27, 1  ;;  %v530_v50 = vpack.c.b16 %v528_v57, %v528_v57 }
  0xe0   :  { %1921 = vrot.lane.b32.xlu1 %v1918_v0, %s8934_s15  ;;  %v449_v0 = vpack.c.b16 %v447_v55, %v447_v55  ;;  %v901_v2 = vunpack.c.l.b16 %v893_v34  ;;  %v946_v13 = vsel %vm177_vm0, %v899_v27, %v945_v62  ;;  %v730_v11 = vsel %vm183_vm2, %v729_v16, %v728_v25 }
  0xe1   :  { %1919 = vrot.lane.b32.xlu0 %v1910_v44, %s8934_s15  ;;  %v799_v44 = vrot.slane %v9381_v35, 3  ;;  %v765_v35 = vsel %vm180_vm1, %v9399_v40, %v764_v56  ;;  %v426_v14 = vrot.slane %v412_v59, %v9007_v21  ;;  %v948_v53 = vsel %vm180_vm1, %v947_v7, %v946_v13 }
  0xe2   :  { %v463_v30 = vrot.slane %v449_v0, %v9007_v21  ;;  %v767_v40 = vsel %vm183_vm2, %v766_v61, %v765_v35 }
  0xe3   :  { %v801_v36 = vsel %vm177_vm0, %v800_v4, %v799_v44 }
  0xe4   :  { %2046 = vrot.lane.b32.xlu1 %v2043_v19, %s8951_s26 }
  0xe5   :  { %2044 = vrot.lane.b32.xlu0 %v2035_v17, %s8951_s26  ;;  %v691_v17 = vsel %vm180_vm1, %v690_v20, %v689_v23  ;;  %v908_v20 = vrot.slane %v899_v27, 7 }
  0xe6   :  { %v693_v52 = vsel %vm183_vm2, %v692_v63, %v691_v17  ;;  %v949_v63 = vrot.slane %v901_v2, 6 }
  0xe7   :  { %v695_v58 = vpack.c.b16 %v693_v52, %v693_v52 }
  0xe8   :  { %209 = vrot.lane.b32.xlu1 %v206_v54, %s8929_s10 }
  0xe9   :  { %2152 = vperm.xlu0 %8598, %v9473_v22  }
  0xec   :  { %246 = vrot.lane.b32.xlu1 %v243_v6, %s8931_s12 }
  0xed   :  { %283 = vrot.lane.b32.xlu0 %v280_v1, %s8928_s9 }
  0xf0   :  { %320 = vrot.lane.b32.xlu1 %v317_v51, %s8930_s11 }
  0xf1   :  { %503 = vrot.lane.b32.xlu0 %v500_v42, %s8935_s16 }
  0xf2   :  { %10 = vsyncpa [#allocation4], 0  ;;  %v544_v16 = vrot.slane %v530_v50, %v9007_v21  ;;  %v732_v19 = vpack.c.b16 %v730_v11, %v730_v11  ;;  %v803_v37 = vsel %vm180_vm1, %v802_v48, %v801_v36  ;;  %v910_v39 = vrot.slane %v9457_v26, 6  ;;  %v7022_v56 = vld [vmem:[%s11014_s1 + $0x4] sm:$0xf]  ;;  %s8952_s6 = smov [#allocation3]  }
  0xf3   :  { %v909_v43 = vsel %vm177_vm0, %v908_v20, %v9449_v49  ;;  %v991_v5 = vsel %vm177_vm0, %v990_v24, %v989_v60  ;;  %v1026_v15 = vrot.slane %v9449_v49, 3  ;;  %v1027_v62 = vrot.slane %v899_v27, 2 }
  0xf4   :  { %429 = vrot.lane.b32.xlu1 %v426_v14, %s8934_s15  ;;  %v709_v61 = vrot.slane %v695_v58, %v9007_v21  ;;  %v769_v44 = vpack.c.b16 %v767_v40, %v767_v40  ;;  %v950_v54 = vsel %vm183_vm2, %v949_v63, %v948_v53  ;;  %v804_v33 = vsel %vm183_vm2, %v9403_v45, %v803_v37 }
  0xf5   :  { %466 = vrot.lane.b32.xlu0 %v463_v30, %s8937_s18  ;;  %v912_v7 = vrot.slane %v901_v2, 5  ;;  %v993_v4 = vrot.slane %v901_v2, 7  ;;  %v911_v29 = vsel %vm180_vm1, %v910_v39, %v909_v43  ;;  %v992_v49 = vsel %vm180_vm1, %v9457_v26, %v991_v5  ;;  %v7033_v5 = vld [vmem:[%s11014_s1 + $0xc] sm:$0xf] }
  0xf6   :  { %v1029_v9 = vrot.slane %v9457_v26, 1  ;;  %v952_v41 = vpack.c.b16 %v950_v54, %v950_v54  ;;  %v1028_v12 = vsel %vm177_vm0, %v1027_v62, %v1026_v15  ;;  %v746_v10 = vrot.slane %v732_v19, %v9007_v21 }
  0xf7   :  { %v783_v45 = vrot.slane %v769_v44, %v9007_v21  ;;  %v806_v6 = vpack.c.b16 %v804_v33, %v804_v33  ;;  %v913_v55 = vsel %vm183_vm2, %v912_v7, %v911_v29  ;;  %v994_v23 = vsel %vm183_vm2, %v993_v4, %v992_v49  ;;  %v7037_v4 = vld [vmem:[%s11014_s1 + $0x10] sm:$0xf] }
  0xf8   :  { %547 = vrot.lane.b32.xlu1 %v544_v16, %s8936_s17  ;;  %v1030_v34 = vsel %vm180_vm1, %v1029_v9, %v1028_v12  ;;  %v966_v26 = vrot.slane %v952_v41, %v9007_v21  ;;  %v915_v32 = vpack.c.b16 %v913_v55, %v913_v55  ;;  %v996_v46 = vpack.c.b16 %v994_v23, %v994_v23 }
  0xf9   :  { %712 = vrot.lane.b32.xlu0 %v709_v61, %s8933_s14  ;;  %v820_v1 = vrot.slane %v806_v6, %v9007_v21  ;;  %v1031_v51 = vsel %vm183_vm2, %v901_v2, %v1030_v34  ;;  %vm1090_vm0 = vcmask 1041408   ;;  %vm1086_vm1 = vcmask 31744   ;;  %v7041_v6 = vld [vmem:[%s11014_s1 + $0x14] sm:$0xf] }
  0xfa   :  { %v929_v59 = vrot.slane %v915_v32, %v9007_v21  ;;  %v1010_v42 = vrot.slane %v996_v46, %v9007_v21  ;;  %v1033_v0 = vpack.c.b16 %v1031_v51, %v1031_v51  ;;  %v1191_v20 = vsel %vm1090_vm0, %v9282_v18, 0  ;;  %v1057_v18 = vld [vmem:[%s11014_s1] sm:$0xf]  ;;  %v7045_v51 = vld [vmem:[%s11014_s1 + $0x18] sm:$0xf] }
  0xfb   :  { %v1185_v14 = vsel %vm1090_vm0, %v9294_v38, 0  ;;  %vm11026_vm2 = vcmask 1031168   ;;  %vm11027_vm6 = vcmask 900096   ;;  %v7029_v38 = vld [vmem:[%s11014_s1 + $0x8] sm:$0xf]  ;;  %vm11032_vm12 = vcmask 744448  }
  0xfc   :  { %749 = vrot.lane.b32.xlu1 %v746_v10, %s8932_s13  ;;  %v1047_v17 = vrot.slane %v1033_v0, %v9007_v21  ;;  %vm11039_vm7 = vcmask 427304  }
  0xfd   :  { %786 = vrot.lane.b32.xlu0 %v783_v45, %s8938_s19 }
 0x100   :  { %969 = vrot.lane.b32.xlu1 %v966_v26, %s8939_s20 }
 0x101   :  { %823 = vrot.lane.b32.xlu0 %v820_v1, %s8941_s21 }
 0x104   :  { %932 = vrot.lane.b32.xlu1 %v929_v59, %s8942_s22 }
 0x105   :  { %1013 = vrot.lane.b32.xlu0 %v1010_v42, %s8943_s23 }
 0x108   :  { %1050 = vrot.lane.b32.xlu1 %v1047_v17, %s8944_s24 }
 0x12a   :  { %v1299_v27 = vpop.permute.xlu1 %1298 }
 0x12b   :  { %v1083_v57 = vpop.permute.xlu0 %1082  ;;  %v1313_v36 = vsel %vm1090_vm0, %v1299_v27, 0 }
 0x12c   :  { %v1098_v25 = vsel %vm1090_vm0, %v1083_v57, 0 }
 0x12d   :  { %8337 = vmatpush3.bf16.msra.mxu1 %v1098_v25 }
 0x12e   :  { %8342 = vmatprep.subr.bf16.mxu1 %v8945_v28  ;;  %v1079_v2 = vpop.permute.xlu1 %1078 }
 0x12f   :  { %v1424_v48 = vpop.permute.xlu0 %1423 }
 0x130   :  { %8339 = vmatmul.mubr.msk.bf16.vlgmr.msra.gmra.mrb[0].mxu1 %vm1086_vm1, %v7022_v56  ;;  %v1438_v16 = vsel %vm1090_vm0, %v1424_v48, 0 }
 0x131   :  { %8343 = vmatpush3.bf16.msra.mxu1 %v1191_v20  ;;  %8344 = vmatprep.mubr.msk.bf16.mxu1 %vm8946_vm5, %v8945_v28 }
 0x132   :  { %8348 = vmatprep.subr.bf16.mxu1 %v8945_v28  ;;  %v1549_v60 = vpop.permute.xlu1 %1548 }
 0x133   :  { %v1081_v24 = vpop.permute.xlu0 %1080  ;;  %v1563_v44 = vsel %vm1090_vm0, %v1549_v60, 0 }
 0x134   :  { %v1085_v52 = vsel %vm507_vm8, %v1081_v24, %v1083_v57  ;;  %v1084_v50 = vsel %vm507_vm8, %v1079_v2, %v1081_v24  ;;  %v7049_v2 = vld [vmem:[%s11014_s1 + $0x1c] sm:$0xf] }
 0x135   :  { %7023 = vmatprep.subr.msk.bf16.mxu0 %vm1090_vm0, %v1085_v52  ;;  %v1092_v35 = vsel %vm1090_vm0, %v1084_v50, 0 }
 0x136   :  { %1101 = vmatpush1.bf16.msra.mxu0 %v1092_v35  ;;  %v1295_v13 = vpop.permute.xlu1 %1294 }
 0x137   :  { %7026 = vmatprep.subr.msk.bf16.mxu0 %vm1090_vm0, %v9310_v8  ;;  %v1674_v11 = vpop.permute.xlu0 %1673 }
 0x138   :  { %8345 = vmatmul.mubr.msk.bf16.vlgmr.msra.gmra.mrb[4].mxu1 %vm1086_vm1, %v1057_v18  ;;  %v1688_v9 = vsel %vm1090_vm0, %v1674_v11, 0 }
 0x139   :  { %8349 = vmatpush3.bf16.msra.mxu1 %v1313_v36  ;;  %7024 = vmatmul.mubr.msk.bf16.vlgmr.msra.gmra.mrb[0].mxu0 %vm1086_vm1, %v7022_v56 }
 0x13a   :  { %1194 = vmatpush1.bf16.msra.mxu0 %v1185_v14  ;;  %8350 = vmatprep.mubr.msk.bf16.mxu1 %vm8946_vm5, %v8945_v28  ;;  %v9612_v30 = vpop.permute.xlu1 %1798 }
 0x13b   :  { %v1297_v58 = vpop.permute.xlu0 %1296  ;;  %8354 = vmatprep.subr.bf16.mxu1 %v8945_v28  ;;  %1225 = vmatprep.mubr.bf16.mxu0 %v8940_v3  ;;  %v1813_v34 = vsel %vm1090_vm0, %v9612_v30, 0 }
 0x13c   :  { %v1302_v8 = vsel %vm11026_vm2, %v1297_v58, %v1299_v27  ;;  %v1301_v63 = vsel %vm11026_vm2, %v1295_v13, %v1297_v58  ;;  %vm11028_vm2 = vcmask 891904   ;;  %v7053_v13 = vld [vmem:[%s11014_s1 + $0x20] sm:$0xf] }
 0x13d   :  { %7030 = vmatprep.subr.msk.bf16.mxu0 %vm1090_vm0, %v1302_v8  ;;  %v1307_v37 = vsel %vm1090_vm0, %v1301_v63, 0 }
 0x13e   :  { %v1422_v40 = vpop.permute.xlu1 %1421 }
 0x13f   :  { %v1420_v53 = vpop.permute.xlu0 %1419  ;;  %v1427_v19 = vsel %vm11027_vm6, %v1422_v40, %v1424_v48 }
 0x140   :  { %8351 = vmatmul.mubr.msk.bf16.vlgmr.msra.gmra.mrb[8].mxu1 %vm1086_vm1, %v7029_v38  ;;  %v1426_v15 = vsel %vm11027_vm6, %v1420_v53, %v1422_v40  ;;  %vm11029_vm6 = vcmask 883712  }
 0x141   :  { %8355 = vmatpush3.bf16.msra.mxu1 %v1438_v16  ;;  %7027 = vmatmul.mubr.msk.bf16.vlgmr.msra.gmra.mrb[4].mxu0 %vm1086_vm1, %v1057_v18  ;;  %v1432_v33 = vsel %vm1090_vm0, %v1426_v15, 0 }
 0x142   :  { %1316 = vmatpush1.bf16.msra.mxu0 %v1307_v37  ;;  %8356 = vmatprep.mubr.msk.bf16.mxu1 %vm8946_vm5, %v8945_v28  ;;  %v1545_v39 = vpop.permute.xlu1 %1544 }
 0x143   :  { %7034 = vmatprep.subr.msk.bf16.mxu0 %vm1090_vm0, %v1427_v19  ;;  %v9630_v43 = vpop.permute.xlu0 %1923  ;;  %8360 = vmatprep.subr.bf16.mxu1 %v8945_v28 }
 0x144   :  { %1347 = vmatprep.mubr.bf16.mxu0 %v8940_v3  ;;  %v1938_v17 = vsel %vm1090_vm0, %v9630_v43, 0 }
 0x146   :  { %v9638_v62 = vpop.permute.xlu1 %2048 }
 0x147   :  { %v1547_v61 = vpop.permute.xlu0 %1546 }
 0x148   :  { %v1552_v54 = vsel %vm11028_vm2, %v1547_v61, %v1549_v60  ;;  %8357 = vmatmul.mubr.msk.bf16.vlgmr.msra.gmra.mrb[12].mxu1 %vm1086_vm1, %v7033_v5  ;;  %v1551_v29 = vsel %vm11028_vm2, %v1545_v39, %v1547_v61  ;;  %vm11033_vm2 = vcmask 752640   ;;  %v2063_v60 = vsel %vm1090_vm0, %v9638_v62, 0 }
 0x149   :  { %8361 = vmatpush3.bf16.msra.mxu1 %v1563_v44  ;;  %7031 = vmatmul.mubr.msk.bf16.vlgmr.msra.gmra.mrb[8].mxu0 %vm1086_vm1, %v7029_v38  ;;  %v1557_v41 = vsel %vm1090_vm0, %v1551_v29, 0 }
 0x14a   :  { %1441 = vmatpush1.bf16.msra.mxu0 %v1432_v33  ;;  %8362 = vmatprep.mubr.msk.bf16.mxu1 %vm8946_vm5, %v8945_v28  ;;  %v1672_v7 = vpop.permute.xlu1 %1671 }
 0x14b   :  { %7038 = vmatprep.subr.msk.bf16.mxu0 %vm1090_vm0, %v1552_v54  ;;  %8366 = vmatprep.subr.bf16.mxu1 %v8945_v28  ;;  %v1677_v12 = vsel %vm11029_vm6, %v1672_v7, %v1674_v11  ;;  %v1670_v10 = vpop.permute.xlu0 %1669 }
 0x14c   :  { %1472 = vmatprep.mubr.bf16.mxu0 %v8940_v3  ;;  %v1676_v55 = vsel %vm11029_vm6, %v1670_v10, %v1672_v7  ;;  %vm11038_vm6 = vcmask 279704  }
 0x14d   :  { %v1682_v1 = vsel %vm1090_vm0, %v1676_v55, 0 }
 0x14e   :  { %v1797_v49 = vpop.permute.xlu1 %1796 }
 0x14f   :  { %v1795_v26 = vpop.permute.xlu0 %1794  ;;  %v1802_v32 = vsel %vm11033_vm2, %v1797_v49, %v9612_v30 }
 0x150   :  { %8363 = vmatmul.mubr.msk.bf16.vlgmr.msra.gmra.mrb[16].mxu1 %vm1086_vm1, %v7037_v4  ;;  %v1801_v59 = vsel %vm11033_vm2, %v1795_v26, %v1797_v49  ;;  %vm11042_vm2 = vcmask 870104  }
 0x151   :  { %8367 = vmatpush3.bf16.msra.mxu1 %v1688_v9  ;;  %7035 = vmatmul.mubr.msk.bf16.vlgmr.msra.gmra.mrb[12].mxu0 %vm1086_vm1, %v7033_v5  ;;  %v1807_v27 = vsel %vm1090_vm0, %v1801_v59, 0 }
 0x152   :  { %1566 = vmatpush1.bf16.msra.mxu0 %v1557_v41  ;;  %8368 = vmatprep.mubr.msk.bf16.mxu1 %vm8946_vm5, %v8945_v28  ;;  %v1922_v45 = vpop.permute.xlu1 %1921 }
 0x153   :  { %7042 = vmatprep.subr.msk.bf16.mxu0 %vm1090_vm0, %v1677_v12  ;;  %8372 = vmatprep.subr.bf16.mxu1 %v8945_v28  ;;  %v1920_v42 = vpop.permute.xlu0 %1919  ;;  %v1927_v57 = vsel %vm11032_vm12, %v1922_v45, %v9630_v43 }
 0x154   :  { %1597 = vmatprep.mubr.bf16.mxu0 %v8940_v3  ;;  %v1926_v48 = vsel %vm11032_vm12, %v1920_v42, %v1922_v45  ;;  %vm11041_vm12 = vcmask 722504   ;;  %v8612_v42 = vld [vmem:[%s11016_s3 + $0xd0] sm:$0xff]  }
 0x155   :  { %v1932_v52 = vsel %vm1090_vm0, %v1926_v48, 0  ;;  %v8616_v48 = vld [vmem:[%s11016_s3 + $0x98] sm:$0xff]  }
 0x156   :  { %v2047_v23 = vpop.permute.xlu1 %2046 }
 0x157   :  { %v2045_v56 = vpop.permute.xlu0 %2044 }
 0x158   :  { %8369 = vmatmul.mubr.msk.bf16.vlgmr.msra.gmra.mrb[20].mxu1 %vm1086_vm1, %v7041_v6 }
 0x159   :  { %8373 = vmatpush3.bf16.msra.mxu1 %v1813_v34  ;;  %7039 = vmatmul.mubr.msk.bf16.vlgmr.msra.gmra.mrb[16].mxu0 %vm1086_vm1, %v7037_v4 }
 0x15a   :  { %1691 = vmatpush1.bf16.msra.mxu0 %v1682_v1  ;;  %8374 = vmatprep.mubr.msk.bf16.mxu1 %vm8946_vm5, %v8945_v28  ;;  %v210_v46 = vpop.permute.xlu1 %209 }
 0x15b   :  { %7046 = vmatprep.subr.msk.bf16.mxu0 %vm1090_vm0, %v1802_v32  ;;  %8378 = vmatprep.subr.bf16.mxu1 %v8945_v28  ;;  %215 = vst.msk [vmem:[#allocation2 + $0x6] sm:$0x3] %vm11038_vm6, %v210_v46  ;;  %vm11040_vm6 = vcmask 574904  }
 0x15c   :  { %1722 = vmatprep.mubr.bf16.mxu0 %v8940_v3 }
 0x15e   :  { %v247_v0 = vpop.permute.xlu1 %246 }
 0x15f   :  { %252 = vst.msk [vmem:[#allocation2 + $0x6] sm:$0x3] %vm11039_vm7, %v247_v0  ;;  %vm2050_vm7 = vcmask 736256  }
 0x160   :  { %8375 = vmatmul.mubr.msk.bf16.vlgmr.msra.gmra.mrb[24].mxu1 %vm1086_vm1, %v7045_v51  ;;  %v2052_v50 = vsel %vm2050_vm7, %v2047_v23, %v9638_v62  ;;  %v2051_v11 = vsel %vm2050_vm7, %v2045_v56, %v2047_v23  ;;  %v8615_v56 = vld [vmem:[%s11016_s3 + $0xd8] sm:$0xff]  }
 0x161   :  { %8379 = vmatpush3.bf16.msra.mxu1 %v1938_v17  ;;  %7043 = vmatmul.mubr.msk.bf16.vlgmr.msra.gmra.mrb[20].mxu0 %vm1086_vm1, %v7041_v6  ;;  %v2057_v14 = vsel %vm1090_vm0, %v2051_v11, 0  ;;  %v8614_v17 = vld [vmem:[%s11016_s3 + $0x90] sm:$0xff]  }
 0x162   :  { %1816 = vmatpush1.bf16.msra.mxu0 %v1807_v27  ;;  %8380 = vmatprep.mubr.msk.bf16.mxu1 %vm8946_vm5, %v8945_v28  ;;  %v321_v25 = vpop.permute.xlu1 %320 }
 0x163   :  { %7050 = vmatprep.subr.msk.bf16.mxu0 %vm1090_vm0, %v1927_v57  ;;  %8384 = vmatprep.subr.bf16.mxu1 %v8945_v28 }
 0x164   :  { %1847 = vmatprep.mubr.bf16.mxu0 %v8940_v3 }
 0x166   :  { %v430_v20 = vpop.permute.xlu1 %429 }
 0x168   :  { %8381 = vmatmul.mubr.msk.bf16.vlgmr.msra.gmra.mrb[28].mxu1 %vm1086_vm1, %v7049_v2  ;;  %v9705_v24 = vpop.permute.xlu0 %2152 }
 0x169   :  { %8385 = vmatpush3.bf16.msra.mxu1 %v2063_v60  ;;  %7047 = vmatmul.mubr.msk.bf16.vlgmr.msra.gmra.mrb[24].mxu0 %vm1086_vm1, %v7045_v51  ;;  %v8618_v60 = vld [vmem:[%s11016_s3 + $0xa0] sm:$0xff]  }
 0x16a   :  { %1941 = vmatpush1.bf16.msra.mxu0 %v1932_v52  ;;  %8386 = vmatprep.mubr.msk.bf16.mxu1 %vm8946_vm5, %v8945_v28  ;;  %v548_v35 = vpop.permute.xlu1 %547  ;;  %v8619_v52 = vld [vmem:[%s11016_s3 + $0xe8] sm:$0xff]  }
 0x16b   :  { %7054 = vmatprep.subr.msk.bf16.mxu0 %vm1090_vm0, %v2052_v50  ;;  %1972 = vmatprep.mubr.bf16.mxu0 %v8940_v3  ;;  %v8621_v50 = vld [vmem:[%s11016_s3 + $0xa8] sm:$0xff]  }
 0x16c   :  { %v284_v18 = vpop.permute.xlu0 %283  ;;  %8390 = vmatprep.subr.bf16.mxu1 %v8945_v28 }
 0x16d   :  { %289 = vst.msk [vmem:[#allocation2 + $0x6] sm:$0x3] %vm11040_vm6, %v284_v18  ;;  %v8622_v18 = vld [vmem:[%s11016_s3 + $0x110] sm:$0xff]   ;;  %vm11053_vm6 = vcmask 883712  }
 0x16e   :  { %326 = vst.msk [vmem:[#allocation2 + $0x6] sm:$0x3] %vm11041_vm12, %v321_v25  ;;  %v750_v58 = vpop.permute.xlu1 %749  ;;  %vm11043_vm12 = vcmask 263304  }
 0x16f   :  { %435 = vst.msk [vmem:[#allocation2 + $0x6] sm:$0x3] %vm11042_vm2, %v430_v20  ;;  %vm11044_vm2 = vcmask 410904   ;;  %v8617_v20 = vld [vmem:[%s11016_s3 + $0xe0] sm:$0xff]  }
 0x170   :  { %8387 = vmatmul.mubr.msk.bf16.vlgmr.msra.gmra.mrb[32].mxu1 %vm1086_vm1, %v7053_v13  ;;  %v504_v36 = vpop.permute.xlu0 %503 }
 0x171   :  { %7051 = vmatmul.mubr.msk.bf16.vlgmr.msra.gmra.mrb[28].mxu0 %vm1086_vm1, %v7049_v2  ;;  %v506_v30 = vrot.slane %v504_v36, 6  ;;  %8394 = vmatprep.mubr.msk.bf16.mxu1 %vm8946_vm5, %v8945_v28 }
 0x172   :  { %2066 = vmatpush1.bf16.msra.mxu0 %v2057_v14  ;;  %2097 = vmatprep.mubr.bf16.mxu0 %v8940_v3  ;;  %v970_v63 = vpop.permute.xlu1 %969 }
 0x173   :  { %v509_v8 = vsel %vm507_vm8, %v506_v30, %v504_v36  ;;  %v972_v16 = vrot.slane %v970_v63, 6  ;;  %7918 = vmatprep.subr.bf16.mxu0 %v8612_v42  ;;  %8391 = vmatpush3.bf16.msra.mxu1 %v8622_v18  ;;  %v8625_v36 = vld [vmem:[%s11016_s3 + $0x118] sm:$0xff]  }
 0x174   :  { %v467_v38 = vpop.permute.xlu0 %466  ;;  %8392 = vmatprep.subr.bf16.mxu1 %v8945_v28  ;;  %v8626_v30 = vld [vmem:[%s11016_s3 + $0xf8] sm:$0xff]  }
 0x175   :  { %472 = vst.msk [vmem:[#allocation2 + $0x6] sm:$0x3] %vm470_vm9, %v467_v38  ;;  %v975_v37 = vsel %vm973_vm10, %v972_v16, %v970_v63  ;;  %vm11046_vm9 = vcmask 394504   ;;  %v8630_v38 = vld [vmem:[%s11016_s3 + $0x100] sm:$0xff]   ;;  %vm11051_vm10 = vcmask 891904  }
 0x176   :  { %516 = vst.msk [vmem:[#allocation2 + $0x6] sm:$0xf] %vm9190_vm4, %v509_v8  ;;  %v933_v19 = vpop.permute.xlu1 %932  ;;  %vm11045_vm4 = vcmask 246904   ;;  %v8628_v8 = vld [vmem:[%s11016_s3 + $0x40] sm:$0xff]  }
 0x177   :  { %553 = vst.msk [vmem:[#allocation2 + $0x8] sm:$0x3] %vm11043_vm12, %v548_v35  ;;  %8393 = vmatpush3.bf16.msra.mxu1 %v8625_v36  ;;  %vm11054_vm12 = vmmov %vm11053_vm6 }
 0x178   :  { %v713_v40 = vpop.permute.xlu0 %712  ;;  %7943 = vmatprep.subr.bf16.mxu1 %v8628_v8 }
 0x179   :  { %7055 = vmatmul.mubr.msk.bf16.vlgmr.msra.gmra.mrb[32].mxu0 %vm1086_vm1, %v7053_v13  ;;  %718 = vst.msk [vmem:[#allocation2 + $0x8] sm:$0x3] %vm11044_vm2, %v713_v40  ;;  %v8624_v13 = vld [vmem:[%s11016_s3 + $0xb0] sm:$0xff]   ;;  %v8632_v40 = vld [vmem:[%s11016_s3 + $0xc0] sm:$0xff]   ;;  %vm11055_vm2 = vcmask 752640  }
 0x17a   :  { %755 = vst.msk [vmem:[#allocation2 + $0x8] sm:$0x3] %vm753_vm14, %v750_v58  ;;  %v1051_v31 = vpop.permute.xlu1 %1050  ;;  %7919 = vmatpush3.bf16.msra.mxu0 %v8614_v17  ;;  %v8627_v58 = vld [vmem:[%s11016_s3 + $0xb8] sm:$0xff]   ;;  %vm11049_vm14 = vcmask 900096  }
 0x17b   :  { %7920 = vmatprep.subr.bf16.mxu0 %v8615_v56 }
 0x17c   :  { %v787_v53 = vpop.permute.xlu0 %786 }
 0x17d   :  { %792 = vst.msk [vmem:[#allocation2 + $0x8] sm:$0x3] %vm790_vm15, %v787_v53  ;;  %v8635_v53 = vld [vmem:[%s11016_s3 + $0x108] sm:$0xff]   ;;  %vm11050_vm15 = vmmov %vm11049_vm14 }
 0x17e   :  { %7921 = vmatpush3.bf16.msra.mxu0 %v8616_v48 }
 0x17f   :  { %7922 = vmatprep.subr.bf16.mxu0 %v8617_v20 }
 0x180   :  { %v824_v39 = vpop.permute.xlu0 %823 }
 0x181   :  { %829 = vst.msk [vmem:[#allocation2 + $0x8] sm:$0x3] %vm827_vm3, %v824_v39  ;;  %vm2356_vm3 = vcmask 261120  }
 0x182   :  { %938 = vst.msk [vmem:[#allocation2 + $0x8] sm:$0x3] %vm936_vm11, %v933_v19  ;;  %7923 = vmatpush3.bf16.msra.mxu0 %v8618_v60  ;;  %v8636_v19 = vld [vmem:[%s11016_s3 + $0xc8] sm:$0xff]   ;;  %vm11052_vm11 = vmmov %vm11051_vm10 }
 0x183   :  { %982 = vst.msk [vmem:[#allocation2 + $0x8] sm:$0xf] %vm9239_vm13, %v975_v37  ;;  %7924 = vmatprep.subr.bf16.mxu0 %v8619_v52 }
 0x184   :  { %v1014_v43 = vpop.permute.xlu0 %1013 }
 0x185   :  { %1019 = vst.msk [vmem:[#allocation2 + $0xa] sm:$0x3] %vm11045_vm4, %v1014_v43  ;;  %vm11056_vm4 = vmmov %vm11055_vm2 }
 0x186   :  { %1056 = vst.msk [vmem:[#allocation2 + $0xa] sm:$0x3] %vm11046_vm9, %v1051_v31  ;;  %7925 = vmatpush3.bf16.msra.mxu0 %v8621_v50  ;;  %vm11057_vm9 = vcmask 744448  }
 0x18d   :  { %v4043_v5 = vld [vmem:[#allocation2 + $0x6] sm:$0x3f] }
 0x18e   :  { %v4046_v15 = vcombine.high %v4043_v5, %v4043_v5  ;;  %v4380_v62 = vld [vmem:[#allocation2 + $0x6] sm:$0x3f]  ;;  %v9751_v44 = vrot.slane %v4043_v5, %v9007_v21 }
 0x18f   :  { %v4382_v47 = vcombine.high %v4380_v62, %v4380_v62  ;;  %v4257_v33 = vld [vmem:[#allocation2 + $0x6] sm:$0x3f]  ;;  %v4389_v9 = vrot.slane %v4380_v62, %v9007_v21 }
 0x190   :  { %v9746_v61 = vrot.slane %v4046_v15, %v9007_v21  ;;  %v4626_v7 = vld [vmem:[#allocation2 + $0x6] sm:$0x3f]  ;;  %v4266_v4 = vrot.slane %v4257_v33, %v9007_v21  ;;  %v4259_v26 = vcombine.high %v4257_v33, %v4257_v33  ;;  %v9780_v51 = vcombine.high %v9751_v44, %v9751_v44 }
 0x191   :  { %v4396_v54 = vrot.slane %v4382_v47, %v9007_v21  ;;  %v4628_v29 = vcombine.high %v4626_v7, %v4626_v7  ;;  %v4397_v41 = vcombine.high %v4389_v9, %v4389_v9  ;;  %v4503_v12 = vld [vmem:[#allocation2 + $0x6] sm:$0x3f]  ;;  %v9767_v23 = vrot.slane %v4626_v7, %v9007_v21 }
 0x192   :  { %4066 = vrot.lane.b32.xlu0 %v9746_v61, %s8935_s16  ;;  %v4872_v10 = vld [vmem:[#allocation2 + $0x6] sm:$0x3f]  ;;  %v4512_v45 = vrot.slane %v4503_v12, %v9007_v21  ;;  %v4273_v32 = vrot.slane %v4259_v26, %v9007_v21  ;;  %v4505_v0 = vcombine.high %v4503_v12, %v4503_v12  ;;  %v4274_v2 = vcombine.high %v4266_v4, %v4266_v4 }
 0x193   :  { %v4642_v49 = vrot.slane %v4628_v29, %v9007_v21  ;;  %v4874_v6 = vcombine.high %v4872_v10, %v4872_v10  ;;  %v4643_v34 = vcombine.high %v9767_v23, %v9767_v23  ;;  %v4749_v1 = vld [vmem:[#allocation2 + $0x6] sm:$0x3f]  ;;  %v9785_v59 = vrot.slane %v4872_v10, %v9007_v21 }
 0x194   :  { %v9775_v46 = vrot.slane %v4749_v1, %v9007_v21  ;;  %4279 = vrot.lane.b32.xlu1 %v4273_v32, %s8947_s0  ;;  %v4995_v27 = vld [vmem:[#allocation2 + $0x6] sm:$0x3f]  ;;  %v4519_v57 = vrot.slane %v4505_v0, %v9007_v21  ;;  %v4751_v35 = vcombine.high %v4749_v1, %v4749_v1  ;;  %v4520_v14 = vcombine.high %v4512_v45, %v4512_v45 }
 0x195   :  { %v4888_v55 = vrot.slane %v4874_v6, %v9007_v21  ;;  %v5004_v25 = vrot.slane %v4995_v27, %v9007_v21  ;;  %v4997_v63 = vcombine.high %v4995_v27, %v4995_v27  ;;  %v4889_v39 = vcombine.high %v9785_v59, %v9785_v59 }
 0x196   :  { %4062 = vrot.lane.b32.xlu0 %v9751_v44, %s8935_s16  ;;  %v4765_v11 = vrot.slane %v4751_v35, %v9007_v21  ;;  %v4766_v37 = vcombine.high %v9775_v46, %v9775_v46 }
 0x197   :  { %v5011_v16 = vrot.slane %v4997_v63, %v9007_v21  ;;  %v5012_v21 = vcombine.high %v5004_v25, %v5004_v25 }
 0x198   :  { %4064 = vrot.lane.b32.xlu1 %v9780_v51, %s8935_s16 }
 0x19a   :  { %4402 = vrot.lane.b32.xlu0 %v4396_v54, %s8948_s7 }
 0x19c   :  { %4525 = vrot.lane.b32.xlu1 %v4519_v57, %s8937_s18 }
 0x19e   :  { %4275 = vrot.lane.b32.xlu0 %v4266_v4, %s8947_s0 }
 0x1a0   :  { %4277 = vrot.lane.b32.xlu1 %v4274_v2, %s8947_s0 }
 0x1a2   :  { %4648 = vrot.lane.b32.xlu0 %v4642_v49, %s8949_s8 }
 0x1a4   :  { %4398 = vrot.lane.b32.xlu1 %v4389_v9, %s8948_s7 }
 0x1a6   :  { %4400 = vrot.lane.b32.xlu0 %v4397_v41, %s8948_s7  ;;  %s7006_s7 = sshll.u32 %s8952_s6, 4  ;;  %s7007_s7 = int_to_ptr.vmem [resolvable:$true] %s7006_s7 }
 0x1a7   :  { %s8903_s27 = scalar_lea.vmem %s7007_s7, 32  ;;  %p8908_p1 = scmp.lt.s32.totalorder %s7007_s7, %s7007_s7 }
 0x1a8   :  { %4771 = vrot.lane.b32.xlu1 %v4765_v11, %s8950_s25  ;;  %p8904_p0 = scmp.ne.s32.totalorder %s7007_s7, %s8903_s27  ;;  %p8909_p2 = scmp.lt.s32.totalorder %s8903_s27, %s8903_s27 }
 0x1aa   :  { %4521 = vrot.lane.b32.xlu0 %v4512_v45, %s8937_s18  ;;  %p8910_p3 = por %p8909_p2, %p8908_p1 }
 0x1ac   :  { %4523 = vrot.lane.b32.xlu1 %v4520_v14, %s8937_s18  ;;  %p8911_p4 = pnand %p8910_p3, %p8904_p0 }
 0x1ae   :  { %4894 = vrot.lane.b32.xlu0 %v4888_v55, %s8934_s15 }
 0x1b0   :  { %4644 = vrot.lane.b32.xlu1 %v9767_v23, %s8949_s8 }
 0x1b2   :  { %4646 = vrot.lane.b32.xlu0 %v4643_v34, %s8949_s8 }
 0x1b4   :  { %5017 = vrot.lane.b32.xlu1 %v5011_v16, %s8951_s26 }
 0x1b6   :  { %4767 = vrot.lane.b32.xlu0 %v9775_v46, %s8950_s25 }
 0x1b8   :  { %4769 = vrot.lane.b32.xlu1 %v4766_v37, %s8950_s25 }
 0x1ba   :  { %4890 = vrot.lane.b32.xlu0 %v9785_v59, %s8934_s15 }
 0x1bc   :  { %4892 = vrot.lane.b32.xlu1 %v4889_v39, %s8934_s15 }
 0x1be   :  { %5013 = vrot.lane.b32.xlu0 %v5004_v25, %s8951_s26 }
 0x1c0   :  { %5015 = vrot.lane.b32.xlu1 %v5012_v21, %s8951_s26 }
 0x1c2   :  { %5120 = vperm.xlu0 %8598, %v9473_v22   ;;  %v8623_v22 = vld [vmem:[%s11016_s3 + $0xf0] sm:$0xff]  }
 0x1c3   :  { %7926 = vmatprep.subr.bf16.mxu0 %v8623_v22 }
 0x1c4   :  { %7927 = vmatpush3.bf16.msra.mxu0 %v8624_v13 }
 0x1c5   :  { %7928 = vmatprep.subr.bf16.mxu0 %v8626_v30 }
 0x1c8   :  { %7929 = vmatpush3.bf16.msra.mxu0 %v8627_v58 }
 0x1c9   :  { %7930 = vmatprep.subr.bf16.mxu0 %v8630_v38 }
 0x1cc   :  { %7931 = vmatpush3.bf16.msra.mxu0 %v8632_v40 }
 0x1cd   :  { %7932 = vmatprep.subr.bf16.mxu0 %v8635_v53 }
 0x1d0   :  { %7933 = vmatpush3.bf16.msra.mxu0 %v8636_v19 }
 0x1d1   :  { %8398 = vmatprep.subr.bf16.mxu0 %v8945_v28 }
 0x203   :  { %v1175_v31 = vpop.f32.mrb[0].mxu1 }
 0x204   :  { %v8340_v43 = vpop.f32.mrb[1].mxu1 }
 0x205   :  { %v1178_v5 = vpop.f32.mrb[2].mxu1 }
 0x206   :  { %v8341_v15 = vpop.f32.mrb[3].mxu1 }
 0x20b   :  { %v1268_v62 = vpop.f32.mrb[4].mxu1 }
 0x20c   :  { %v1269_v47 = vadd.f32 %v1268_v62, %v1175_v31  ;;  %v8346_v54 = vpop.f32.mrb[5].mxu1  ;;  %v1134_v33 = vpop.f32.mrb[0].mxu0 }
 0x20d   :  { %v1271_v7 = vpop.f32.mrb[6].mxu1  ;;  %v1136_v4 = vpop.f32.mrb[1].mxu0 }
 0x20e   :  { %v8347_v29 = vpop.f32.mrb[7].mxu1  ;;  %v1138_v49 = vpop.f32.mrb[2].mxu0 }
 0x20f   :  { %v1139_v9 = vpop.f32.mrb[3].mxu0 }
 0x213   :  { %v1390_v41 = vpop.f32.mrb[8].mxu1 }
 0x214   :  { %v1398_v12 = vadd.f32 %v1390_v41, %v1269_v47  ;;  %v8352_v10 = vpop.f32.mrb[9].mxu1  ;;  %v1227_v45 = vpop.f32.mrb[4].mxu0 }
 0x215   :  { %v1393_v6 = vpop.f32.mrb[10].mxu1  ;;  %v1228_v55 = vadd.f32 %v1227_v45, %v1134_v33  ;;  %v1229_v23 = vpop.f32.mrb[5].mxu0 }
 0x216   :  { %v8353_v34 = vpop.f32.mrb[11].mxu1  ;;  %v1230_v26 = vadd.f32 %v1229_v23, %v1136_v4  ;;  %v1231_v1 = vpop.f32.mrb[6].mxu0 }
 0x217   :  { %v1232_v32 = vpop.f32.mrb[7].mxu0 }
 0x21b   :  { %v1515_v46 = vpop.f32.mrb[12].mxu1 }
 0x21c   :  { %v1523_v59 = vadd.f32 %v1515_v46, %v1398_v12  ;;  %v8358_v42 = vpop.f32.mrb[13].mxu1  ;;  %v1349_v0 = vpop.f32.mrb[8].mxu0 }
 0x21d   :  { %v1518_v17 = vpop.f32.mrb[14].mxu1  ;;  %v1396_v27 = vadd.f32 %v1349_v0, %v1228_v55  ;;  %v1351_v57 = vpop.f32.mrb[9].mxu0 }
 0x21e   :  { %v8359_v25 = vpop.f32.mrb[15].mxu1  ;;  %v1397_v56 = vadd.f32 %v1351_v57, %v1230_v26  ;;  %v1353_v2 = vpop.f32.mrb[10].mxu0 }
 0x21f   :  { %v1354_v48 = vpop.f32.mrb[11].mxu0 }
 0x223   :  { %v1640_v20 = vpop.f32.mrb[16].mxu1 }
 0x224   :  { %v1648_v60 = vadd.f32 %v1640_v20, %v1523_v59  ;;  %v8364_v52 = vpop.f32.mrb[17].mxu1  ;;  %v1474_v50 = vpop.f32.mrb[12].mxu0  ;;  %v8629_v20 = vld [vmem:[%s11016_s3] sm:$0xff]  }
 0x225   :  { %v1643_v35 = vpop.f32.mrb[18].mxu1  ;;  %v1521_v18 = vadd.f32 %v1474_v50, %v1396_v27  ;;  %v1476_v22 = vpop.f32.mrb[13].mxu0  ;;  %v8633_v50 = vld [vmem:[%s11016_s3 + $0x48] sm:$0xff]  }
 0x226   :  { %v8365_v13 = vpop.f32.mrb[19].mxu1  ;;  %v1522_v11 = vadd.f32 %v1476_v22, %v1397_v56  ;;  %v1478_v36 = vpop.f32.mrb[14].mxu0 }
 0x227   :  { %v1479_v14 = vpop.f32.mrb[15].mxu0  ;;  %v8634_v36 = vld [vmem:[%s11016_s3 + $0x8] sm:$0xff]  }
 0x22b   :  { %v1765_v30 = vpop.f32.mrb[20].mxu1 }
 0x22c   :  { %v1773_v58 = vadd.f32 %v1765_v30, %v1648_v60  ;;  %v1599_v8 = vpop.f32.mrb[16].mxu0  ;;  %v8370_v38 = vpop.f32.mrb[21].mxu1 }
 0x22d   :  { %v1646_v63 = vadd.f32 %v1599_v8, %v1521_v18  ;;  %v1601_v40 = vpop.f32.mrb[17].mxu0  ;;  %v1768_v53 = vpop.f32.mrb[22].mxu1 }
 0x22e   :  { %v1647_v16 = vadd.f32 %v1601_v40, %v1522_v11  ;;  %v8371_v19 = vpop.f32.mrb[23].mxu1  ;;  %v1603_v37 = vpop.f32.mrb[18].mxu0  ;;  %v8638_v40 = vld [vmem:[%s11016_s3 + $0x10] sm:$0xff]  }
 0x22f   :  { %v1604_v39 = vpop.f32.mrb[19].mxu0  ;;  %v8640_v19 = vld [vmem:[%s11016_s3 + $0x80] sm:$0xff]  }
 0x230   :  { %v8641_v39 = vld [vmem:[%s11016_s3 + $0x18] sm:$0xff]  }
 0x233   :  { %v1890_v21 = vpop.f32.mrb[24].mxu1 }
 0x234   :  { %v1898_v31 = vadd.f32 %v1890_v21, %v1773_v58  ;;  %v1724_v43 = vpop.f32.mrb[20].mxu0  ;;  %v8376_v5 = vpop.f32.mrb[25].mxu1  ;;  %v8637_v58 = vld [vmem:[%s11016_s3 + $0x50] sm:$0xff]   ;;  %v8642_v21 = vld [vmem:[%s11016_s3 + $0x60] sm:$0xff]  }
 0x235   :  { %v1771_v15 = vadd.f32 %v1724_v43, %v1646_v63  ;;  %v1726_v62 = vpop.f32.mrb[21].mxu0  ;;  %v1893_v47 = vpop.f32.mrb[26].mxu1  ;;  %v8644_v43 = vld [vmem:[%s11016_s3 + $0x20] sm:$0xff]  }
 0x236   :  { %v1772_v54 = vadd.f32 %v1726_v62, %v1647_v16  ;;  %v8377_v33 = vpop.f32.mrb[27].mxu1  ;;  %v1728_v7 = vpop.f32.mrb[22].mxu0  ;;  %v8645_v5 = vld [vmem:[%s11016_s3 + $0x160] sm:$0xff]   ;;  %v8648_v47 = vld [vmem:[%s11016_s3 + $0x28] sm:$0xff]  }
 0x237   :  { %v1729_v4 = vpop.f32.mrb[23].mxu0  ;;  %v8647_v62 = vld [vmem:[%s11016_s3 + $0x120] sm:$0xff]   ;;  %v8650_v7 = vld [vmem:[%s11016_s3 + $0x70] sm:$0xff]  }
 0x238   :  { %v8651_v4 = vld [vmem:[%s11016_s3 + $0x128] sm:$0xff]  }
 0x23b   :  { %v2015_v29 = vpop.f32.mrb[28].mxu1 }
 0x23c   :  { %v2023_v49 = vadd.f32 %v2015_v29, %v1898_v31  ;;  %v1849_v9 = vpop.f32.mrb[24].mxu0  ;;  %v8382_v41 = vpop.f32.mrb[29].mxu1  ;;  %v8643_v31 = vld [vmem:[%s11016_s3 + $0x88] sm:$0xff]   ;;  %v8652_v29 = vld [vmem:[%s11016_s3 + $0x30] sm:$0xff]  }
 0x23d   :  { %v1896_v12 = vadd.f32 %v1849_v9, %v1771_v15  ;;  %v1851_v10 = vpop.f32.mrb[25].mxu0  ;;  %v2018_v45 = vpop.f32.mrb[30].mxu1  ;;  %v8646_v15 = vld [vmem:[%s11016_s3 + $0x68] sm:$0xff]   ;;  %v8654_v9 = vld [vmem:[%s11016_s3 + $0x78] sm:$0xff]   ;;  %v8655_v41 = vld [vmem:[%s11016_s3 + $0x130] sm:$0xff]  }
 0x23e   :  { %v1897_v6 = vadd.f32 %v1851_v10, %v1772_v54  ;;  %v8383_v55 = vpop.f32.mrb[31].mxu1  ;;  %v1853_v23 = vpop.f32.mrb[26].mxu0  ;;  %v8649_v54 = vld [vmem:[%s11016_s3 + $0x168] sm:$0xff]   ;;  %v8657_v10 = vld [vmem:[%s11016_s3 + $0x178] sm:$0xff]  }
 0x23f   :  { %v1854_v34 = vpop.f32.mrb[27].mxu0  ;;  %v8658_v45 = vld [vmem:[%s11016_s3 + $0x138] sm:$0xff]   ;;  %v8660_v55 = vld [vmem:[%s11016_s3 + $0x180] sm:$0xff]  }
 0x240   :  { %v8661_v23 = vld [vmem:[%s11016_s3 + $0x140] sm:$0xff]   ;;  %v8662_v34 = vld [vmem:[%s11016_s3 + $0x1a8] sm:$0xff]  }
 0x243   :  { %v2140_v26 = vpop.f32.mrb[32].mxu1 }
 0x244   :  { %v2148_v1 = vadd.f32 %v2140_v26, %v2023_v49  ;;  %v1974_v32 = vpop.f32.mrb[28].mxu0  ;;  %v8388_v46 = vpop.f32.mrb[33].mxu1  ;;  %v8653_v49 = vld [vmem:[%s11016_s3 + $0x170] sm:$0xff]   ;;  %v8663_v26 = vld [vmem:[%s11016_s3 + $0x188] sm:$0xff]  }
 0x245   :  { %v2021_v59 = vadd.f32 %v1974_v32, %v1896_v12  ;;  %v1976_v42 = vpop.f32.mrb[29].mxu0  ;;  %v2143_v0 = vpop.f32.mrb[34].mxu1  ;;  %v8656_v12 = vld [vmem:[%s11016_s3 + $0x38] sm:$0xff]   ;;  %v8664_v32 = vld [vmem:[%s11016_s3 + $0x148] sm:$0xff]   ;;  %v8666_v46 = vld [vmem:[%s11016_s3 + $0x1b0] sm:$0xff]  }
 0x246   :  { %v2157_v17 = vadd.f32 %v9705_v24, %v2148_v1  ;;  %v2022_v27 = vadd.f32 %v1976_v42, %v1897_v6  ;;  %v8389_v57 = vpop.f32.mrb[35].mxu1  ;;  %v1978_v25 = vpop.f32.mrb[30].mxu0  ;;  %v8659_v6 = vld [vmem:[%s11016_s3 + $0x1a0] sm:$0xff]   ;;  %v8665_v1 = vld [vmem:[%s11016_s3 + $0x1f0] sm:$0xff]   ;;  %v8669_v0 = vld [vmem:[%s11016_s3 + $0x1f8] sm:$0xff]  }
 0x247   :  { %v1979_v56 = vpop.f32.mrb[31].mxu0  ;;  %v8667_v42 = vld [vmem:[%s11016_s3 + $0x190] sm:$0xff]   ;;  %v8670_v57 = vld [vmem:[%s11016_s3 + $0x1b8] sm:$0xff]  }
 0x248   :  { %v2160_v2 = vmax.f32 %v2157_v17, 0.0  ;;  %v8671_v25 = vld [vmem:[%s11016_s3 + $0x198] sm:$0xff]   ;;  %v8673_v56 = vld [vmem:[%s11016_s3 + $0x200] sm:$0xff]  }
 0x24a   :  { %v9872_v48 = vpack.c.bf16 %v2160_v2, %v2160_v2  ;;  %v8672_v2 = vld [vmem:[%s11016_s3 + $0x158] sm:$0xff]  }
 0x24c   :  { %v2099_v60 = vpop.f32.mrb[32].mxu0  ;;  %v9878_v52 = vshrl.u32 %v9872_v48, 16 }
 0x24d   :  { %v2146_v35 = vadd.f32 %v2099_v60, %v2021_v59  ;;  %v2101_v18 = vpop.f32.mrb[33].mxu0  ;;  %v2672_v59 = vrot.slane %v9872_v48, 1  ;;  %v8675_v60 = vld [vmem:[%s11016_s3 + $0x208] sm:$0xff]  }
 0x24e   :  { %v2147_v22 = vadd.f32 %v2101_v18, %v2022_v27  ;;  %8395 = vmatmul.mubr.msk.bf16.vlgmr.msra.gmra.mrb[36].mxu1 %vm2356_vm3, %v9878_v52  ;;  %v2103_v13 = vpop.f32.mrb[34].mxu0  ;;  %v8668_v27 = vld [vmem:[%s11016_s3 + $0x150] sm:$0xff]   ;;  %v8677_v18 = vld [vmem:[%s11016_s3 + $0x1c8] sm:$0xff]  }
 0x24f   :  { %v2155_v11 = vadd.f32 %v9705_v24, %v2146_v35  ;;  %7944 = vmatpush3.bf16.msra.mxu1 %v8629_v20  ;;  %v2104_v14 = vpop.f32.mrb[35].mxu0  ;;  %v8674_v20 = vld [vmem:[%s11016_s3 + $0x1c0] sm:$0xff]   ;;  %v8679_v13 = vld [vmem:[%s11016_s3 + $0x238] sm:$0xff]  }
 0x250   :  { %v2156_v30 = vadd.f32 %v9705_v24, %v2147_v22  ;;  %7945 = vmatprep.subr.bf16.mxu1 %v8633_v50  ;;  %v8639_v24 = vld [vmem:[%s11016_s3 + $0x58] sm:$0xff]   ;;  %v8676_v50 = vld [vmem:[%s11016_s3 + $0x230] sm:$0xff]  }
 0x251   :  { %v2158_v8 = vmax.f32 %v2155_v11, 0.0  ;;  %v8678_v22 = vld [vmem:[%s11016_s3 + $0x210] sm:$0xff]   ;;  %v8682_v14 = vld [vmem:[%s11016_s3 + $0x218] sm:$0xff]  }
 0x252   :  { %v2159_v38 = vmax.f32 %v2156_v30, 0.0  ;;  %v8680_v11 = vld [vmem:[%s11016_s3 + $0x1d0] sm:$0xff]   ;;  %v8683_v30 = vld [vmem:[%s11016_s3 + $0x240] sm:$0xff]  }
 0x253   :  { %v9893_v63 = vpack.c.bf16 %v2158_v8, %v2158_v8  ;;  %7946 = vmatpush3.bf16.msra.mxu1 %v8634_v36  ;;  %v8681_v36 = vld [vmem:[%s11016_s3 + $0x280] sm:$0xff]   ;;  %v8684_v8 = vld [vmem:[%s11016_s3 + $0x1d8] sm:$0xff]  }
 0x254   :  { %v9898_v53 = vpack.c.bf16 %v2159_v38, %v2159_v38  ;;  %7947 = vmatprep.subr.bf16.mxu1 %v8637_v58  ;;  %v2906_v58 = vrot.slane %v9878_v52, 1  ;;  %v8685_v38 = vld [vmem:[%s11016_s3 + $0x288] sm:$0xff]  }
 0x255   :  { %v9911_v37 = vshrl.u32 %v9893_v63, 16  ;;  %v2670_v35 = vrot.slane %v9893_v63, 1 }
 0x256   :  { %2582 = vmatprep.mubr.bf16.mxu1 %v9898_v53  ;;  %v9905_v16 = vshrl.u32 %v9898_v53, 16  ;;  %v2671_v33 = vrot.slane %v9898_v53, 1 }
 0x257   :  { %7948 = vmatpush3.bf16.msra.mxu1 %v8638_v40  ;;  %v3139_v40 = vrot.slane %v9898_v53, 2 }
 0x258   :  { %2392 = vmatprep.mubr.bf16.mxu0 %v9905_v16  ;;  %7949 = vmatprep.subr.bf16.mxu1 %v8639_v24  ;;  %v2905_v17 = vrot.slane %v9905_v16, 1  ;;  %v8686_v24 = vld [vmem:[%s11016_s3 + $0x220] sm:$0xff]  }
 0x259   :  { %2393 = vmatmul.mubr.bf16.vlgmr.msra.gmra.mrb[36].mxu0 %v9911_v37 }
 0x25a   :  { %8399 = vmatpush3.bf16.msra.mxu0 %v8640_v19  ;;  %8402 = vmatprep.mubr.msk.bf16.mxu0 %vm8946_vm5, %v8945_v28  ;;  %v8687_v19 = vld [vmem:[%s11016_s3 + $0x248] sm:$0xff]  }
 0x25b   :  { %7950 = vmatpush3.bf16.msra.mxu1 %v8641_v39  ;;  %8400 = vmatprep.subr.bf16.mxu0 %v8945_v28  ;;  %v8688_v39 = vld [vmem:[%s11016_s3 + $0x1e0] sm:$0xff]  }
 0x25c   :  { %7951 = vmatprep.subr.bf16.mxu1 %v8642_v21  ;;  %v8689_v21 = vld [vmem:[%s11016_s3 + $0x290] sm:$0xff]  }
 0x25e   :  { %8401 = vmatpush3.bf16.msra.mxu0 %v8643_v31  ;;  %v8690_v31 = vld [vmem:[%s11016_s3 + $0x228] sm:$0xff]  }
 0x25f   :  { %7952 = vmatpush3.bf16.msra.mxu1 %v8644_v43  ;;  %7968 = vmatprep.subr.bf16.mxu0 %v8645_v5  ;;  %v8691_v43 = vld [vmem:[%s11016_s3 + $0x250] sm:$0xff]   ;;  %v8692_v5 = vld [vmem:[%s11016_s3 + $0x1e8] sm:$0xff]  }
 0x260   :  { %7953 = vmatprep.subr.bf16.mxu1 %v8646_v15  ;;  %v8693_v15 = vld [vmem:[%s11016_s3 + $0x298] sm:$0xff]  }
 0x261   :  { %8403 = vmatmul.mubr.msk.bf16.vlgmr.msra.gmra.mrb[40].mxu0 %vm2356_vm3, %v9872_v48 }
 0x262   :  { %7969 = vmatpush3.bf16.msra.mxu0 %v8647_v62  ;;  %2818 = vmatprep.mubr.bf16.mxu0 %v2671_v33  ;;  %v8694_v62 = vld [vmem:[%s11016_s3 + $0x258] sm:$0xff]   ;;  %v2904_v33 = vrot.slane %v9911_v37, 1 }
 0x263   :  { %7954 = vmatpush3.bf16.msra.mxu1 %v8648_v47  ;;  %7970 = vmatprep.subr.bf16.mxu0 %v8649_v54  ;;  %v8695_v47 = vld [vmem:[%s11016_s3 + $0x2c0] sm:$0xff]  }
 0x264   :  { %7955 = vmatprep.subr.bf16.mxu1 %v8650_v7  ;;  %v8696_v54 = vld [vmem:[%s11016_s3 + $0x2a0] sm:$0xff]  }
 0x265   :  { %v8697_v7 = vld [vmem:[%s11016_s3 + $0x260] sm:$0xff]  }
 0x266   :  { %7971 = vmatpush3.bf16.msra.mxu0 %v8651_v4  ;;  %v8698_v4 = vld [vmem:[%s11016_s3 + $0x2c8] sm:$0xff]  }
 0x267   :  { %7956 = vmatpush3.bf16.msra.mxu1 %v8652_v29  ;;  %7972 = vmatprep.subr.bf16.mxu0 %v8653_v49  ;;  %v8699_v29 = vld [vmem:[%s11016_s3 + $0x2a8] sm:$0xff]   ;;  %v8701_v49 = vld [vmem:[%s11016_s3 + $0x310] sm:$0xff]  }
 0x268   :  { %7957 = vmatprep.subr.bf16.mxu1 %v8654_v9  ;;  %v8700_v9 = vld [vmem:[%s11016_s3 + $0x268] sm:$0xff]  }
 0x26a   :  { %7973 = vmatpush3.bf16.msra.mxu0 %v8655_v41  ;;  %v8702_v41 = vld [vmem:[%s11016_s3 + $0x2d0] sm:$0xff]  }
 0x26b   :  { %7958 = vmatpush3.bf16.msra.mxu1 %v8656_v12  ;;  %7974 = vmatprep.subr.bf16.mxu0 %v8657_v10  ;;  %v3140_v12 = vrot.slane %v9872_v48, 2  ;;  %v8703_v10 = vld [vmem:[%s11016_s3 + $0x2b0] sm:$0xff]  }
 0x26c   :  { %8406 = vmatprep.subr.bf16.mxu1 %v8945_v28 }
 0x26e   :  { %2583 = vmatmul.mubr.bf16.vlgmr.msra.gmra.mrb[40].mxu1 %v9893_v63  ;;  %7975 = vmatpush3.bf16.msra.mxu0 %v8658_v45  ;;  %v8705_v45 = vld [vmem:[%s11016_s3 + $0x318] sm:$0xff]  }
 0x26f   :  { %8407 = vmatpush3.bf16.msra.mxu1 %v8659_v6  ;;  %7976 = vmatprep.subr.bf16.mxu0 %v8660_v55  ;;  %v3373_v6 = vrot.slane %v9905_v16, 2  ;;  %v8704_v55 = vld [vmem:[%s11016_s3 + $0x270] sm:$0xff]  }
 0x270   :  { %8408 = vmatprep.subr.bf16.mxu1 %v8945_v28  ;;  %8410 = vmatprep.mubr.msk.bf16.mxu1 %vm8946_vm5, %v8945_v28 }
 0x272   :  { %7977 = vmatpush3.bf16.msra.mxu0 %v8661_v23  ;;  %v8706_v23 = vld [vmem:[%s11016_s3 + $0x2d8] sm:$0xff]  }
 0x273   :  { %8409 = vmatpush3.bf16.msra.mxu1 %v8662_v34  ;;  %7978 = vmatprep.subr.bf16.mxu0 %v8663_v26  ;;  %v8707_v34 = vld [vmem:[%s11016_s3 + $0x2b8] sm:$0xff]   ;;  %v8709_v26 = vld [vmem:[%s11016_s3 + $0x320] sm:$0xff]  }
 0x274   :  { %7993 = vmatprep.subr.bf16.mxu1 %v8665_v1  ;;  %v8708_v1 = vld [vmem:[%s11016_s3 + $0x278] sm:$0xff]  }
 0x276   :  { %7979 = vmatpush3.bf16.msra.mxu0 %v8664_v32  ;;  %8411 = vmatmul.mubr.msk.bf16.vlgmr.msra.gmra.mrb[44].mxu1 %vm2356_vm3, %v2672_v59  ;;  %v8710_v32 = vld [vmem:[%s11016_s3 + $0x2e0] sm:$0xff]   ;;  %v8712_v59 = vld [vmem:[%s11016_s3 + $0x350] sm:$0xff]  }
 0x277   :  { %7994 = vmatpush3.bf16.msra.mxu1 %v8666_v46  ;;  %3052 = vmatprep.mubr.bf16.mxu1 %v2905_v17  ;;  %v8711_v46 = vld [vmem:[%s11016_s3 + $0x328] sm:$0xff]   ;;  %v8714_v17 = vld [vmem:[%s11016_s3 + $0x330] sm:$0xff]  }
 0x278   :  { %7980 = vmatprep.subr.bf16.mxu0 %v8667_v42  ;;  %7995 = vmatprep.subr.bf16.mxu1 %v8669_v0  ;;  %v3138_v42 = vrot.slane %v9893_v63, 2  ;;  %v8713_v0 = vld [vmem:[%s11016_s3 + $0x2e8] sm:$0xff]  }
 0x27a   :  { %7981 = vmatpush3.bf16.msra.mxu0 %v8668_v27  ;;  %v8715_v27 = vld [vmem:[%s11016_s3 + $0x358] sm:$0xff]  }
 0x27b   :  { %7996 = vmatpush3.bf16.msra.mxu1 %v8670_v57  ;;  %7982 = vmatprep.subr.bf16.mxu0 %v8671_v25  ;;  %v8716_v57 = vld [vmem:[%s11016_s3 + $0x2f0] sm:$0xff]   ;;  %v8717_v25 = vld [vmem:[%s11016_s3 + $0x3a0] sm:$0xff]  }
 0x27c   :  { %7997 = vmatprep.subr.bf16.mxu1 %v8673_v56  ;;  %v8718_v56 = vld [vmem:[%s11016_s3 + $0x338] sm:$0xff]  }
 0x27e   :  { %7983 = vmatpush3.bf16.msra.mxu0 %v8672_v2  ;;  %v8719_v2 = vld [vmem:[%s11016_s3 + $0x360] sm:$0xff]  }
 0x27f   :  { %7998 = vmatpush3.bf16.msra.mxu1 %v8674_v20  ;;  %8414 = vmatprep.subr.bf16.mxu0 %v8945_v28  ;;  %v3374_v20 = vrot.slane %v9878_v52, 2 }
 0x280   :  { %7999 = vmatprep.subr.bf16.mxu1 %v8675_v60  ;;  %v8720_v60 = vld [vmem:[%s11016_s3 + $0x2f8] sm:$0xff]  }
 0x281   :  { %2819 = vmatmul.mubr.bf16.vlgmr.msra.gmra.mrb[44].mxu0 %v2670_v35  ;;  %v3607_v35 = vrot.slane %v9898_v53, 3  ;;  %v8725_v53 = vld [vmem:[%s11016_s3 + $0x3b0] sm:$0xff]  }
 0x282   :  { %8415 = vmatpush3.bf16.msra.mxu0 %v8676_v50  ;;  %8418 = vmatprep.mubr.msk.bf16.mxu0 %vm8946_vm5, %v8945_v28  ;;  %v8721_v50 = vld [vmem:[%s11016_s3 + $0x3a8] sm:$0xff]  }
 0x283   :  { %8000 = vmatpush3.bf16.msra.mxu1 %v8677_v18  ;;  %8416 = vmatprep.subr.bf16.mxu0 %v8945_v28  ;;  %v8722_v18 = vld [vmem:[%s11016_s3 + $0x340] sm:$0xff]  }
 0x284   :  { %8001 = vmatprep.subr.bf16.mxu1 %v8678_v22  ;;  %v8723_v22 = vld [vmem:[%s11016_s3 + $0x368] sm:$0xff]  }
 0x286   :  { %8417 = vmatpush3.bf16.msra.mxu0 %v8679_v13  ;;  %v8724_v13 = vld [vmem:[%s11016_s3 + $0x300] sm:$0xff]  }
 0x287   :  { %8002 = vmatpush3.bf16.msra.mxu1 %v8680_v11  ;;  %8018 = vmatprep.subr.bf16.mxu0 %v8681_v36  ;;  %v8726_v11 = vld [vmem:[%s11016_s3 + $0x348] sm:$0xff]   ;;  %v8727_v36 = vld [vmem:[%s11016_s3 + $0x370] sm:$0xff]  }
 0x288   :  { %8003 = vmatprep.subr.bf16.mxu1 %v8682_v14  ;;  %v8728_v14 = vld [vmem:[%s11016_s3 + $0x308] sm:$0xff]  }
 0x289   :  { %8419 = vmatmul.mubr.msk.bf16.vlgmr.msra.gmra.mrb[48].mxu0 %vm2356_vm3, %v2906_v58  ;;  %v8730_v58 = vld [vmem:[%s11016_s3 + $0x378] sm:$0xff]  }
 0x28a   :  { %8019 = vmatpush3.bf16.msra.mxu0 %v8683_v30  ;;  %3286 = vmatprep.mubr.bf16.mxu0 %v3139_v40  ;;  %v8729_v30 = vld [vmem:[%s11016_s3 + $0x3b8] sm:$0xff]   ;;  %v3372_v40 = vrot.slane %v9911_v37, 2 }
 0x28b   :  { %8004 = vmatpush3.bf16.msra.mxu1 %v8684_v8  ;;  %8020 = vmatprep.subr.bf16.mxu0 %v8685_v38  ;;  %v8731_v8 = vld [vmem:[%s11016_s3 + $0x3e0] sm:$0xff]  }
 0x28c   :  { %8005 = vmatprep.subr.bf16.mxu1 %v8686_v24  ;;  %v8732_v38 = vld [vmem:[%s11016_s3 + $0x3c0] sm:$0xff]  }
 0x28d   :  { %v8733_v24 = vld [vmem:[%s11016_s3 + $0x380] sm:$0xff]  }
 0x28e   :  { %8021 = vmatpush3.bf16.msra.mxu0 %v8687_v19  ;;  %v8734_v19 = vld [vmem:[%s11016_s3 + $0x3e8] sm:$0xff]  }
 0x28f   :  { %8006 = vmatpush3.bf16.msra.mxu1 %v8688_v39  ;;  %8022 = vmatprep.subr.bf16.mxu0 %v8689_v21  ;;  %v8735_v39 = vld [vmem:[%s11016_s3 + $0x3c8] sm:$0xff]   ;;  %v8737_v21 = vld [vmem:[%s11016_s3 + $0x430] sm:$0xff]  }
 0x290   :  { %8007 = vmatprep.subr.bf16.mxu1 %v8690_v31  ;;  %v8736_v31 = vld [vmem:[%s11016_s3 + $0x388] sm:$0xff]  }
 0x292   :  { %8023 = vmatpush3.bf16.msra.mxu0 %v8691_v43  ;;  %v8738_v43 = vld [vmem:[%s11016_s3 + $0x3f0] sm:$0xff]  }
 0x293   :  { %8008 = vmatpush3.bf16.msra.mxu1 %v8692_v5  ;;  %8024 = vmatprep.subr.bf16.mxu0 %v8693_v15  ;;  %v3608_v5 = vrot.slane %v9872_v48, 3  ;;  %v8739_v15 = vld [vmem:[%s11016_s3 + $0x3d0] sm:$0xff]   ;;  %v8742_v48 = vld [vmem:[%s11016_s3 + $0x3f8] sm:$0xff]  }
 0x294   :  { %8422 = vmatprep.subr.bf16.mxu1 %v8945_v28 }
 0x296   :  { %3053 = vmatmul.mubr.bf16.vlgmr.msra.gmra.mrb[48].mxu1 %v2904_v33  ;;  %8025 = vmatpush3.bf16.msra.mxu0 %v8694_v62  ;;  %v8741_v62 = vld [vmem:[%s11016_s3 + $0x438] sm:$0xff]  }
 0x297   :  { %8423 = vmatpush3.bf16.msra.mxu1 %v8695_v47  ;;  %8026 = vmatprep.subr.bf16.mxu0 %v8696_v54  ;;  %v3841_v47 = vrot.slane %v9905_v16, 3  ;;  %v8740_v54 = vld [vmem:[%s11016_s3 + $0x390] sm:$0xff]   ;;  %v8743_v33 = vld [vmem:[%s11016_s3 + $0x3d8] sm:$0xff]   ;;  %v8745_v16 = vld [vmem:[%s11016_s3 + $0x440] sm:$0xff]  }
 0x298   :  { %8424 = vmatprep.subr.bf16.mxu1 %v8945_v28  ;;  %8426 = vmatprep.mubr.msk.bf16.mxu1 %vm8946_vm5, %v8945_v28 }
 0x29a   :  { %8027 = vmatpush3.bf16.msra.mxu0 %v8697_v7  ;;  %v10273_v7 = vpop.permute.xlu0 %4066 }
 0x29b   :  { %8425 = vmatpush3.bf16.msra.mxu1 %v8698_v4  ;;  %8028 = vmatprep.subr.bf16.mxu0 %v8699_v29  ;;  %v8744_v4 = vld [vmem:[%s11016_s3 + $0x398] sm:$0xff]   ;;  %v10278_v29 = vpop.permute.xlu1 %4279 }
 0x29c   :  { %8043 = vmatprep.subr.bf16.mxu1 %v8701_v49  ;;  %v8746_v49 = vld [vmem:[%s11016_s3 + $0x400] sm:$0xff]  }
 0x29e   :  { %8029 = vmatpush3.bf16.msra.mxu0 %v8700_v9  ;;  %8427 = vmatmul.mubr.msk.bf16.vlgmr.msra.gmra.mrb[52].mxu1 %vm2356_vm3, %v3140_v12  ;;  %v8747_v9 = vld [vmem:[%s11016_s3 + $0x448] sm:$0xff]   ;;  %v4063_v12 = vpop.permute.xlu0 %4062 }
 0x29f   :  { %8044 = vmatpush3.bf16.msra.mxu1 %v8702_v41  ;;  %3520 = vmatprep.mubr.bf16.mxu1 %v3373_v6  ;;  %v8748_v41 = vld [vmem:[%s11016_s3 + $0x470] sm:$0xff]  }
 0x2a0   :  { %8030 = vmatprep.subr.bf16.mxu0 %v8703_v10  ;;  %8045 = vmatprep.subr.bf16.mxu1 %v8705_v45  ;;  %v3606_v10 = vrot.slane %v9893_v63, 3  ;;  %v8749_v45 = vld [vmem:[%s11016_s3 + $0x408] sm:$0xff]   ;;  %v8750_v6 = vld [vmem:[%s11016_s3 + $0x450] sm:$0xff]  }
 0x2a1   :  { %v8752_v63 = vld [vmem:[%s11016_s3 + $0x410] sm:$0xff]  }
 0x2a2   :  { %8031 = vmatpush3.bf16.msra.mxu0 %v8704_v55  ;;  %v4065_v55 = vpop.permute.xlu1 %4064 }
 0x2a3   :  { %8046 = vmatpush3.bf16.msra.mxu1 %v8706_v23  ;;  %8032 = vmatprep.subr.bf16.mxu0 %v8707_v34  ;;  %v8751_v23 = vld [vmem:[%s11016_s3 + $0x478] sm:$0xff]   ;;  %v4069_v34 = vsel %vm507_vm8, %v4065_v55, %v10273_v7 }
 0x2a4   :  { %8047 = vmatprep.subr.bf16.mxu1 %v8709_v26  ;;  %v8753_v26 = vld [vmem:[%s11016_s3 + $0x458] sm:$0xff]  }
 0x2a6   :  { %8033 = vmatpush3.bf16.msra.mxu0 %v8708_v1  ;;  %v10311_v1 = vpop.permute.xlu0 %4402 }
 0x2a7   :  { %8048 = vmatpush3.bf16.msra.mxu1 %v8710_v32  ;;  %8430 = vmatprep.subr.bf16.mxu0 %v8945_v28  ;;  %v4068_v32 = vsel %vm507_vm8, %v4063_v12, %v4065_v55  ;;  %vm11047_vm8 = vcmask 1031168   ;;  %v7484_v55 = vld [vmem:[%s11014_s1 + $0x18] sm:$0xf] }
 0x2a8   :  { %8049 = vmatprep.subr.bf16.mxu1 %v8711_v46  ;;  %v10314_v46 = vpop.permute.xlu1 %4525  ;;  %vm11048_vm13 = vmmov %vm11047_vm8 }
 0x2a9   :  { %3287 = vmatmul.mubr.bf16.vlgmr.msra.gmra.mrb[52].mxu0 %v3138_v42  ;;  %v8754_v42 = vld [vmem:[%s11016_s3 + $0x418] sm:$0xff]  }
 0x2aa   :  { %8431 = vmatpush3.bf16.msra.mxu0 %v8712_v59  ;;  %8434 = vmatprep.mubr.msk.bf16.mxu0 %vm8946_vm5, %v8945_v28  ;;  %v3842_v59 = vrot.slane %v9878_v52, 3  ;;  %v8756_v52 = vld [vmem:[%s11016_s3 + $0x420] sm:$0xff]  }
 0x2ab   :  { %8050 = vmatpush3.bf16.msra.mxu1 %v8713_v0  ;;  %8432 = vmatprep.subr.bf16.mxu0 %v8945_v28  ;;  %v8755_v0 = vld [vmem:[%s11016_s3 + $0x460] sm:$0xff]  }
 0x2ac   :  { %8051 = vmatprep.subr.bf16.mxu1 %v8714_v17  ;;  %v4074_v17 = vsel %vm1090_vm0, %v4068_v32, 0 }
 0x2ae   :  { %8433 = vmatpush3.bf16.msra.mxu0 %v8715_v27  ;;  %v4276_v27 = vpop.permute.xlu0 %4275 }
 0x2af   :  { %8052 = vmatpush3.bf16.msra.mxu1 %v8716_v57  ;;  %8068 = vmatprep.subr.bf16.mxu0 %v8717_v25  ;;  %v8757_v57 = vld [vmem:[%s11016_s3 + $0x468] sm:$0xff]   ;;  %v4278_v25 = vpop.permute.xlu1 %4277 }
 0x2b0   :  { %8053 = vmatprep.subr.bf16.mxu1 %v8718_v56  ;;  %v7461_v56 = vld [vmem:[%s11014_s1 + $0x4] sm:$0xf] }
 0x2b1   :  { %8435 = vmatmul.mubr.msk.bf16.vlgmr.msra.gmra.mrb[56].mxu0 %vm2356_vm3, %v3374_v20  ;;  %v4167_v20 = vsel %vm1090_vm0, %v9751_v44, 0  ;;  %v4041_v44 = vld [vmem:[%s11014_s1] sm:$0xf] }
 0x2b2   :  { %8069 = vmatpush3.bf16.msra.mxu0 %v8719_v2  ;;  %3754 = vmatprep.mubr.bf16.mxu0 %v3607_v35  ;;  %v8758_v2 = vld [vmem:[%s11016_s3 + $0x428] sm:$0xff]   ;;  %v3840_v35 = vrot.slane %v9911_v37, 3 }
 0x2b3   :  { %8054 = vmatpush3.bf16.msra.mxu1 %v8720_v60  ;;  %8070 = vmatprep.subr.bf16.mxu0 %v8721_v50  ;;  %v4282_v60 = vsel %vm11047_vm8, %v4278_v25, %v10278_v29  ;;  %v4399_v50 = vpop.permute.xlu1 %4398  ;;  %vm11058_vm8 = vmmov %vm11057_vm9 }
 0x2b4   :  { %8055 = vmatprep.subr.bf16.mxu1 %v8722_v18  ;;  %v4080_v18 = vsel %vm1090_vm0, %v10273_v7, 0 }
 0x2b6   :  { %8071 = vmatpush3.bf16.msra.mxu0 %v8723_v22  ;;  %v4281_v22 = vsel %vm11048_vm13, %v4276_v27, %v4278_v25 }
 0x2b7   :  { %8056 = vmatpush3.bf16.msra.mxu1 %v8724_v13  ;;  %8072 = vmatprep.subr.bf16.mxu0 %v8725_v53  ;;  %v4287_v37 = vsel %vm1090_vm0, %v4281_v22, 0  ;;  %v10362_v53 = vpop.permute.xlu1 %4771 }
 0x2b8   :  { %8057 = vmatprep.subr.bf16.mxu1 %v8726_v11 }
 0x2ba   :  { %8073 = vmatpush3.bf16.msra.mxu0 %v8727_v36 }
 0x2bb   :  { %8058 = vmatpush3.bf16.msra.mxu1 %v8728_v14  ;;  %8074 = vmatprep.subr.bf16.mxu0 %v8729_v30  ;;  %v4173_v30 = vsel %vm1090_vm0, %v9746_v61, 0 }
 0x2bc   :  { %8438 = vmatprep.subr.bf16.mxu1 %v8945_v28 }
 0x2be   :  { %3521 = vmatmul.mubr.bf16.vlgmr.msra.gmra.mrb[56].mxu1 %v3372_v40  ;;  %8075 = vmatpush3.bf16.msra.mxu0 %v8730_v58  ;;  %v7468_v58 = vld [vmem:[%s11014_s1 + $0x8] sm:$0xf] }
 0x2bf   :  { %8439 = vmatpush3.bf16.msra.mxu1 %v8731_v8  ;;  %8076 = vmatprep.subr.bf16.mxu0 %v8732_v38  ;;  %v4524_v8 = vpop.permute.xlu1 %4523 }
 0x2c0   :  { %8440 = vmatprep.subr.bf16.mxu1 %v8945_v28  ;;  %8442 = vmatprep.mubr.msk.bf16.mxu1 %vm8946_vm5, %v8945_v28  ;;  %v4528_v40 = vsel %vm11051_vm10, %v4524_v8, %v10314_v46 }
 0x2c2   :  { %8077 = vmatpush3.bf16.msra.mxu0 %v8733_v24 }
 0x2c3   :  { %8441 = vmatpush3.bf16.msra.mxu1 %v8734_v19  ;;  %8078 = vmatprep.subr.bf16.mxu0 %v8735_v39  ;;  %v4645_v24 = vpop.permute.xlu1 %4644  ;;  %v4293_v19 = vsel %vm1090_vm0, %v10278_v29, 0 }
 0x2c4   :  { %8093 = vmatprep.subr.bf16.mxu1 %v8737_v21  ;;  %v7472_v21 = vld [vmem:[%s11014_s1 + $0xc] sm:$0xf] }
 0x2c6   :  { %8079 = vmatpush3.bf16.msra.mxu0 %v8736_v31  ;;  %8443 = vmatmul.mubr.msk.bf16.vlgmr.msra.gmra.mrb[60].mxu1 %vm2356_vm3, %v3608_v5 }
 0x2c7   :  { %8094 = vmatpush3.bf16.msra.mxu1 %v8738_v43  ;;  %3988 = vmatprep.mubr.bf16.mxu1 %v3841_v47 }
 0x2c8   :  { %8080 = vmatprep.subr.bf16.mxu0 %v8739_v15  ;;  %8095 = vmatprep.subr.bf16.mxu1 %v8741_v62  ;;  %v10402_v15 = vpop.permute.xlu1 %5017  ;;  %v4416_v62 = vsel %vm1090_vm0, %v10311_v1, 0 }
 0x2ca   :  { %8081 = vmatpush3.bf16.msra.mxu0 %v8740_v54  ;;  %v7476_v54 = vld [vmem:[%s11014_s1 + $0x10] sm:$0xf] }
 0x2cb   :  { %8096 = vmatpush3.bf16.msra.mxu1 %v8742_v48  ;;  %8082 = vmatprep.subr.bf16.mxu0 %v8743_v33 }
 0x2cc   :  { %8097 = vmatprep.subr.bf16.mxu1 %v8745_v16  ;;  %v4770_v33 = vpop.permute.xlu1 %4769 }
 0x2cd   :  { %v4774_v16 = vsel %vm11055_vm2, %v4770_v33, %v10362_v53 }
 0x2ce   :  { %8083 = vmatpush3.bf16.msra.mxu0 %v8744_v4  ;;  %v4539_v4 = vsel %vm1090_vm0, %v10314_v46, 0  ;;  %v7488_v46 = vld [vmem:[%s11014_s1 + $0x1c] sm:$0xf] }
 0x2cf   :  { %8098 = vmatpush3.bf16.msra.mxu1 %v8746_v49  ;;  %8446 = vmatprep.subr.bf16.mxu0 %v8945_v28  ;;  %v7480_v49 = vld [vmem:[%s11014_s1 + $0x14] sm:$0xf] }
 0x2d0   :  { %8099 = vmatprep.subr.bf16.mxu1 %v8747_v9 }
 0x2d1   :  { %3755 = vmatmul.mubr.bf16.vlgmr.msra.gmra.mrb[60].mxu0 %v3606_v10 }
 0x2d2   :  { %8447 = vmatpush3.bf16.msra.mxu0 %v8748_v41  ;;  %8450 = vmatprep.mubr.msk.bf16.mxu0 %vm8946_vm5, %v8945_v28  ;;  %v4893_v41 = vpop.permute.xlu1 %4892 }
 0x2d3   :  { %8100 = vmatpush3.bf16.msra.mxu1 %v8749_v45  ;;  %8448 = vmatprep.subr.bf16.mxu0 %v8945_v28 }
 0x2d4   :  { %8101 = vmatprep.subr.bf16.mxu1 %v8750_v6 }
 0x2d6   :  { %8449 = vmatpush3.bf16.msra.mxu0 %v8751_v23 }
 0x2d7   :  { %8102 = vmatpush3.bf16.msra.mxu1 %v8752_v63  ;;  %7462 = vmatprep.subr.msk.bf16.mxu0 %vm1090_vm0, %v4069_v34  ;;  %v5016_v63 = vpop.permute.xlu1 %5015 }
 0x2d8   :  { %8103 = vmatprep.subr.bf16.mxu1 %v8753_v26  ;;  %v5020_v34 = vsel %vm2050_vm7, %v5016_v63, %v10402_v15 }
 0x2d9   :  { %8451 = vmatmul.mubr.msk.bf16.vlgmr.msra.gmra.mrb[64].mxu0 %vm2356_vm3, %v3842_v59 }
 0x2da   :  { %4083 = vmatpush1.bf16.msra.mxu0 %v4074_v17  ;;  %4114 = vmatprep.mubr.bf16.mxu0 %v8940_v3 }
 0x2db   :  { %8104 = vmatpush3.bf16.msra.mxu1 %v8754_v42  ;;  %7465 = vmatprep.subr.msk.bf16.mxu0 %vm1090_vm0, %v9780_v51  ;;  %v10341_v51 = vpop.permute.xlu0 %4648 }
 0x2dc   :  { %8105 = vmatprep.subr.bf16.mxu1 %v8755_v0  ;;  %v4662_v45 = vsel %vm1090_vm0, %v10341_v51, 0  ;;  %v7492_v0 = vld [vmem:[%s11014_s1 + $0x20] sm:$0xf] }
 0x2df   :  { %8106 = vmatpush3.bf16.msra.mxu1 %v8756_v52  ;;  %v4401_v13 = vpop.permute.xlu0 %4400 }
 0x2e0   :  { %8107 = vmatprep.subr.bf16.mxu1 %v8757_v57  ;;  %v4405_v11 = vsel %vm11049_vm14, %v4401_v13, %v10311_v1  ;;  %v4404_v14 = vsel %vm11050_vm15, %v4399_v50, %v4401_v13  ;;  %v4785_v1 = vsel %vm1090_vm0, %v10362_v53, 0  ;;  %v5031_v57 = vsel %vm1090_vm0, %v10402_v15, 0 }
 0x2e1   :  { %7463 = vmatmul.mubr.msk.bf16.vlgmr.msra.gmra.mrb[68].mxu0 %vm1086_vm1, %v7461_v56  ;;  %v4410_v38 = vsel %vm1090_vm0, %v4404_v14, 0 }
 0x2e2   :  { %4176 = vmatpush1.bf16.msra.mxu0 %v4167_v20  ;;  %4207 = vmatprep.mubr.bf16.mxu0 %v8940_v3 }
 0x2e3   :  { %7469 = vmatprep.subr.msk.bf16.mxu0 %vm1090_vm0, %v4282_v60  ;;  %8108 = vmatpush3.bf16.msra.mxu1 %v8758_v2  ;;  %v4522_v36 = vpop.permute.xlu0 %4521 }
 0x2e4   :  { %8454 = vmatprep.subr.bf16.mxu1 %v8945_v28  ;;  %v4527_v39 = vsel %vm11052_vm11, %v4522_v36, %v4524_v8 }
 0x2e5   :  { %v4533_v43 = vsel %vm1090_vm0, %v4527_v39, 0 }
 0x2e6   :  { %3989 = vmatmul.mubr.bf16.vlgmr.msra.gmra.mrb[64].mxu1 %v3840_v35 }
 0x2e7   :  { %8455 = vmatpush3.bf16.msra.mxu1 %v4080_v18  ;;  %8456 = vmatprep.mubr.msk.bf16.mxu1 %vm8946_vm5, %v8945_v28  ;;  %v10384_v61 = vpop.permute.xlu0 %4894 }
 0x2e8   :  { %8460 = vmatprep.subr.bf16.mxu1 %v8945_v28  ;;  %v4897_v12 = vsel %vm11057_vm9, %v4893_v41, %v10384_v61  ;;  %v4908_v42 = vsel %vm1090_vm0, %v10384_v61, 0 }
 0x2e9   :  { %7466 = vmatmul.mubr.msk.bf16.vlgmr.msra.gmra.mrb[72].mxu0 %vm1086_vm1, %v4041_v44 }
 0x2ea   :  { %4296 = vmatpush1.bf16.msra.mxu0 %v4287_v37  ;;  %4327 = vmatprep.mubr.bf16.mxu0 %v8940_v3 }
 0x2eb   :  { %7473 = vmatprep.subr.msk.bf16.mxu0 %vm1090_vm0, %v4405_v11  ;;  %v4647_v31 = vpop.permute.xlu0 %4646 }
 0x2ec   :  { %v4651_v5 = vsel %vm11053_vm6, %v4647_v31, %v10341_v51  ;;  %v4650_v47 = vsel %vm11054_vm12, %v4645_v24, %v4647_v31 }
 0x2ed   :  { %v4656_v48 = vsel %vm1090_vm0, %v4650_v47, 0  ;;  %v8759_v47 = vld [vmem:[%s11016_s3 + $0xd0] sm:$0xff]  }
 0x2ee   :  { %8457 = vmatmul.mubr.msk.bf16.vlgmr.msra.gmra.mrb[68].mxu1 %vm1086_vm1, %v7461_v56 }
 0x2ef   :  { %8461 = vmatpush3.bf16.msra.mxu1 %v4173_v30  ;;  %8462 = vmatprep.mubr.msk.bf16.mxu1 %vm8946_vm5, %v8945_v28  ;;  %v4768_v7 = vpop.permute.xlu0 %4767 }
 0x2f0   :  { %8466 = vmatprep.subr.bf16.mxu1 %v8945_v28  ;;  %v4773_v29 = vsel %vm11056_vm4, %v4768_v7, %v4770_v33  ;;  %v8762_v33 = vld [vmem:[%s11016_s3 + $0x98] sm:$0xff]  }
 0x2f1   :  { %7470 = vmatmul.mubr.msk.bf16.vlgmr.msra.gmra.mrb[76].mxu0 %vm1086_vm1, %v7468_v58  ;;  %v4779_v9 = vsel %vm1090_vm0, %v4773_v29, 0  ;;  %v8764_v29 = vld [vmem:[%s11016_s3 + $0xa0] sm:$0xff]  }
 0x2f2   :  { %4419 = vmatpush1.bf16.msra.mxu0 %v4410_v38  ;;  %4450 = vmatprep.mubr.bf16.mxu0 %v8940_v3 }
 0x2f3   :  { %7477 = vmatprep.subr.msk.bf16.mxu0 %vm1090_vm0, %v4528_v40  ;;  %v4891_v10 = vpop.permute.xlu0 %4890 }
 0x2f4   :  { %v4896_v6 = vsel %vm11058_vm8, %v4891_v10, %v4893_v41  ;;  %v8765_v10 = vld [vmem:[%s11016_s3 + $0xe8] sm:$0xff]  }
 0x2f5   :  { %v4902_v23 = vsel %vm1090_vm0, %v4896_v6, 0 }
 0x2f6   :  { %8463 = vmatmul.mubr.msk.bf16.vlgmr.msra.gmra.mrb[72].mxu1 %vm1086_vm1, %v4041_v44 }
 0x2f7   :  { %8467 = vmatpush3.bf16.msra.mxu1 %v4293_v19  ;;  %8468 = vmatprep.mubr.msk.bf16.mxu1 %vm8946_vm5, %v8945_v28  ;;  %v5014_v26 = vpop.permute.xlu0 %5013 }
 0x2f8   :  { %8472 = vmatprep.subr.bf16.mxu1 %v8945_v28  ;;  %v5019_v32 = vsel %vm2050_vm7, %v5014_v26, %v5016_v63  ;;  %v8767_v63 = vld [vmem:[%s11016_s3 + $0xf0] sm:$0xff]  }
 0x2f9   :  { %7474 = vmatmul.mubr.msk.bf16.vlgmr.msra.gmra.mrb[80].mxu0 %vm1086_vm1, %v7472_v21  ;;  %v5025_v59 = vsel %vm1090_vm0, %v5019_v32, 0  ;;  %v8769_v32 = vld [vmem:[%s11016_s3 + $0xf8] sm:$0xff]  }
 0x2fa   :  { %4542 = vmatpush1.bf16.msra.mxu0 %v4533_v43  ;;  %4573 = vmatprep.mubr.bf16.mxu0 %v8940_v3 }
 0x2fb   :  { %7481 = vmatprep.subr.msk.bf16.mxu0 %vm1090_vm0, %v4651_v5 }
 0x2fe   :  { %8469 = vmatmul.mubr.msk.bf16.vlgmr.msra.gmra.mrb[76].mxu1 %vm1086_vm1, %v7468_v58 }
 0x2ff   :  { %8473 = vmatpush3.bf16.msra.mxu1 %v4416_v62  ;;  %8474 = vmatprep.mubr.msk.bf16.mxu1 %vm8946_vm5, %v8945_v28 }
 0x300   :  { %8478 = vmatprep.subr.bf16.mxu1 %v8945_v28 }
 0x301   :  { %7478 = vmatmul.mubr.msk.bf16.vlgmr.msra.gmra.mrb[84].mxu0 %vm1086_vm1, %v7476_v54 }
 0x302   :  { %4665 = vmatpush1.bf16.msra.mxu0 %v4656_v48  ;;  %4696 = vmatprep.mubr.bf16.mxu0 %v8940_v3  ;;  %v8761_v48 = vld [vmem:[%s11016_s3 + $0xd8] sm:$0xff]  }
 0x303   :  { %7485 = vmatprep.subr.msk.bf16.mxu0 %vm1090_vm0, %v4774_v16 }
 0x306   :  { %8475 = vmatmul.mubr.msk.bf16.vlgmr.msra.gmra.mrb[80].mxu1 %vm1086_vm1, %v7472_v21 }
 0x307   :  { %8479 = vmatpush3.bf16.msra.mxu1 %v4539_v4  ;;  %8480 = vmatprep.mubr.msk.bf16.mxu1 %vm8946_vm5, %v8945_v28  ;;  %v8763_v4 = vld [vmem:[%s11016_s3 + $0xe0] sm:$0xff]  }
 0x308   :  { %8484 = vmatprep.subr.bf16.mxu1 %v8945_v28 }
 0x309   :  { %7482 = vmatmul.mubr.msk.bf16.vlgmr.msra.gmra.mrb[88].mxu0 %vm1086_vm1, %v7480_v49 }
 0x30a   :  { %4788 = vmatpush1.bf16.msra.mxu0 %v4779_v9  ;;  %4819 = vmatprep.mubr.bf16.mxu0 %v8940_v3 }
 0x30b   :  { %7489 = vmatprep.subr.msk.bf16.mxu0 %vm1090_vm0, %v4897_v12 }
 0x30e   :  { %8481 = vmatmul.mubr.msk.bf16.vlgmr.msra.gmra.mrb[84].mxu1 %vm1086_vm1, %v7476_v54  ;;  %v8760_v54 = vld [vmem:[%s11016_s3 + $0x90] sm:$0xff]  }
 0x30f   :  { %8485 = vmatpush3.bf16.msra.mxu1 %v4662_v45  ;;  %8486 = vmatprep.mubr.msk.bf16.mxu1 %vm8946_vm5, %v8945_v28  ;;  %v8766_v45 = vld [vmem:[%s11016_s3 + $0xa8] sm:$0xff]  }
 0x310   :  { %8490 = vmatprep.subr.bf16.mxu1 %v8945_v28 }
 0x311   :  { %7486 = vmatmul.mubr.msk.bf16.vlgmr.msra.gmra.mrb[92].mxu0 %vm1086_vm1, %v7484_v55 }
 0x312   :  { %4911 = vmatpush1.bf16.msra.mxu0 %v4902_v23  ;;  %4942 = vmatprep.mubr.bf16.mxu0 %v8940_v3 }
 0x313   :  { %7493 = vmatprep.subr.msk.bf16.mxu0 %vm1090_vm0, %v5020_v34  ;;  %v8768_v34 = vld [vmem:[%s11016_s3 + $0xb0] sm:$0xff]   ;;  %vm4039_vm0 = vcmask 73728  }
 0x316   :  { %8487 = vmatmul.mubr.msk.bf16.vlgmr.msra.gmra.mrb[88].mxu1 %vm1086_vm1, %v7480_v49 }
 0x317   :  { %8491 = vmatpush3.bf16.msra.mxu1 %v4785_v1  ;;  %8492 = vmatprep.mubr.msk.bf16.mxu1 %vm8946_vm5, %v8945_v28 }
 0x318   :  { %8496 = vmatprep.subr.bf16.mxu1 %v8945_v28 }
 0x319   :  { %7490 = vmatmul.mubr.msk.bf16.vlgmr.msra.gmra.mrb[96].mxu0 %vm1086_vm1, %v7488_v46 }
 0x31a   :  { %5034 = vmatpush1.bf16.msra.mxu0 %v5025_v59  ;;  %5065 = vmatprep.mubr.bf16.mxu0 %v8940_v3 }
 0x31b   :  { %8136 = vmatprep.subr.bf16.mxu0 %v8759_v47 }
 0x31e   :  { %8493 = vmatmul.mubr.msk.bf16.vlgmr.msra.gmra.mrb[92].mxu1 %vm1086_vm1, %v7484_v55 }
 0x31f   :  { %8497 = vmatpush3.bf16.msra.mxu1 %v4908_v42  ;;  %8498 = vmatprep.mubr.msk.bf16.mxu1 %vm8946_vm5, %v8945_v28  ;;  %v8771_v42 = vld [vmem:[%s11016_s3 + $0x100] sm:$0xff]  }
 0x320   :  { %8502 = vmatprep.subr.bf16.mxu1 %v8945_v28 }
 0x321   :  { %7494 = vmatmul.mubr.msk.bf16.vlgmr.msra.gmra.mrb[100].mxu0 %vm1086_vm1, %v7492_v0  ;;  %v2434_v17 = vpop.f32.mrb[36].mxu1 }
 0x322   :  { %v8396_v27 = vpop.f32.mrb[37].mxu1  ;;  %8137 = vmatpush3.bf16.msra.mxu0 %v8760_v54 }
 0x323   :  { %v2437_v3 = vpop.f32.mrb[38].mxu1  ;;  %8138 = vmatprep.subr.bf16.mxu0 %v8761_v48 }
 0x324   :  { %v8397_v52 = vpop.f32.mrb[39].mxu1 }
 0x326   :  { %8499 = vmatmul.mubr.msk.bf16.vlgmr.msra.gmra.mrb[96].mxu1 %vm1086_vm1, %v7488_v46  ;;  %8139 = vmatpush3.bf16.msra.mxu0 %v8762_v33  ;;  %v8770_v46 = vld [vmem:[%s11016_s3 + $0xb8] sm:$0xff]  }
 0x327   :  { %8503 = vmatpush3.bf16.msra.mxu1 %v5031_v57  ;;  %8504 = vmatprep.mubr.msk.bf16.mxu1 %vm8946_vm5, %v8945_v28 }
 0x328   :  { %8508 = vmatprep.subr.bf16.mxu1 %v8945_v28  ;;  %8140 = vmatprep.subr.bf16.mxu0 %v8763_v4 }
 0x32a   :  { %8141 = vmatpush3.bf16.msra.mxu0 %v8764_v29 }
 0x32b   :  { %8142 = vmatprep.subr.bf16.mxu0 %v8765_v10 }
 0x32c   :  { %v7934_v25 = vpop.f32.mrb[36].mxu0 }
 0x32d   :  { %v7935_v56 = vpop.f32.mrb[37].mxu0 }
 0x32e   :  { %v7936_v2 = vadd.f32 %v7935_v56, %v7934_v25  ;;  %8505 = vmatmul.mubr.msk.bf16.vlgmr.msra.gmra.mrb[100].mxu1 %vm1086_vm1, %v7492_v0  ;;  %v7937_v51 = vpop.f32.mrb[38].mxu0  ;;  %8143 = vmatpush3.bf16.msra.mxu0 %v8766_v45  ;;  %v8772_v0 = vld [vmem:[%s11016_s3 + $0xc0] sm:$0xff]   ;;  %v8774_v25 = vld [vmem:[%s11016_s3 + $0xc8] sm:$0xff]  }
 0x32f   :  { %v7938_v20 = vpop.f32.mrb[39].mxu0  ;;  %8512 = vmatprep.mubr.msk.bf16.mxu1 %vm8946_vm5, %v8945_v28  ;;  %8144 = vmatprep.subr.bf16.mxu0 %v8767_v63 }
 0x330   :  { %v2435_v60 = vadd.f32 %v7936_v2, %v2434_v17  ;;  %v8773_v17 = vld [vmem:[%s11016_s3 + $0x108] sm:$0xff]  }
 0x332   :  { %8145 = vmatpush3.bf16.msra.mxu0 %v8768_v34 }
 0x333   :  { %8146 = vmatprep.subr.bf16.mxu0 %v8769_v32 }
 0x334   :  { %v2624_v50 = vpop.f32.mrb[40].mxu0 }
 0x335   :  { %v8404_v35 = vpop.f32.mrb[41].mxu0 }
 0x336   :  { %v2627_v18 = vpop.f32.mrb[42].mxu0  ;;  %8147 = vmatpush3.bf16.msra.mxu0 %v8770_v46  ;;  %v8776_v35 = vld [vmem:[%s11016_s3 + $0x110] sm:$0xff]  }
 0x337   :  { %v8405_v22 = vpop.f32.mrb[43].mxu0  ;;  %8148 = vmatprep.subr.bf16.mxu0 %v8771_v42  ;;  %8509 = vmatpush3.bf16.msra.mxu1 %v8776_v35  ;;  %v8778_v18 = vld [vmem:[%s11016_s3 + $0x118] sm:$0xff]  }
 0x338   :  { %8510 = vmatprep.subr.bf16.mxu1 %v8945_v28  ;;  %v8781_v22 = vld [vmem:[%s11016_s3 + $0x40] sm:$0xff]  }
 0x33a   :  { %8149 = vmatpush3.bf16.msra.mxu0 %v8772_v0 }
 0x33b   :  { %8150 = vmatprep.subr.bf16.mxu0 %v8773_v17  ;;  %8511 = vmatpush3.bf16.msra.mxu1 %v8778_v18 }
 0x33c   :  { %8161 = vmatprep.subr.bf16.mxu1 %v8781_v22 }
 0x33e   :  { %8151 = vmatpush3.bf16.msra.mxu0 %v8774_v25 }
 0x33f   :  { %8516 = vmatprep.subr.bf16.mxu0 %v8945_v28 }
 0x341   :  { %v7959_v44 = vpop.f32.mrb[40].mxu1 }
 0x342   :  { %v7960_v13 = vpop.f32.mrb[41].mxu1 }
 0x343   :  { %v7961_v37 = vadd.f32 %v7960_v13, %v7959_v44  ;;  %v7962_v53 = vpop.f32.mrb[42].mxu1 }
 0x344   :  { %v7963_v11 = vpop.f32.mrb[43].mxu1 }
 0x345   :  { %v2585_v36 = vadd.f32 %v7961_v37, %v2435_v60 }
 0x347   :  { %v2625_v14 = vadd.f32 %v2624_v50, %v2585_v36 }
 0x349   :  { %v2860_v30 = vpop.f32.mrb[44].mxu1 }
 0x34a   :  { %v8412_v58 = vpop.f32.mrb[45].mxu1 }
 0x34b   :  { %v2863_v8 = vpop.f32.mrb[46].mxu1 }
 0x34c   :  { %v8413_v38 = vpop.f32.mrb[47].mxu1 }
 0x354   :  { %v7984_v40 = vpop.f32.mrb[44].mxu0 }
 0x355   :  { %v7985_v61 = vpop.f32.mrb[45].mxu0 }
 0x356   :  { %v7986_v24 = vadd.f32 %v7985_v61, %v7984_v40  ;;  %v7987_v19 = vpop.f32.mrb[46].mxu0 }
 0x357   :  { %v7988_v39 = vpop.f32.mrb[47].mxu0 }
 0x358   :  { %v2861_v21 = vadd.f32 %v7986_v24, %v2860_v30 }
 0x35a   :  { %v2866_v31 = vadd.f32 %v2861_v21, %v2625_v14 }
 0x35c   :  { %v3094_v43 = vpop.f32.mrb[48].mxu0 }
 0x35d   :  { %v8420_v5 = vpop.f32.mrb[49].mxu0 }
 0x35e   :  { %v3097_v15 = vpop.f32.mrb[50].mxu0 }
 0x35f   :  { %v8421_v62 = vpop.f32.mrb[51].mxu0 }
 0x369   :  { %v8009_v16 = vpop.f32.mrb[48].mxu1 }
 0x36a   :  { %v8010_v7 = vpop.f32.mrb[49].mxu1 }
 0x36b   :  { %v8011_v49 = vadd.f32 %v8010_v7, %v8009_v16  ;;  %v8012_v9 = vpop.f32.mrb[50].mxu1 }
 0x36c   :  { %v8013_v41 = vpop.f32.mrb[51].mxu1 }
 0x36d   :  { %v3095_v12 = vadd.f32 %v8011_v49, %v3094_v43 }
 0x36f   :  { %v3100_v6 = vadd.f32 %v3095_v12, %v2866_v31 }
 0x371   :  { %v3328_v55 = vpop.f32.mrb[52].mxu1 }
 0x372   :  { %v8428_v23 = vpop.f32.mrb[53].mxu1 }
 0x373   :  { %v3331_v26 = vpop.f32.mrb[54].mxu1 }
 0x374   :  { %v8429_v1 = vpop.f32.mrb[55].mxu1 }
 0x37c   :  { %v8034_v59 = vpop.f32.mrb[52].mxu0 }
 0x37d   :  { %v8035_v27 = vpop.f32.mrb[53].mxu0 }
 0x37e   :  { %v8036_v3 = vadd.f32 %v8035_v27, %v8034_v59  ;;  %v8037_v52 = vpop.f32.mrb[54].mxu0 }
 0x37f   :  { %v8038_v57 = vpop.f32.mrb[55].mxu0 }
 0x380   :  { %v3329_v56 = vadd.f32 %v8036_v3, %v3328_v55  ;;  %v4037_v55 = vld [vmem:[%s11017_s4] sm:$0x1] }
 0x382   :  { %v3334_v2 = vadd.f32 %v3329_v56, %v3100_v6 }
 0x384   :  { %v3562_v51 = vpop.f32.mrb[56].mxu0 }
 0x385   :  { %v8436_v20 = vpop.f32.mrb[57].mxu0 }
 0x386   :  { %v3565_v60 = vpop.f32.mrb[58].mxu0 }
 0x387   :  { %v8437_v50 = vpop.f32.mrb[59].mxu0 }
 0x391   :  { %v8059_v44 = vpop.f32.mrb[56].mxu1 }
 0x392   :  { %v8060_v13 = vpop.f32.mrb[57].mxu1 }
 0x393   :  { %v8061_v37 = vadd.f32 %v8060_v13, %v8059_v44  ;;  %v8062_v53 = vpop.f32.mrb[58].mxu1 }
 0x394   :  { %v8063_v11 = vpop.f32.mrb[59].mxu1 }
 0x395   :  { %v3563_v36 = vadd.f32 %v8061_v37, %v3562_v51 }
 0x397   :  { %v3568_v14 = vadd.f32 %v3563_v36, %v3334_v2 }
 0x399   :  { %v3796_v30 = vpop.f32.mrb[60].mxu1 }
 0x39a   :  { %v8444_v58 = vpop.f32.mrb[61].mxu1 }
 0x39b   :  { %v3799_v8 = vpop.f32.mrb[62].mxu1 }
 0x39c   :  { %v8445_v38 = vpop.f32.mrb[63].mxu1 }
 0x3a4   :  { %v8084_v40 = vpop.f32.mrb[60].mxu0 }
 0x3a5   :  { %v8085_v61 = vpop.f32.mrb[61].mxu0 }
 0x3a6   :  { %v8086_v24 = vadd.f32 %v8085_v61, %v8084_v40  ;;  %v8087_v19 = vpop.f32.mrb[62].mxu0 }
 0x3a7   :  { %v8088_v39 = vpop.f32.mrb[63].mxu0 }
 0x3a8   :  { %v3797_v21 = vadd.f32 %v8086_v24, %v3796_v30 }
 0x3aa   :  { %v3802_v31 = vadd.f32 %v3797_v21, %v3568_v14 }
 0x3ac   :  { %v4030_v43 = vpop.f32.mrb[64].mxu0 }
 0x3ad   :  { %v8452_v5 = vpop.f32.mrb[65].mxu0 }
 0x3ae   :  { %v4033_v15 = vpop.f32.mrb[66].mxu0 }
 0x3af   :  { %v8453_v62 = vpop.f32.mrb[67].mxu0 }
 0x3b4   :  { %v4116_v47 = vpop.f32.mrb[68].mxu0 }
 0x3b5   :  { %v4118_v54 = vpop.f32.mrb[69].mxu0 }
 0x3b6   :  { %v4120_v48 = vpop.f32.mrb[70].mxu0 }
 0x3b7   :  { %v4121_v33 = vpop.f32.mrb[71].mxu0 }
 0x3b9   :  { %v8109_v16 = vpop.f32.mrb[64].mxu1 }
 0x3ba   :  { %v8110_v7 = vpop.f32.mrb[65].mxu1 }
 0x3bb   :  { %v8111_v4 = vadd.f32 %v8110_v7, %v8109_v16  ;;  %v8112_v29 = vpop.f32.mrb[66].mxu1 }
 0x3bc   :  { %v8113_v49 = vpop.f32.mrb[67].mxu1  ;;  %v4209_v9 = vpop.f32.mrb[72].mxu0 }
 0x3bd   :  { %v4031_v41 = vadd.f32 %v8111_v4, %v4030_v43  ;;  %v4210_v12 = vadd.f32 %v4209_v9, %v4116_v47  ;;  %v4211_v10 = vpop.f32.mrb[73].mxu0 }
 0x3be   :  { %v4212_v45 = vadd.f32 %v4211_v10, %v4118_v54  ;;  %v4213_v6 = vpop.f32.mrb[74].mxu0 }
 0x3bf   :  { %v4036_v23 = vadd.f32 %v4031_v41, %v3802_v31  ;;  %v4214_v63 = vpop.f32.mrb[75].mxu0 }
 0x3c1   :  { %v4157_v34 = vpop.f32.mrb[68].mxu1  ;;  %v4038_v26 = vadd.f32 %v4037_v55, %v4036_v23 }
 0x3c2   :  { %v8458_v1 = vpop.f32.mrb[69].mxu1 }
 0x3c3   :  { %v4160_v32 = vpop.f32.mrb[70].mxu1  ;;  %4040 = vst.msk [vmem:[#allocation3] sm:$0x1] %vm4039_vm0, %v4038_v26 }
 0x3c4   :  { %v8459_v46 = vpop.f32.mrb[71].mxu1  ;;  %v4329_v59 = vpop.f32.mrb[76].mxu0 }
 0x3c5   :  { %v4376_v42 = vadd.f32 %v4329_v59, %v4210_v12  ;;  %v4331_v0 = vpop.f32.mrb[77].mxu0 }
 0x3c6   :  { %v4377_v17 = vadd.f32 %v4331_v0, %v4212_v45  ;;  %v4333_v27 = vpop.f32.mrb[78].mxu0 }
 0x3c7   :  { %v4334_v3 = vpop.f32.mrb[79].mxu0 }
 0x3c9   :  { %v4250_v52 = vpop.f32.mrb[72].mxu1 }
 0x3ca   :  { %v4251_v57 = vadd.f32 %v4250_v52, %v4157_v34  ;;  %v8464_v25 = vpop.f32.mrb[73].mxu1  ;;  %v5121_v52 = vpop.permute.xlu0 %5120 }
 0x3cb   :  { %v4253_v56 = vpop.f32.mrb[74].mxu1 }
 0x3cc   :  { %v8465_v2 = vpop.f32.mrb[75].mxu1  ;;  %v4452_v51 = vpop.f32.mrb[80].mxu0 }
 0x3cd   :  { %v4499_v20 = vadd.f32 %v4452_v51, %v4376_v42  ;;  %v4454_v60 = vpop.f32.mrb[81].mxu0 }
 0x3ce   :  { %v4500_v50 = vadd.f32 %v4454_v60, %v4377_v17  ;;  %v4456_v35 = vpop.f32.mrb[82].mxu0 }
 0x3cf   :  { %v4457_v18 = vpop.f32.mrb[83].mxu0 }
 0x3d1   :  { %v4370_v22 = vpop.f32.mrb[76].mxu1 }
 0x3d2   :  { %v4378_v44 = vadd.f32 %v4370_v22, %v4251_v57  ;;  %v8470_v13 = vpop.f32.mrb[77].mxu1 }
 0x3d3   :  { %v4373_v37 = vpop.f32.mrb[78].mxu1 }
 0x3d4   :  { %v8471_v53 = vpop.f32.mrb[79].mxu1  ;;  %v4575_v11 = vpop.f32.mrb[84].mxu0 }
 0x3d5   :  { %v4622_v36 = vadd.f32 %v4575_v11, %v4499_v20  ;;  %v4577_v14 = vpop.f32.mrb[85].mxu0  ;;  %v8775_v11 = vld [vmem:[%s11016_s3 + $0x80] sm:$0xff]  }
 0x3d6   :  { %v4623_v30 = vadd.f32 %v4577_v14, %v4500_v50  ;;  %v4579_v58 = vpop.f32.mrb[86].mxu0 }
 0x3d7   :  { %v4580_v8 = vpop.f32.mrb[87].mxu0 }
 0x3d8   :  { %v8777_v8 = vld [vmem:[%s11016_s3 + $0x88] sm:$0xff]  }
 0x3d9   :  { %v4493_v38 = vpop.f32.mrb[80].mxu1 }
 0x3da   :  { %v4501_v40 = vadd.f32 %v4493_v38, %v4378_v44  ;;  %v8476_v61 = vpop.f32.mrb[81].mxu1 }
 0x3db   :  { %v4496_v24 = vpop.f32.mrb[82].mxu1 }
 0x3dc   :  { %v8477_v19 = vpop.f32.mrb[83].mxu1  ;;  %v4698_v39 = vpop.f32.mrb[88].mxu0 }
 0x3dd   :  { %v4745_v21 = vadd.f32 %v4698_v39, %v4622_v36  ;;  %v4700_v31 = vpop.f32.mrb[89].mxu0  ;;  %v8780_v39 = vld [vmem:[%s11016_s3 + $0x120] sm:$0xff]  }
 0x3de   :  { %v4746_v43 = vadd.f32 %v4700_v31, %v4623_v30  ;;  %v4702_v5 = vpop.f32.mrb[90].mxu0  ;;  %v8783_v31 = vld [vmem:[%s11016_s3 + $0x168] sm:$0xff]  }
 0x3df   :  { %v4703_v15 = vpop.f32.mrb[91].mxu0  ;;  %v8782_v5 = vld [vmem:[%s11016_s3] sm:$0xff]  }
 0x3e1   :  { %v4616_v62 = vpop.f32.mrb[84].mxu1 }
 0x3e2   :  { %v4624_v47 = vadd.f32 %v4616_v62, %v4501_v40  ;;  %v8482_v54 = vpop.f32.mrb[85].mxu1  ;;  %v8779_v40 = vld [vmem:[%s11016_s3 + $0x160] sm:$0xff]   ;;  %v8785_v62 = vld [vmem:[%s11016_s3 + $0x48] sm:$0xff]  }
 0x3e3   :  { %v4619_v48 = vpop.f32.mrb[86].mxu1  ;;  %v8787_v54 = vld [vmem:[%s11016_s3 + $0x170] sm:$0xff]  }
 0x3e4   :  { %v8483_v33 = vpop.f32.mrb[87].mxu1  ;;  %v4821_v16 = vpop.f32.mrb[92].mxu0  ;;  %v8786_v48 = vld [vmem:[%s11016_s3 + $0x8] sm:$0xff]  }
 0x3e5   :  { %v4868_v7 = vadd.f32 %v4821_v16, %v4745_v21  ;;  %v4823_v4 = vpop.f32.mrb[93].mxu0  ;;  %v8789_v33 = vld [vmem:[%s11016_s3 + $0x50] sm:$0xff]  }
 0x3e6   :  { %v4869_v29 = vadd.f32 %v4823_v4, %v4746_v43  ;;  %v4825_v49 = vpop.f32.mrb[94].mxu0  ;;  %v8788_v16 = vld [vmem:[%s11016_s3 + $0x130] sm:$0xff]  }
 0x3e7   :  { %v4826_v9 = vpop.f32.mrb[95].mxu0  ;;  %v8790_v4 = vld [vmem:[%s11016_s3 + $0x10] sm:$0xff]   ;;  %v8792_v49 = vld [vmem:[%s11016_s3 + $0x138] sm:$0xff]  }
 0x3e8   :  { %v8795_v9 = vld [vmem:[%s11016_s3 + $0x180] sm:$0xff]  }
 0x3e9   :  { %v4739_v41 = vpop.f32.mrb[88].mxu1 }
 0x3ea   :  { %v4747_v12 = vadd.f32 %v4739_v41, %v4624_v47  ;;  %v8488_v10 = vpop.f32.mrb[89].mxu1  ;;  %v8784_v47 = vld [vmem:[%s11016_s3 + $0x128] sm:$0xff]   ;;  %v8794_v41 = vld [vmem:[%s11016_s3 + $0x18] sm:$0xff]  }
 0x3eb   :  { %v4742_v45 = vpop.f32.mrb[90].mxu1  ;;  %v8796_v10 = vld [vmem:[%s11016_s3 + $0x140] sm:$0xff]  }
 0x3ec   :  { %v8489_v6 = vpop.f32.mrb[91].mxu1  ;;  %v4944_v55 = vpop.f32.mrb[96].mxu0  ;;  %v8799_v45 = vld [vmem:[%s11016_s3 + $0x188] sm:$0xff]  }
 0x3ed   :  { %v4991_v23 = vadd.f32 %v4944_v55, %v4868_v7  ;;  %v4946_v63 = vpop.f32.mrb[97].mxu0  ;;  %v8791_v7 = vld [vmem:[%s11016_s3 + $0x178] sm:$0xff]   ;;  %v8798_v6 = vld [vmem:[%s11016_s3 + $0x20] sm:$0xff]   ;;  %v8801_v55 = vld [vmem:[%s11016_s3 + $0x68] sm:$0xff]  }
 0x3ee   :  { %v4992_v34 = vadd.f32 %v4946_v63, %v4869_v29  ;;  %v4948_v26 = vpop.f32.mrb[98].mxu0  ;;  %v8793_v29 = vld [vmem:[%s11016_s3 + $0x58] sm:$0xff]   ;;  %v8803_v63 = vld [vmem:[%s11016_s3 + $0x190] sm:$0xff]  }
 0x3ef   :  { %v4949_v1 = vpop.f32.mrb[99].mxu0  ;;  %v8805_v26 = vld [vmem:[%s11016_s3 + $0x70] sm:$0xff]  }
 0x3f0   :  { %v8804_v1 = vld [vmem:[%s11016_s3 + $0x150] sm:$0xff]  }
 0x3f1   :  { %v4862_v32 = vpop.f32.mrb[92].mxu1 }
 0x3f2   :  { %v4870_v46 = vadd.f32 %v4862_v32, %v4747_v12  ;;  %v8494_v59 = vpop.f32.mrb[93].mxu1  ;;  %v8797_v12 = vld [vmem:[%s11016_s3 + $0x60] sm:$0xff]   ;;  %v8807_v32 = vld [vmem:[%s11016_s3 + $0x198] sm:$0xff]  }
 0x3f3   :  { %v4865_v42 = vpop.f32.mrb[94].mxu1  ;;  %v8809_v59 = vld [vmem:[%s11016_s3 + $0x78] sm:$0xff]  }
 0x3f4   :  { %v8495_v0 = vpop.f32.mrb[95].mxu1  ;;  %v5067_v17 = vpop.f32.mrb[100].mxu0  ;;  %v8808_v42 = vld [vmem:[%s11016_s3 + $0x158] sm:$0xff]  }
 0x3f5   :  { %v5114_v27 = vadd.f32 %v5067_v17, %v4991_v23  ;;  %v5069_v3 = vpop.f32.mrb[101].mxu0  ;;  %v8800_v23 = vld [vmem:[%s11016_s3 + $0x148] sm:$0xff]   ;;  %v8810_v0 = vld [vmem:[%s11016_s3 + $0x38] sm:$0xff]   ;;  %v8811_v17 = vld [vmem:[%s11016_s3 + $0x230] sm:$0xff]  }
 0x3f6   :  { %v5115_v57 = vadd.f32 %v5069_v3, %v4992_v34  ;;  %v5071_v25 = vpop.f32.mrb[102].mxu0  ;;  %v8802_v34 = vld [vmem:[%s11016_s3 + $0x28] sm:$0xff]   ;;  %v8812_v3 = vld [vmem:[%s11016_s3 + $0x1a0] sm:$0xff]  }
 0x3f7   :  { %v5123_v56 = vadd.f32 %v5121_v52, %v5114_v27  ;;  %v5072_v2 = vpop.f32.mrb[103].mxu0  ;;  %v8814_v25 = vld [vmem:[%s11016_s3 + $0x1a8] sm:$0xff]  }
 0x3f8   :  { %v5124_v51 = vadd.f32 %v5121_v52, %v5115_v57  ;;  %v8815_v57 = vld [vmem:[%s11016_s3 + $0x280] sm:$0xff]  }
 0x3f9   :  { %v5126_v20 = vmax.f32 %v5123_v56, 0.0  ;;  %v4985_v60 = vpop.f32.mrb[96].mxu1  ;;  %v8817_v56 = vld [vmem:[%s11016_s3 + $0x1f0] sm:$0xff]   ;;  %v8816_v2 = vld [vmem:[%s11016_s3 + $0x240] sm:$0xff]  }
 0x3fa   :  { %v5127_v50 = vmax.f32 %v5124_v51, 0.0  ;;  %v4993_v35 = vadd.f32 %v4985_v60, %v4870_v46  ;;  %v8500_v18 = vpop.f32.mrb[97].mxu1  ;;  %v8806_v46 = vld [vmem:[%s11016_s3 + $0x30] sm:$0xff]  }
 0x3fb   :  { %v10548_v22 = vpack.c.bf16 %v5126_v20, %v5126_v20  ;;  %v4988_v44 = vpop.f32.mrb[98].mxu1  ;;  %v8819_v20 = vld [vmem:[%s11016_s3 + $0x288] sm:$0xff]   ;;  %v8821_v18 = vld [vmem:[%s11016_s3 + $0x1f8] sm:$0xff]  }
 0x3fc   :  { %v10550_v13 = vpack.c.bf16 %v5127_v50, %v5127_v50  ;;  %v8501_v37 = vpop.f32.mrb[99].mxu1  ;;  %v8818_v50 = vld [vmem:[%s11016_s3 + $0x1b0] sm:$0xff]  }
 0x3fd   :  { %v10559_v36 = vshrl.u32 %v10548_v22, 16  ;;  %v5635_v27 = vrot.slane %v10548_v22, 1  ;;  %v8820_v37 = vld [vmem:[%s11016_s3 + $0x248] sm:$0xff]  }
 0x3fe   :  { %v10553_v53 = vshrl.u32 %v10550_v13, 16  ;;  %v5636_v43 = vrot.slane %v10550_v13, 1  ;;  %v6102_v60 = vrot.slane %v10550_v13, 2 }
 0x400   :  { %5358 = vmatprep.mubr.bf16.mxu0 %v10553_v53  ;;  %v5869_v44 = vrot.slane %v10553_v53, 1 }
 0x401   :  { %v5108_v14 = vpop.f32.mrb[100].mxu1  ;;  %5359 = vmatmul.mubr.bf16.vlgmr.msra.gmra.mrb[104].mxu0 %v10559_v36 }
 0x402   :  { %v5116_v30 = vadd.f32 %v5108_v14, %v4993_v35  ;;  %v8506_v58 = vpop.f32.mrb[101].mxu1  ;;  %8517 = vmatpush3.bf16.msra.mxu0 %v8775_v11  ;;  %8520 = vmatprep.mubr.msk.bf16.mxu0 %vm8946_vm5, %v8945_v28  ;;  %v8823_v11 = vld [vmem:[%s11016_s3 + $0x290] sm:$0xff]   ;;  %v8822_v14 = vld [vmem:[%s11016_s3 + $0x1b8] sm:$0xff]  }
 0x403   :  { %v5111_v38 = vpop.f32.mrb[102].mxu1  ;;  %8518 = vmatprep.subr.bf16.mxu0 %v8945_v28  ;;  %v8824_v58 = vld [vmem:[%s11016_s3 + $0x250] sm:$0xff]  }
 0x404   :  { %v5125_v61 = vadd.f32 %v5121_v52, %v5116_v30  ;;  %v8507_v24 = vpop.f32.mrb[103].mxu1  ;;  %v8813_v52 = vld [vmem:[%s11016_s3 + $0x238] sm:$0xff]   ;;  %v8825_v30 = vld [vmem:[%s11016_s3 + $0x200] sm:$0xff]  }
 0x405   :  { %v8826_v38 = vld [vmem:[%s11016_s3 + $0x1c0] sm:$0xff]  }
 0x406   :  { %v5128_v19 = vmax.f32 %v5125_v61, 0.0  ;;  %8519 = vmatpush3.bf16.msra.mxu0 %v8777_v8  ;;  %v8827_v8 = vld [vmem:[%s11016_s3 + $0x298] sm:$0xff]   ;;  %v8831_v24 = vld [vmem:[%s11016_s3 + $0x2a0] sm:$0xff]  }
 0x407   :  { %8186 = vmatprep.subr.bf16.mxu0 %v8779_v40  ;;  %v8829_v40 = vld [vmem:[%s11016_s3 + $0x208] sm:$0xff]   ;;  %v8828_v61 = vld [vmem:[%s11016_s3 + $0x258] sm:$0xff]  }
 0x408   :  { %v10575_v21 = vpack.c.bf16 %v5128_v19, %v5128_v19  ;;  %v8830_v19 = vld [vmem:[%s11016_s3 + $0x1c8] sm:$0xff]  }
 0x40a   :  { %8521 = vmatmul.mubr.msk.bf16.vlgmr.msra.gmra.mrb[108].mxu0 %vm2356_vm3, %v10575_v21  ;;  %v10587_v15 = vshrl.u32 %v10575_v21, 16  ;;  %v5637_v35 = vrot.slane %v10575_v21, 1 }
 0x40b   :  { %8187 = vmatpush3.bf16.msra.mxu0 %v8780_v39  ;;  %5783 = vmatprep.mubr.bf16.mxu0 %v5636_v43  ;;  %v8833_v39 = vld [vmem:[%s11016_s3 + $0x210] sm:$0xff]   ;;  %v8835_v43 = vld [vmem:[%s11016_s3 + $0x2a8] sm:$0xff]  }
 0x40c   :  { %8513 = vmatmul.mubr.msk.bf16.vlgmr.msra.gmra.mrb[104].mxu1 %vm2356_vm3, %v10587_v15  ;;  %8188 = vmatprep.subr.bf16.mxu0 %v8783_v31  ;;  %v5870_v51 = vrot.slane %v10587_v15, 1  ;;  %v8832_v31 = vld [vmem:[%s11016_s3 + $0x260] sm:$0xff]  }
 0x40d   :  { %8162 = vmatpush3.bf16.msra.mxu1 %v8782_v5  ;;  %5548 = vmatprep.mubr.bf16.mxu1 %v10550_v13  ;;  %v8834_v5 = vld [vmem:[%s11016_s3 + $0x1d0] sm:$0xff]  }
 0x40e   :  { %8163 = vmatprep.subr.bf16.mxu1 %v8785_v62  ;;  %v8837_v62 = vld [vmem:[%s11016_s3 + $0x218] sm:$0xff]  }
 0x40f   :  { %8189 = vmatpush3.bf16.msra.mxu0 %v8784_v47  ;;  %v8836_v47 = vld [vmem:[%s11016_s3 + $0x268] sm:$0xff]  }
 0x410   :  { %8190 = vmatprep.subr.bf16.mxu0 %v8787_v54  ;;  %v8839_v54 = vld [vmem:[%s11016_s3 + $0x2b0] sm:$0xff]  }
 0x411   :  { %8164 = vmatpush3.bf16.msra.mxu1 %v8786_v48  ;;  %v8838_v48 = vld [vmem:[%s11016_s3 + $0x1d8] sm:$0xff]  }
 0x412   :  { %8165 = vmatprep.subr.bf16.mxu1 %v8789_v33  ;;  %v8841_v33 = vld [vmem:[%s11016_s3 + $0x220] sm:$0xff]  }
 0x413   :  { %8191 = vmatpush3.bf16.msra.mxu0 %v8788_v16  ;;  %v8840_v16 = vld [vmem:[%s11016_s3 + $0x270] sm:$0xff]  }
 0x414   :  { %8192 = vmatprep.subr.bf16.mxu0 %v8791_v7  ;;  %v8843_v7 = vld [vmem:[%s11016_s3 + $0x2b8] sm:$0xff]  }
 0x415   :  { %8166 = vmatpush3.bf16.msra.mxu1 %v8790_v4  ;;  %v8842_v4 = vld [vmem:[%s11016_s3 + $0x1e0] sm:$0xff]  }
 0x416   :  { %8167 = vmatprep.subr.bf16.mxu1 %v8793_v29  ;;  %v8845_v29 = vld [vmem:[%s11016_s3 + $0x228] sm:$0xff]  }
 0x417   :  { %8193 = vmatpush3.bf16.msra.mxu0 %v8792_v49  ;;  %v8844_v49 = vld [vmem:[%s11016_s3 + $0x278] sm:$0xff]  }
 0x418   :  { %8194 = vmatprep.subr.bf16.mxu0 %v8795_v9  ;;  %v8846_v9 = vld [vmem:[%s11016_s3 + $0x1e8] sm:$0xff]  }
 0x419   :  { %8168 = vmatpush3.bf16.msra.mxu1 %v8794_v41  ;;  %v8847_v41 = vld [vmem:[%s11016_s3 + $0x350] sm:$0xff]  }
 0x41a   :  { %8169 = vmatprep.subr.bf16.mxu1 %v8797_v12  ;;  %v6101_v12 = vrot.slane %v10548_v22, 2 }
 0x41b   :  { %8195 = vmatpush3.bf16.msra.mxu0 %v8796_v10  ;;  %v8848_v10 = vld [vmem:[%s11016_s3 + $0x2c0] sm:$0xff]  }
 0x41c   :  { %8196 = vmatprep.subr.bf16.mxu0 %v8799_v45  ;;  %v5868_v45 = vrot.slane %v10559_v36, 1 }
 0x41d   :  { %8170 = vmatpush3.bf16.msra.mxu1 %v8798_v6  ;;  %v8849_v6 = vld [vmem:[%s11016_s3 + $0x358] sm:$0xff]  }
 0x41e   :  { %8171 = vmatprep.subr.bf16.mxu1 %v8801_v55  ;;  %v8851_v55 = vld [vmem:[%s11016_s3 + $0x3a0] sm:$0xff]  }
 0x41f   :  { %8197 = vmatpush3.bf16.msra.mxu0 %v8800_v23  ;;  %v8850_v23 = vld [vmem:[%s11016_s3 + $0x2c8] sm:$0xff]  }
 0x420   :  { %8198 = vmatprep.subr.bf16.mxu0 %v8803_v63  ;;  %v8853_v63 = vld [vmem:[%s11016_s3 + $0x310] sm:$0xff]  }
 0x421   :  { %8172 = vmatpush3.bf16.msra.mxu1 %v8802_v34  ;;  %v8852_v34 = vld [vmem:[%s11016_s3 + $0x360] sm:$0xff]  }
 0x422   :  { %8173 = vmatprep.subr.bf16.mxu1 %v8805_v26  ;;  %v6336_v26 = vrot.slane %v10587_v15, 2 }
 0x423   :  { %8199 = vmatpush3.bf16.msra.mxu0 %v8804_v1  ;;  %v8855_v1 = vld [vmem:[%s11016_s3 + $0x3a8] sm:$0xff]  }
 0x424   :  { %8200 = vmatprep.subr.bf16.mxu0 %v8807_v32  ;;  %v6568_v32 = vrot.slane %v10550_v13, 3  ;;  %v8856_v13 = vld [vmem:[%s11016_s3 + $0x368] sm:$0xff]  }
 0x425   :  { %8174 = vmatpush3.bf16.msra.mxu1 %v8806_v46  ;;  %v8854_v46 = vld [vmem:[%s11016_s3 + $0x2d0] sm:$0xff]  }
 0x426   :  { %8175 = vmatprep.subr.bf16.mxu1 %v8809_v59  ;;  %v6103_v59 = vrot.slane %v10575_v21, 2 }
 0x427   :  { %8201 = vmatpush3.bf16.msra.mxu0 %v8808_v42  ;;  %v8857_v42 = vld [vmem:[%s11016_s3 + $0x318] sm:$0xff]  }
 0x428   :  { %8532 = vmatprep.subr.bf16.mxu0 %v8945_v28 }
 0x429   :  { %8176 = vmatpush3.bf16.msra.mxu1 %v8810_v0  ;;  %v6335_v0 = vrot.slane %v10553_v53, 2 }
 0x42a   :  { %5784 = vmatmul.mubr.bf16.vlgmr.msra.gmra.mrb[112].mxu0 %v5635_v27  ;;  %8524 = vmatprep.subr.bf16.mxu1 %v8945_v28  ;;  %v8858_v27 = vld [vmem:[%s11016_s3 + $0x2d8] sm:$0xff]  }
 0x42b   :  { %8533 = vmatpush3.bf16.msra.mxu0 %v8811_v17  ;;  %8536 = vmatprep.mubr.msk.bf16.mxu0 %vm8946_vm5, %v8945_v28  ;;  %v8859_v17 = vld [vmem:[%s11016_s3 + $0x3b0] sm:$0xff]  }
 0x42c   :  { %5549 = vmatmul.mubr.bf16.vlgmr.msra.gmra.mrb[108].mxu1 %v10548_v22  ;;  %8534 = vmatprep.subr.bf16.mxu0 %v8945_v28 }
 0x42d   :  { %8525 = vmatpush3.bf16.msra.mxu1 %v8812_v3  ;;  %8528 = vmatprep.mubr.msk.bf16.mxu1 %vm8946_vm5, %v8945_v28  ;;  %v8861_v3 = vld [vmem:[%s11016_s3 + $0x320] sm:$0xff]  }
 0x42e   :  { %8526 = vmatprep.subr.bf16.mxu1 %v8945_v28 }
 0x42f   :  { %8535 = vmatpush3.bf16.msra.mxu0 %v8813_v52  ;;  %v8860_v52 = vld [vmem:[%s11016_s3 + $0x370] sm:$0xff]  }
 0x430   :  { %8236 = vmatprep.subr.bf16.mxu0 %v8815_v57  ;;  %v8863_v57 = vld [vmem:[%s11016_s3 + $0x3b8] sm:$0xff]  }
 0x431   :  { %8527 = vmatpush3.bf16.msra.mxu1 %v8814_v25  ;;  %v8862_v25 = vld [vmem:[%s11016_s3 + $0x2e0] sm:$0xff]  }
 0x432   :  { %8537 = vmatmul.mubr.msk.bf16.vlgmr.msra.gmra.mrb[116].mxu0 %vm2356_vm3, %v5870_v51  ;;  %8211 = vmatprep.subr.bf16.mxu1 %v8817_v56  ;;  %v8865_v56 = vld [vmem:[%s11016_s3 + $0x328] sm:$0xff]   ;;  %v8867_v51 = vld [vmem:[%s11016_s3 + $0x3c0] sm:$0xff]  }
 0x433   :  { %8237 = vmatpush3.bf16.msra.mxu0 %v8816_v2  ;;  %6249 = vmatprep.mubr.bf16.mxu0 %v6102_v60  ;;  %v8864_v2 = vld [vmem:[%s11016_s3 + $0x378] sm:$0xff]   ;;  %v8869_v60 = vld [vmem:[%s11016_s3 + $0x330] sm:$0xff]  }
 0x434   :  { %8529 = vmatmul.mubr.msk.bf16.vlgmr.msra.gmra.mrb[112].mxu1 %vm2356_vm3, %v5637_v35  ;;  %8238 = vmatprep.subr.bf16.mxu0 %v8819_v20  ;;  %v8866_v20 = vld [vmem:[%s11016_s3 + $0x2e8] sm:$0xff]  }
 0x435   :  { %8212 = vmatpush3.bf16.msra.mxu1 %v8818_v50  ;;  %6016 = vmatprep.mubr.bf16.mxu1 %v5869_v44  ;;  %v8868_v50 = vld [vmem:[%s11016_s3 + $0x380] sm:$0xff]   ;;  %v8871_v35 = vld [vmem:[%s11016_s3 + $0x3c8] sm:$0xff]   ;;  %v8873_v44 = vld [vmem:[%s11016_s3 + $0x338] sm:$0xff]  }
 0x436   :  { %8213 = vmatprep.subr.bf16.mxu1 %v8821_v18  ;;  %v8870_v18 = vld [vmem:[%s11016_s3 + $0x2f0] sm:$0xff]  }
 0x437   :  { %8239 = vmatpush3.bf16.msra.mxu0 %v8820_v37  ;;  %v8872_v37 = vld [vmem:[%s11016_s3 + $0x388] sm:$0xff]  }
 0x438   :  { %8240 = vmatprep.subr.bf16.mxu0 %v8823_v11  ;;  %v8875_v11 = vld [vmem:[%s11016_s3 + $0x3d0] sm:$0xff]  }
 0x439   :  { %8214 = vmatpush3.bf16.msra.mxu1 %v8822_v14  ;;  %v8874_v14 = vld [vmem:[%s11016_s3 + $0x2f8] sm:$0xff]  }
 0x43a   :  { %8215 = vmatprep.subr.bf16.mxu1 %v8825_v30  ;;  %v8877_v30 = vld [vmem:[%s11016_s3 + $0x340] sm:$0xff]  }
 0x43b   :  { %8241 = vmatpush3.bf16.msra.mxu0 %v8824_v58  ;;  %v8876_v58 = vld [vmem:[%s11016_s3 + $0x390] sm:$0xff]  }
 0x43c   :  { %8242 = vmatprep.subr.bf16.mxu0 %v8827_v8  ;;  %v8879_v8 = vld [vmem:[%s11016_s3 + $0x3d8] sm:$0xff]  }
 0x43d   :  { %8216 = vmatpush3.bf16.msra.mxu1 %v8826_v38  ;;  %v8878_v38 = vld [vmem:[%s11016_s3 + $0x300] sm:$0xff]  }
 0x43e   :  { %8217 = vmatprep.subr.bf16.mxu1 %v8829_v40  ;;  %v8881_v40 = vld [vmem:[%s11016_s3 + $0x348] sm:$0xff]  }
 0x43f   :  { %8243 = vmatpush3.bf16.msra.mxu0 %v8828_v61  ;;  %v8880_v61 = vld [vmem:[%s11016_s3 + $0x398] sm:$0xff]  }
 0x440   :  { %8244 = vmatprep.subr.bf16.mxu0 %v8831_v24  ;;  %v8882_v24 = vld [vmem:[%s11016_s3 + $0x308] sm:$0xff]  }
 0x441   :  { %8218 = vmatpush3.bf16.msra.mxu1 %v8830_v19  ;;  %v8883_v19 = vld [vmem:[%s11016_s3 + $0x470] sm:$0xff]  }
 0x442   :  { %8219 = vmatprep.subr.bf16.mxu1 %v8833_v39  ;;  %v6567_v39 = vrot.slane %v10548_v22, 3  ;;  %v8886_v22 = vld [vmem:[%s11016_s3 + $0x3e8] sm:$0xff]  }
 0x443   :  { %8245 = vmatpush3.bf16.msra.mxu0 %v8832_v31  ;;  %v8884_v31 = vld [vmem:[%s11016_s3 + $0x3e0] sm:$0xff]  }
 0x444   :  { %8246 = vmatprep.subr.bf16.mxu0 %v8835_v43  ;;  %v6334_v43 = vrot.slane %v10559_v36, 2 }
 0x445   :  { %8220 = vmatpush3.bf16.msra.mxu1 %v8834_v5  ;;  %v8885_v5 = vld [vmem:[%s11016_s3 + $0x478] sm:$0xff]  }
 0x446   :  { %8221 = vmatprep.subr.bf16.mxu1 %v8837_v62  ;;  %v8887_v62 = vld [vmem:[%s11016_s3 + $0x430] sm:$0xff]  }
 0x447   :  { %8247 = vmatpush3.bf16.msra.mxu0 %v8836_v47  ;;  %v6802_v47 = vrot.slane %v10587_v15, 3  ;;  %v8890_v15 = vld [vmem:[%s11016_s3 + $0x3f8] sm:$0xff]  }
 0x448   :  { %8248 = vmatprep.subr.bf16.mxu0 %v8839_v54  ;;  %v8888_v54 = vld [vmem:[%s11016_s3 + $0x3f0] sm:$0xff]  }
 0x449   :  { %8222 = vmatpush3.bf16.msra.mxu1 %v8838_v48  ;;  %v6569_v48 = vrot.slane %v10575_v21, 3  ;;  %v8891_v21 = vld [vmem:[%s11016_s3 + $0x440] sm:$0xff]  }
 0x44a   :  { %8223 = vmatprep.subr.bf16.mxu1 %v8841_v33  ;;  %v6801_v33 = vrot.slane %v10553_v53, 3  ;;  %v8893_v53 = vld [vmem:[%s11016_s3 + $0x448] sm:$0xff]  }
 0x44b   :  { %8249 = vmatpush3.bf16.msra.mxu0 %v8840_v16  ;;  %v8892_v16 = vld [vmem:[%s11016_s3 + $0x400] sm:$0xff]  }
 0x44c   :  { %8250 = vmatprep.subr.bf16.mxu0 %v8843_v7  ;;  %v8894_v7 = vld [vmem:[%s11016_s3 + $0x408] sm:$0xff]  }
 0x44d   :  { %8224 = vmatpush3.bf16.msra.mxu1 %v8842_v4  ;;  %v8895_v4 = vld [vmem:[%s11016_s3 + $0x450] sm:$0xff]  }
 0x44e   :  { %8225 = vmatprep.subr.bf16.mxu1 %v8845_v29  ;;  %v8896_v29 = vld [vmem:[%s11016_s3 + $0x410] sm:$0xff]  }
 0x44f   :  { %8251 = vmatpush3.bf16.msra.mxu0 %v8844_v49  ;;  %v8897_v49 = vld [vmem:[%s11016_s3 + $0x458] sm:$0xff]  }
 0x450   :  { %8548 = vmatprep.subr.bf16.mxu0 %v8945_v28 }
 0x451   :  { %8226 = vmatpush3.bf16.msra.mxu1 %v8846_v9  ;;  %v8898_v9 = vld [vmem:[%s11016_s3 + $0x418] sm:$0xff]  }
 0x452   :  { %6250 = vmatmul.mubr.bf16.vlgmr.msra.gmra.mrb[120].mxu0 %v6101_v12  ;;  %8540 = vmatprep.subr.bf16.mxu1 %v8945_v28  ;;  %v8900_v12 = vld [vmem:[%s11016_s3 + $0x420] sm:$0xff]  }
 0x453   :  { %8549 = vmatpush3.bf16.msra.mxu0 %v8847_v41  ;;  %8552 = vmatprep.mubr.msk.bf16.mxu0 %vm8946_vm5, %v8945_v28  ;;  %v8899_v41 = vld [vmem:[%s11016_s3 + $0x460] sm:$0xff]  }
 0x454   :  { %6017 = vmatmul.mubr.bf16.vlgmr.msra.gmra.mrb[116].mxu1 %v5868_v45  ;;  %8550 = vmatprep.subr.bf16.mxu0 %v8945_v28  ;;  %v8902_v45 = vld [vmem:[%s11016_s3 + $0x428] sm:$0xff]  }
 0x455   :  { %8541 = vmatpush3.bf16.msra.mxu1 %v8848_v10  ;;  %8544 = vmatprep.mubr.msk.bf16.mxu1 %vm8946_vm5, %v8945_v28  ;;  %v8901_v10 = vld [vmem:[%s11016_s3 + $0x468] sm:$0xff]  }
 0x456   :  { %8542 = vmatprep.subr.bf16.mxu1 %v8945_v28 }
 0x457   :  { %8551 = vmatpush3.bf16.msra.mxu0 %v8849_v6  ;;  %v6800_v6 = vrot.slane %v10559_v36, 3 }
 0x458   :  { %8286 = vmatprep.subr.bf16.mxu0 %v8851_v55 }
 0x459   :  { %8543 = vmatpush3.bf16.msra.mxu1 %v8850_v23 }
 0x45a   :  { %8553 = vmatmul.mubr.msk.bf16.vlgmr.msra.gmra.mrb[124].mxu0 %vm2356_vm3, %v6336_v26  ;;  %8261 = vmatprep.subr.bf16.mxu1 %v8853_v63 }
 0x45b   :  { %8287 = vmatpush3.bf16.msra.mxu0 %v8852_v34  ;;  %6715 = vmatprep.mubr.bf16.mxu0 %v6568_v32 }
 0x45c   :  { %8545 = vmatmul.mubr.msk.bf16.vlgmr.msra.gmra.mrb[120].mxu1 %vm2356_vm3, %v6103_v59  ;;  %8288 = vmatprep.subr.bf16.mxu0 %v8855_v1 }
 0x45d   :  { %8262 = vmatpush3.bf16.msra.mxu1 %v8854_v46  ;;  %6482 = vmatprep.mubr.bf16.mxu1 %v6335_v0 }
 0x45e   :  { %8263 = vmatprep.subr.bf16.mxu1 %v8857_v42 }
 0x45f   :  { %8289 = vmatpush3.bf16.msra.mxu0 %v8856_v13 }
 0x460   :  { %8290 = vmatprep.subr.bf16.mxu0 %v8859_v17 }
 0x461   :  { %8264 = vmatpush3.bf16.msra.mxu1 %v8858_v27 }
 0x462   :  { %8265 = vmatprep.subr.bf16.mxu1 %v8861_v3 }
 0x463   :  { %8291 = vmatpush3.bf16.msra.mxu0 %v8860_v52 }
 0x464   :  { %8292 = vmatprep.subr.bf16.mxu0 %v8863_v57 }
 0x465   :  { %8266 = vmatpush3.bf16.msra.mxu1 %v8862_v25 }
 0x466   :  { %8267 = vmatprep.subr.bf16.mxu1 %v8865_v56 }
 0x467   :  { %8293 = vmatpush3.bf16.msra.mxu0 %v8864_v2 }
 0x468   :  { %8294 = vmatprep.subr.bf16.mxu0 %v8867_v51 }
 0x469   :  { %8268 = vmatpush3.bf16.msra.mxu1 %v8866_v20 }
 0x46a   :  { %8269 = vmatprep.subr.bf16.mxu1 %v8869_v60 }
 0x46b   :  { %8295 = vmatpush3.bf16.msra.mxu0 %v8868_v50 }
 0x46c   :  { %8296 = vmatprep.subr.bf16.mxu0 %v8871_v35 }
 0x46d   :  { %8270 = vmatpush3.bf16.msra.mxu1 %v8870_v18 }
 0x46e   :  { %8271 = vmatprep.subr.bf16.mxu1 %v8873_v44 }
 0x46f   :  { %8297 = vmatpush3.bf16.msra.mxu0 %v8872_v37 }
 0x470   :  { %8298 = vmatprep.subr.bf16.mxu0 %v8875_v11 }
 0x471   :  { %8272 = vmatpush3.bf16.msra.mxu1 %v8874_v14 }
 0x472   :  { %8273 = vmatprep.subr.bf16.mxu1 %v8877_v30 }
 0x473   :  { %8299 = vmatpush3.bf16.msra.mxu0 %v8876_v58 }
 0x474   :  { %8300 = vmatprep.subr.bf16.mxu0 %v8879_v8 }
 0x475   :  { %8274 = vmatpush3.bf16.msra.mxu1 %v8878_v38 }
 0x476   :  { %8275 = vmatprep.subr.bf16.mxu1 %v8881_v40 }
 0x477   :  { %8301 = vmatpush3.bf16.msra.mxu0 %v8880_v61 }
 0x478   :  { %8564 = vmatprep.subr.bf16.mxu0 %v8945_v28 }
 0x479   :  { %8276 = vmatpush3.bf16.msra.mxu1 %v8882_v24 }
 0x47a   :  { %6716 = vmatmul.mubr.bf16.vlgmr.msra.gmra.mrb[128].mxu0 %v6567_v39  ;;  %8556 = vmatprep.subr.bf16.mxu1 %v8945_v28 }
 0x47b   :  { %8565 = vmatpush3.bf16.msra.mxu0 %v8883_v19  ;;  %8568 = vmatprep.mubr.msk.bf16.mxu0 %vm8946_vm5, %v8945_v28 }
 0x47c   :  { %6483 = vmatmul.mubr.bf16.vlgmr.msra.gmra.mrb[124].mxu1 %v6334_v43  ;;  %8566 = vmatprep.subr.bf16.mxu0 %v8945_v28 }
 0x47d   :  { %8557 = vmatpush3.bf16.msra.mxu1 %v8884_v31  ;;  %8560 = vmatprep.mubr.msk.bf16.mxu1 %vm8946_vm5, %v8945_v28 }
 0x47e   :  { %8558 = vmatprep.subr.bf16.mxu1 %v8945_v28  ;;  %v8889_v28 = vld [vmem:[%s11016_s3 + $0x438] sm:$0xff]  }
 0x47f   :  { %8567 = vmatpush3.bf16.msra.mxu0 %v8885_v5 }
 0x481   :  { %8559 = vmatpush3.bf16.msra.mxu1 %v8886_v22 }
 0x482   :  { %8569 = vmatmul.mubr.msk.bf16.vlgmr.msra.gmra.mrb[132].mxu0 %vm2356_vm3, %v6802_v47  ;;  %8311 = vmatprep.subr.bf16.mxu1 %v8887_v62 }
 0x484   :  { %8561 = vmatmul.mubr.msk.bf16.vlgmr.msra.gmra.mrb[128].mxu1 %vm2356_vm3, %v6569_v48 }
 0x485   :  { %8312 = vmatpush3.bf16.msra.mxu1 %v8888_v54  ;;  %6948 = vmatprep.mubr.bf16.mxu1 %v6801_v33 }
 0x486   :  { %8313 = vmatprep.subr.bf16.mxu1 %v8889_v28 }
 0x489   :  { %8314 = vmatpush3.bf16.msra.mxu1 %v8890_v15 }
 0x48a   :  { %8315 = vmatprep.subr.bf16.mxu1 %v8891_v21 }
 0x48d   :  { %8316 = vmatpush3.bf16.msra.mxu1 %v8892_v16 }
 0x48e   :  { %8317 = vmatprep.subr.bf16.mxu1 %v8893_v53 }
 0x491   :  { %8318 = vmatpush3.bf16.msra.mxu1 %v8894_v7 }
 0x492   :  { %8319 = vmatprep.subr.bf16.mxu1 %v8895_v4 }
 0x495   :  { %8320 = vmatpush3.bf16.msra.mxu1 %v8896_v29 }
 0x496   :  { %8321 = vmatprep.subr.bf16.mxu1 %v8897_v49 }
 0x499   :  { %8322 = vmatpush3.bf16.msra.mxu1 %v8898_v9 }
 0x49a   :  { %8323 = vmatprep.subr.bf16.mxu1 %v8899_v41 }
 0x49d   :  { %8324 = vmatpush3.bf16.msra.mxu1 %v8900_v12 }
 0x49e   :  { %8325 = vmatprep.subr.bf16.mxu1 %v8901_v10 }
 0x4a1   :  { %8326 = vmatpush3.bf16.msra.mxu1 %v8902_v45 }
 0x4a4   :  { %6949 = vmatmul.mubr.bf16.vlgmr.msra.gmra.mrb[132].mxu1 %v6800_v6 }
 0x4d4   :  { %v8152_v55 = vpop.f32.mrb[104].mxu0 }
 0x4d5   :  { %v8153_v23 = vpop.f32.mrb[105].mxu0 }
 0x4d6   :  { %v8154_v63 = vadd.f32 %v8153_v23, %v8152_v55  ;;  %v8155_v34 = vpop.f32.mrb[106].mxu0 }
 0x4d7   :  { %v8156_v26 = vpop.f32.mrb[107].mxu0 }
 0x4dd   :  { %v5590_v1 = vpop.f32.mrb[108].mxu0 }
 0x4de   :  { %v8522_v32 = vpop.f32.mrb[109].mxu0 }
 0x4df   :  { %v5400_v46 = vpop.f32.mrb[104].mxu1  ;;  %v5593_v59 = vpop.f32.mrb[110].mxu0 }
 0x4e0   :  { %v5401_v42 = vadd.f32 %v8154_v63, %v5400_v46  ;;  %v8514_v0 = vpop.f32.mrb[105].mxu1  ;;  %v8523_v13 = vpop.f32.mrb[111].mxu0 }
 0x4e1   :  { %v5403_v17 = vpop.f32.mrb[106].mxu1 }
 0x4e2   :  { %v8515_v27 = vpop.f32.mrb[107].mxu1 }
 0x4fd   :  { %v8202_v3 = vpop.f32.mrb[112].mxu0 }
 0x4fe   :  { %v8203_v52 = vpop.f32.mrb[113].mxu0 }
 0x4ff   :  { %v8204_v57 = vadd.f32 %v8203_v52, %v8202_v3  ;;  %v8177_v25 = vpop.f32.mrb[108].mxu1  ;;  %v8205_v36 = vpop.f32.mrb[114].mxu0 }
 0x500   :  { %v8178_v56 = vpop.f32.mrb[109].mxu1  ;;  %v8206_v2 = vpop.f32.mrb[115].mxu0 }
 0x501   :  { %v8179_v51 = vadd.f32 %v8178_v56, %v8177_v25  ;;  %v8180_v20 = vpop.f32.mrb[110].mxu1 }
 0x502   :  { %v8181_v60 = vpop.f32.mrb[111].mxu1  ;;  %v6997_v20 = vld [vmem:[%s11017_s4] sm:$0x1] }
 0x503   :  { %v5551_v50 = vadd.f32 %v8179_v51, %v5401_v42 }
 0x505   :  { %v6058_v35 = vpop.f32.mrb[116].mxu0  ;;  %v5591_v18 = vadd.f32 %v5590_v1, %v5551_v50 }
 0x506   :  { %v8538_v44 = vpop.f32.mrb[117].mxu0 }
 0x507   :  { %v5825_v37 = vpop.f32.mrb[112].mxu1  ;;  %v6061_v11 = vpop.f32.mrb[118].mxu0 }
 0x508   :  { %v5826_v14 = vadd.f32 %v8204_v57, %v5825_v37  ;;  %v8530_v30 = vpop.f32.mrb[113].mxu1  ;;  %v8539_v58 = vpop.f32.mrb[119].mxu0 }
 0x509   :  { %v5828_v8 = vpop.f32.mrb[114].mxu1 }
 0x50a   :  { %v5831_v38 = vadd.f32 %v5826_v14, %v5591_v18  ;;  %v8531_v40 = vpop.f32.mrb[115].mxu1 }
 0x525   :  { %v8252_v61 = vpop.f32.mrb[120].mxu0 }
 0x526   :  { %v8253_v24 = vpop.f32.mrb[121].mxu0 }
 0x527   :  { %v8254_v19 = vadd.f32 %v8253_v24, %v8252_v61  ;;  %v8227_v39 = vpop.f32.mrb[116].mxu1  ;;  %v8255_v31 = vpop.f32.mrb[122].mxu0 }
 0x528   :  { %v8228_v43 = vpop.f32.mrb[117].mxu1  ;;  %v8256_v5 = vpop.f32.mrb[123].mxu0 }
 0x529   :  { %v8229_v22 = vadd.f32 %v8228_v43, %v8227_v39  ;;  %v8230_v62 = vpop.f32.mrb[118].mxu1 }
 0x52a   :  { %v8231_v47 = vpop.f32.mrb[119].mxu1 }
 0x52b   :  { %v6059_v54 = vadd.f32 %v8229_v22, %v6058_v35 }
 0x52d   :  { %v6524_v48 = vpop.f32.mrb[124].mxu0  ;;  %v6064_v28 = vadd.f32 %v6059_v54, %v5831_v38 }
 0x52e   :  { %v8554_v33 = vpop.f32.mrb[125].mxu0 }
 0x52f   :  { %v6291_v15 = vpop.f32.mrb[120].mxu1  ;;  %v6527_v21 = vpop.f32.mrb[126].mxu0 }
 0x530   :  { %v6292_v16 = vadd.f32 %v8254_v19, %v6291_v15  ;;  %v8546_v53 = vpop.f32.mrb[121].mxu1  ;;  %v8555_v7 = vpop.f32.mrb[127].mxu0 }
 0x531   :  { %v6294_v4 = vpop.f32.mrb[122].mxu1 }
 0x532   :  { %v6297_v29 = vadd.f32 %v6292_v16, %v6064_v28  ;;  %v8547_v49 = vpop.f32.mrb[123].mxu1 }
 0x54d   :  { %v8302_v9 = vpop.f32.mrb[128].mxu0 }
 0x54e   :  { %v8303_v41 = vpop.f32.mrb[129].mxu0 }
 0x54f   :  { %v8304_v12 = vadd.f32 %v8303_v41, %v8302_v9  ;;  %v8277_v10 = vpop.f32.mrb[124].mxu1  ;;  %v8305_v45 = vpop.f32.mrb[130].mxu0 }
 0x550   :  { %v8278_v6 = vpop.f32.mrb[125].mxu1  ;;  %v8306_v55 = vpop.f32.mrb[131].mxu0 }
 0x551   :  { %v8279_v23 = vadd.f32 %v8278_v6, %v8277_v10  ;;  %v8280_v63 = vpop.f32.mrb[126].mxu1 }
 0x552   :  { %v8281_v34 = vpop.f32.mrb[127].mxu1 }
 0x553   :  { %v6525_v26 = vadd.f32 %v8279_v23, %v6524_v48 }
 0x555   :  { %v6990_v1 = vpop.f32.mrb[132].mxu0  ;;  %v6530_v32 = vadd.f32 %v6525_v26, %v6297_v29 }
 0x556   :  { %v8570_v46 = vpop.f32.mrb[133].mxu0 }
 0x557   :  { %v6757_v59 = vpop.f32.mrb[128].mxu1  ;;  %v6993_v42 = vpop.f32.mrb[134].mxu0 }
 0x558   :  { %v6758_v0 = vadd.f32 %v8304_v12, %v6757_v59  ;;  %v8562_v13 = vpop.f32.mrb[129].mxu1  ;;  %v8571_v17 = vpop.f32.mrb[135].mxu0 }
 0x559   :  { %v6760_v27 = vpop.f32.mrb[130].mxu1 }
 0x55a   :  { %v6763_v3 = vadd.f32 %v6758_v0, %v6530_v32  ;;  %v8563_v52 = vpop.f32.mrb[131].mxu1 }
 0x577   :  { %v8327_v57 = vpop.f32.mrb[132].mxu1 }
 0x578   :  { %v8328_v25 = vpop.f32.mrb[133].mxu1 }
 0x579   :  { %v8329_v36 = vadd.f32 %v8328_v25, %v8327_v57  ;;  %v8330_v56 = vpop.f32.mrb[134].mxu1 }
 0x57a   :  { %v8331_v2 = vpop.f32.mrb[135].mxu1 }
 0x57b   :  { %v6991_v51 = vadd.f32 %v8329_v36, %v6990_v1 }
 0x57d   :  { %v6996_v60 = vadd.f32 %v6991_v51, %v6763_v3 }
 0x57f   :  { %v6998_v50 = vadd.f32 %v6997_v20, %v6996_v60 }
 0x581   :  { %6999 = vst.msk [vmem:[#allocation3 + $0x1] sm:$0x1] %vm4039_vm0, %v6998_v50 }
 0x582   :  { %8914 = shalt.err (!%p8911_p4)
}
 0x583   :  { %s8915_s9 = scalar_lea.hbm %s11018_s5, 32 }
 0x584   :  { %p8916_p5 = scmp.ne.s32.totalorder %s11018_s5, %s8915_s9  ;;  %p8919_p6 = scmp.lt.u32.totalorder %s8915_s9, %s11018_s5 }
 0x586   :  { %p8921_p7 = pnand %p8919_p6, %p8916_p5 }
 0x588   :  { %8924 = shalt.err (!%p8921_p7)
}
 0x589   :  { %7009 = dma.vmem_to_hbm [thread:$0]  %s7007_s7, 32, %s11018_s5, [#allocation4]  }
 0x58a   :  { %8925 = dma.done.wait [#allocation4], 32  }
 0x58b   :  { %8926 = vsyncadd [#allocation4], 4294967264 }
 0x58c   :  { %7013 = vsyncpa [#allocation4], 1 }

</bundles_post_ra>
